<compile_context>
chip_gen: v7x
topology: tpu7x:2x2x1
jax: 0.10.0
libtpu: 0.0.40
codegen_flags: <defaults>
</compile_context>

<pallas_src>
import numpy as np

import jax
import jax.numpy as jnp
from jax import lax
from jax.experimental import pallas as pl
from jax.experimental.pallas import tpu as pltpu

# Matmul-operand / inter-kernel-activation dtypes. bf16 operands give ~2x MXU
# throughput and halve block + hand-off bytes; accumulation stays f32 and the
# InstanceNorm statistics are computed from the f32 accumulator, so the error
# vs. the f32 PyTorch reference stays small (IN renormalizes per channel).
_COMPUTE_DTYPE = jnp.bfloat16
_ACT_DTYPE = jnp.bfloat16
_IN_EPS = 1e-5

_F32 = 4
_ACT_B = int(np.dtype(_ACT_DTYPE).itemsize)
_CMP_B = int(np.dtype(_COMPUTE_DTYPE).itemsize)


def _vmem_capacity_bytes():
    # Generation-aware VMEM capacity (128 MiB on v5e/v6e, 64 MiB on v7x).
    try:
        cap = getattr(pltpu.get_tpu_info(), "vmem_capacity_bytes", None)
        if cap:
            return int(cap)
    except Exception:
        pass
    return 64 << 20  # conservative fallback (v7x-sized)


def _vmem_limit_bytes(*block_bytes, scratch=0):
    # Double-buffered pipeline blocks + in-kernel temporaries + headroom,
    # clamped to ~85% of the physical VMEM of the current generation
    # (~108 MiB on 128 MiB parts, ~54 MiB on v7x).
    total = 2 * sum(int(b) for b in block_bytes) + int(scratch) + (4 << 20)
    ceiling = int(_vmem_capacity_bytes() * 0.85)
    return int(min(max(total, 16 << 20), ceiling))


def _pick_row_tile(H, W, target_rows=None):
    # Largest divisor of H whose matmul M-tile (TH * W rows) stays near the
    # sweet spot; prefer multiples of 8 rows for unmasked sublane stores.
    if target_rows is None:
        target_rows = 2048 if _vmem_capacity_bytes() >= (96 << 20) else 1024
    divs = [t for t in range(1, H + 1) if H % t == 0 and t * W <= target_rows]
    if not divs:
        return 1
    aligned = [t for t in divs if (t * W) % 8 == 0]
    return max(aligned) if aligned else max(divs)


# ---------------------------------------------------------------------------
# Kernel 1: ConvTranspose2d(kernel=2, stride=2) + bias. Output is written as
# (N, H, 2, W, 2*Cout) = (n, y, ky, x, kx*Cout + co); the wrapper reshape to
# (N, 2H, 2W, Cout) is a free row-major reshape.
# ---------------------------------------------------------------------------
def _upsample_kernel(x_ref, w_ref, b_ref, o_ref):
    # x_ref: (1, TH, W, Cin)  w_ref: (2, Cin, 2*Cout)  b_ref: (1, 2*Cout)
    # o_ref: (1, TH, 2, W, 2*Cout)
    th, wd, cin = x_ref.shape[1], x_ref.shape[2], x_ref.shape[3]
    x = x_ref[0].reshape(th * wd, cin).astype(_COMPUTE_DTYPE)
    b = b_ref[...].astype(jnp.float32)                      # (1, 2*Cout)
    for ky in range(2):
        # One deep-N matmul per ky covers both kx sub-pixels (N = 2*Cout).
        y = jnp.dot(x, w_ref[ky].astype(_COMPUTE_DTYPE),
                    preferred_element_type=jnp.float32) + b
        # Rectangular sub-block store -- no stack/reshape relayout.
        o_ref[0, :, ky, :, :] = y.reshape(th, wd, -1).astype(o_ref.dtype)


def conv_transpose2x2(x_nhwc, wt, b):
    # x_nhwc: (N, H, W, Cin); wt: torch layout (Cin, Cout, 2, 2); b: (Cout,)
    N, H, W, Cin = x_nhwc.shape
    Cout = wt.shape[1]
    # (ci, co, ky, kx) -> (ky, ci, kx, co) -> (2, Cin, 2*Cout)   [kx-major cols]
    w_r = jnp.transpose(wt, (2, 0, 3, 1)).reshape(2, Cin, 2 * Cout)
    w_r = w_r.astype(_COMPUTE_DTYPE)
    b_r = jnp.tile(b, (2,)).reshape(1, 2 * Cout)

    th = _pick_row_tile(H, W)
    grid = (N, H // th)

    in_b = x_nhwc.dtype.itemsize
    blocks = [th * W * Cin * in_b,
              2 * Cin * 2 * Cout * _CMP_B,
              2 * Cout * _F32,
              th * 2 * W * 2 * Cout * _ACT_B]
    flops = 2 * N * H * W * Cin * 4 * Cout
    bytes_accessed = (N * H * W * Cin * in_b + 4 * Cin * Cout * _CMP_B
                      + Cout * _F32 + N * 4 * H * W * Cout * _ACT_B)

    out = pl.pallas_call(
        _upsample_kernel,
        out_shape=jax.ShapeDtypeStruct((N, H, 2, W, 2 * Cout), _ACT_DTYPE),
        grid=grid,
        in_specs=[
            pl.BlockSpec((1, th, W, Cin), lambda n, r: (n, r, 0, 0)),
            pl.BlockSpec((2, Cin, 2 * Cout), lambda n, r: (0, 0, 0)),
            pl.BlockSpec((1, 2 * Cout), lambda n, r: (0, 0)),
        ],
        out_specs=pl.BlockSpec((1, th, 2, W, 2 * Cout),
                               lambda n, r: (n, r, 0, 0, 0)),
        compiler_params=pltpu.CompilerParams(
            dimension_semantics=("parallel", "parallel"),
            vmem_limit_bytes=_vmem_limit_bytes(*blocks),
        ),
        cost_estimate=pl.CostEstimate(flops=int(flops), transcendentals=0,
                                      bytes_accessed=int(bytes_accessed)),
    )(x_nhwc, w_r, b_r)
    # (N, H, 2, W, 2*Cout) -> (N, 2H, 2W, Cout): free row-major reshape.
    return out.reshape(N, 2 * H, 2 * W, Cout)


# ---------------------------------------------------------------------------
# Shared in-kernel helpers for the 3x3 convs.
# ---------------------------------------------------------------------------
def _halo_window(x_ref, r, th, pointwise):
    """Rows [r*th-1, r*th+th+1) of pointwise(image) with zero rows outside the
    image (3x3 conv row halo), built from the unpadded image resident in VMEM."""
    h = x_ref.shape[1]
    start = r * th
    top = pointwise(x_ref[0, pl.ds(jnp.maximum(start - 1, 0), 1)])
    mid = pointwise(x_ref[0, pl.ds(start, th)])
    bot = pointwise(x_ref[0, pl.ds(jnp.minimum(start + th, h - 1), 1)])
    top = jnp.where(start == 0, jnp.zeros_like(top), top)
    bot = jnp.where(start + th >= h, jnp.zeros_like(bot), bot)
    return jnp.concatenate([top, mid, bot], axis=0)          # (th+2, W, C)


def _conv3x3_rows(window, w_ref, th, wd, cout):
    """'same' 3x3 conv of window (th+2, W, C) with w_ref (3, 3C, Cout) giving
    (th*W, Cout) f32. The column halo is built in-VMEM via sublane shifts +
    zero columns; the three horizontal taps are concatenated along channels
    once so each dy is a single deep-K (K=3C) matmul on a contiguous slice."""
    c = window.shape[-1]
    zcol = jnp.zeros((window.shape[0], 1, c), window.dtype)
    left = jnp.concatenate([zcol, window[:, :wd - 1, :]], axis=1)   # col x-1
    right = jnp.concatenate([window[:, 1:, :], zcol], axis=1)       # col x+1
    # TODO(synk): for channel counts that are not multiples of 128, three
    # separate K=C matmuls may beat this lane-axis concat to 3C.
    xcat = jnp.concatenate([left, window, right], axis=-1)          # (th+2, W, 3C)
    acc = jnp.zeros((th * wd, cout), jnp.float32)
    for dy in range(3):
        patch = xcat[dy:dy + th].reshape(th * wd, 3 * c)
        acc = acc + jnp.dot(patch, w_ref[dy].astype(_COMPUTE_DTYPE),
                            preferred_element_type=jnp.float32)
    return acc


def _partial_stats(acc):
    # Per-row-tile partial sum / sum-of-squares (f32) for two-phase InstanceNorm.
    s = jnp.sum(acc, axis=0, keepdims=True)
    ss = jnp.sum(acc * acc, axis=0, keepdims=True)
    return jnp.concatenate([s, ss], axis=0)                         # (2, Cout)


def _norm_params_from_stats(stats, hw):
    """stats: (N, R, 2, C) partial sums over row tiles -> (N, 2, C) with
    row 0 = mean, row 1 = 1/sqrt(var + eps)  (biased variance, clamped >= 0)."""
    tot = jnp.sum(stats, axis=1)                                    # (N, 2, C)
    mean = tot[:, 0] / hw
    var = jnp.maximum(tot[:, 1] / hw - mean * mean, 0.0)
    inv = lax.rsqrt(var + _IN_EPS)
    return jnp.stack([mean, inv], axis=1).astype(jnp.float32)       # (N, 2, C)


def _conv_w_to_dyk(w_torch):
    # (Cout, Cin, 3, 3) -> (dy, dx*Cin + cin, Cout): dx-major K, matching xcat.
    Cout, Cin = w_torch.shape[0], w_torch.shape[1]
    w = jnp.transpose(w_torch, (2, 3, 1, 0)).reshape(3, 3 * Cin, Cout)
    return w.astype(_COMPUTE_DTYPE)


def _conv_cost(N, H, W, Cin, Cout, in_bytes, out_bytes):
    return pl.CostEstimate(flops=int(2 * N * H * W * 9 * Cin * Cout),
                           transcendentals=0,
                           bytes_accessed=int(in_bytes + out_bytes))


# ---------------------------------------------------------------------------
# Kernel 2: conv1 of DoubleConv, with the channel-concat([x2, x1]) fused in
# (conv over a concat == sum of convs over the parts). Emits the raw conv
# output tile (bf16) + partial InstanceNorm statistics.
# ---------------------------------------------------------------------------
def _conv1_kernel(x2_ref, x1_ref, wa_ref, wb_ref, y_ref, st_ref):
    th, wd, cm = y_ref.shape[1], y_ref.shape[2], y_ref.shape[3]
    r = pl.program_id(1)
    cast = lambda v: v.astype(_COMPUTE_DTYPE)
    acc = _conv3x3_rows(_halo_window(x2_ref, r, th, cast), wa_ref, th, wd, cm)
    acc = acc + _conv3x3_rows(_halo_window(x1_ref, r, th, cast), wb_ref, th, wd, cm)
    y_ref[...] = acc.reshape(1, th, wd, cm).astype(y_ref.dtype)
    st_ref[0, 0] = _partial_stats(acc)


def conv1_pad_concat(x2, x1u, w_torch):
    """Fused [cat([x2, x1], C); Conv3x3(pad=1, no bias)]; returns the raw conv
    output plus per-image (mean, 1/std) InstanceNorm params (phase 1 of 2)."""
    N, H, W, C2 = x2.shape
    C1 = x1u.shape[-1]
    Cm = w_torch.shape[0]
    wa = _conv_w_to_dyk(w_torch[:, :C2])
    wb = _conv_w_to_dyk(w_torch[:, C2:])

    th = _pick_row_tile(H, W)
    R = H // th

    blocks = [H * W * C2 * x2.dtype.itemsize,     # whole image resident (see TODO)
              H * W * C1 * x1u.dtype.itemsize,
              9 * C2 * Cm * _CMP_B, 9 * C1 * Cm * _CMP_B,
              th * W * Cm * _ACT_B, 2 * Cm * _F32]
    # in-kernel temporaries: halo windows + 3C column taps + f32 accumulator
    scratch = 4 * (th + 2) * W * (C2 + C1) * _CMP_B + th * W * Cm * _F32

    y_raw, stats = pl.pallas_call(
        _conv1_kernel,
        out_shape=(jax.ShapeDtypeStruct((N, H, W, Cm), _ACT_DTYPE),
                   jax.ShapeDtypeStruct((N, R, 2, Cm), jnp.float32)),
        grid=(N, R),
        in_specs=[
            # TODO(synk): for very large images stream the input rows too
            # (manual double-buffered DMA). For UNet-scale H/W the whole image
            # fits VMEM comfortably and is DMA'd once per image (prefetched for
            # image n+1 while row tiles of image n compute/write back).
            pl.BlockSpec((1, H, W, C2), lambda n, r: (n, 0, 0, 0)),
            pl.BlockSpec((1, H, W, C1), lambda n, r: (n, 0, 0, 0)),
            pl.BlockSpec((3, 3 * C2, Cm), lambda n, r: (0, 0, 0)),
            pl.BlockSpec((3, 3 * C1, Cm), lambda n, r: (0, 0, 0)),
        ],
        out_specs=(
            pl.BlockSpec((1, th, W, Cm), lambda n, r: (n, r, 0, 0)),
            pl.BlockSpec((1, 1, 2, Cm), lambda n, r: (n, r, 0, 0)),
        ),
        compiler_params=pltpu.CompilerParams(
            dimension_semantics=("parallel", "parallel"),
            vmem_limit_bytes=_vmem_limit_bytes(*blocks, scratch=scratch),
        ),
        cost_estimate=_conv_cost(
            N, H, W, C2 + C1, Cm,
            in_bytes=N * H * W * (C2 * x2.dtype.itemsize
                                  + C1 * x1u.dtype.itemsize)
                     + 9 * (C2 + C1) * Cm * _CMP_B,
            out_bytes=N * H * W * Cm * _ACT_B),
    )(x2, x1u, wa, wb)
    return y_raw, _norm_params_from_stats(stats, H * W)


# ---------------------------------------------------------------------------
# Kernel 3: conv2 of DoubleConv. Applies conv1's InstanceNorm + ReLU on the fly
# (phase 2 of conv1's two-phase IN) while loading its input, then the second
# 3x3 conv + its own partial stats.
# ---------------------------------------------------------------------------
def _conv2_kernel(y1_ref, nm_ref, w_ref, y_ref, st_ref):
    th, wd, co = y_ref.shape[1], y_ref.shape[2], y_ref.shape[3]
    r = pl.program_id(1)
    nm = nm_ref[...]                          # (1, 2, Cm) f32
    mean = nm[:, 0:1, :]                      # (1, 1, Cm)
    inv = nm[:, 1:2, :]

    def norm_relu(v):
        h = jnp.maximum((v.astype(jnp.float32) - mean) * inv, 0.0)
        return h.astype(_COMPUTE_DTYPE)

    acc = _conv3x3_rows(_halo_window(y1_ref, r, th, norm_relu), w_ref, th, wd, co)
    y_ref[...] = acc.reshape(1, th, wd, co).astype(y_ref.dtype)
    st_ref[0, 0] = _partial_stats(acc)


def conv2(y1_raw, nm1, w_torch):
    N, H, W, Cm = y1_raw.shape
    Co = w_torch.shape[0]
    w = _conv_w_to_dyk(w_torch)
    th = _pick_row_tile(H, W)
    R = H // th

    blocks = [H * W * Cm * y1_raw.dtype.itemsize, 2 * Cm * _F32,
              9 * Cm * Co * _CMP_B, th * W * Co * _ACT_B, 2 * Co * _F32]
    scratch = 4 * (th + 2) * W * Cm * _CMP_B + th * W * Co * _F32

    y_raw, stats = pl.pallas_call(
        _conv2_kernel,
        out_shape=(jax.ShapeDtypeStruct((N, H, W, Co), _ACT_DTYPE),
                   jax.ShapeDtypeStruct((N, R, 2, Co), jnp.float32)),
        grid=(N, R),
        in_specs=[
            pl.BlockSpec((1, H, W, Cm), lambda n, r: (n, 0, 0, 0)),
            pl.BlockSpec((1, 2, Cm), lambda n, r: (n, 0, 0)),
            pl.BlockSpec((3, 3 * Cm, Co), lambda n, r: (0, 0, 0)),
        ],
        out_specs=(
            pl.BlockSpec((1, th, W, Co), lambda n, r: (n, r, 0, 0)),
            pl.BlockSpec((1, 1, 2, Co), lambda n, r: (n, r, 0, 0)),
        ),
        compiler_params=pltpu.CompilerParams(
            dimension_semantics=("parallel", "parallel"),
            vmem_limit_bytes=_vmem_limit_bytes(*blocks, scratch=scratch),
        ),
        cost_estimate=_conv_cost(
            N, H, W, Cm, Co,
            in_bytes=N * H * W * Cm * y1_raw.dtype.itemsize + 9 * Cm * Co * _CMP_B,
            out_bytes=N * H * W * Co * _ACT_B),
    )(y1_raw, nm1, w)
    return y_raw, _norm_params_from_stats(stats, H * W)


# ---------------------------------------------------------------------------
# Kernel 4: final InstanceNorm + ReLU (phase 2 of conv2's two-phase IN).
# ---------------------------------------------------------------------------
def _norm_relu_kernel(y_ref, nm_ref, o_ref):
    nm = nm_ref[...]                                     # (1, 2, C)
    mean = nm[:, 0:1, :].reshape(1, 1, 1, -1)
    inv = nm[:, 1:2, :].reshape(1, 1, 1, -1)
    y = y_ref[...].astype(jnp.float32)                   # (1, th, W, C)
    o_ref[...] = jnp.maximum((y - mean) * inv, 0.0).astype(o_ref.dtype)


def instance_norm_relu(y_raw, nm):
    N, H, W, C = y_raw.shape
    th = _pick_row_tile(H, W)
    blocks = [th * W * C * y_raw.dtype.itemsize, 2 * C * _F32, th * W * C * _F32]
    return pl.pallas_call(
        _norm_relu_kernel,
        out_shape=jax.ShapeDtypeStruct((N, H, W, C), jnp.float32),
        grid=(N, H // th),
        in_specs=[pl.BlockSpec((1, th, W, C), lambda n, r: (n, r, 0, 0)),
                  pl.BlockSpec((1, 2, C), lambda n, r: (n, 0, 0))],
        out_specs=pl.BlockSpec((1, th, W, C), lambda n, r: (n, r, 0, 0)),
        compiler_params=pltpu.CompilerParams(
            dimension_semantics=("parallel", "parallel"),
            vmem_limit_bytes=_vmem_limit_bytes(*blocks),
        ),
        cost_estimate=pl.CostEstimate(
            flops=int(3 * N * H * W * C), transcendentals=0,
            bytes_accessed=int(N * H * W * C * (y_raw.dtype.itemsize + _F32))),
    )(y_raw, nm)


# ---------------------------------------------------------------------------
# Up.forward
# ---------------------------------------------------------------------------
def up_forward(params, x1_nchw, x2_nchw):
    # NCHW -> NHWC (channels on the lane axis).
    x1 = jnp.transpose(x1_nchw, (0, 2, 3, 1))
    x2 = jnp.transpose(x2_nchw, (0, 2, 3, 1))

    # ConvTranspose2d(k=2, s=2) upsample (sub-pixel interleave fused in-kernel).
    x1u = conv_transpose2x2(x1, params["up_w"], params["up_b"])

    diffY = x2.shape[1] - x1u.shape[1]
    diffX = x2.shape[2] - x1u.shape[2]
    if diffY < 0 or diffX < 0:
        # TODO(synk): cropping path (x1 spatially larger than x2) not implemented.
        raise NotImplementedError("x1 spatially larger than x2 is not supported")
    if diffY or diffX:
        # TODO(synk): fold these rare odd-size F.pad offsets into conv1's
        # in-kernel halo masking instead of this wrapper-side pad.
        x1u = jnp.pad(x1u, ((0, 0), (diffY // 2, diffY - diffY // 2),
                            (diffX // 2, diffX - diffX // 2), (0, 0)))

    # DoubleConv with two-phase InstanceNorm:
    #   conv1 (with concat fused) -> stats1; conv2 applies norm1+ReLU on the fly
    #   -> stats2; a final small kernel applies norm2+ReLU.
    y1, nm1 = conv1_pad_concat(x2, x1u, params["conv1_w"])
    y2, nm2 = conv2(y1, nm1, params["conv2_w"])
    out = instance_norm_relu(y2, nm2)

    # NHWC -> NCHW
    return jnp.transpose(out, (0, 3, 1, 2))


def init_params(key, in_channels, out_channels):
    k1, k2, k3, k4 = jax.random.split(key, 4)
    return {
        # ConvTranspose2d weight layout: (Cin, Cout, kH, kW), bias=True
        "up_w": 0.1 * jax.random.normal(
            k1, (in_channels, in_channels // 2, 2, 2), jnp.float32),
        "up_b": 0.1 * jax.random.normal(k2, (in_channels // 2,), jnp.float32),
        # Conv2d weight layout: (Cout, Cin, 3, 3), bias=False
        "conv1_w": 0.1 * jax.random.normal(
            k3, (out_channels, in_channels, 3, 3), jnp.float32),
        "conv2_w": 0.1 * jax.random.normal(
            k4, (out_channels, out_channels, 3, 3), jnp.float32),
    }


if __name__ == "__main__":
    # NOTE: production channel counts should be multiples of 128 for lane-dense
    # stores / full MXU fill; the toy config below only checks correctness.
    in_channels, out_channels = 8, 4
    N, H, W = 2, 8, 8  # x1 spatial; x2 is 2x larger

    key = jax.random.PRNGKey(0)
    kp, kx1, kx2 = jax.random.split(key, 3)
    params = init_params(kp, in_channels, out_channels)

    x1 = jax.random.normal(kx1, (N, in_channels, H, W), jnp.float32)
    x2 = jax.random.normal(kx2, (N, in_channels // 2, 2 * H, 2 * W), jnp.float32)

    out = jax.jit(up_forward)(params, x1, x2)
    out = jax.block_until_ready(out)

    assert out.shape == (N, out_channels, 2 * H, 2 * W), out.shape
    assert bool(jnp.all(jnp.isfinite(out)))
    print("KERNEL_OK")
</pallas_src>

<mosaic_0001>
module attributes {stable_mosaic.version = 11 : i64} {
  func.func @_upsample_kernel(%arg0: i32, %arg1: i32, %arg2: memref<1x8x8x8xf32, #tpu.memory_space<vmem>>, %arg3: memref<2x8x8xbf16, #tpu.memory_space<vmem>>, %arg4: memref<1x8xf32, #tpu.memory_space<vmem>>, %arg5: memref<1x8x2x8x8xbf16, #tpu.memory_space<vmem>>) attributes {dimension_semantics = [#tpu.dimension_semantics<parallel>, #tpu.dimension_semantics<parallel>], iteration_bounds = array<i64: 2, 1>, scalar_prefetch = 0 : i64, scratch_operands = 0 : i64, tpu.core_type = #tpu.core_type<tc>, window_params = [{transform_indices = @transform_0, window_bounds = array<i64: 1, 8, 8, 8>}, {pipeline_mode = #tpu.pipeline_mode<synchronous>, transform_indices = @transform_1, window_bounds = array<i64: 2, 8, 8>}, {pipeline_mode = #tpu.pipeline_mode<synchronous>, transform_indices = @transform_2, window_bounds = array<i64: 1, 8>}, {transform_indices = @transform_3, window_bounds = array<i64: 1, 8, 2, 8, 8>}]} {
    %c0 = arith.constant 0 : index
    %c0_0 = arith.constant 0 : index
    %c0_1 = arith.constant 0 : index
    %c0_2 = arith.constant 0 : index
    %0 = vector.load %arg2[%c0, %c0_0, %c0_1, %c0_2] : memref<1x8x8x8xf32, #tpu.memory_space<vmem>>, vector<1x8x8x8xf32>
    %1 = vector.shape_cast %0 : vector<1x8x8x8xf32> to vector<8x8x8xf32>
    %2 = vector.shape_cast %1 : vector<8x8x8xf32> to vector<64x8xf32>
    %3 = arith.truncf %2 : vector<64x8xf32> to vector<64x8xbf16>
    %c0_3 = arith.constant 0 : index
    %c0_4 = arith.constant 0 : index
    %4 = vector.load %arg4[%c0_3, %c0_4] : memref<1x8xf32, #tpu.memory_space<vmem>>, vector<1x8xf32>
    %c0_5 = arith.constant 0 : index
    %c0_6 = arith.constant 0 : index
    %c0_7 = arith.constant 0 : index
    %5 = vector.load %arg3[%c0_5, %c0_6, %c0_7] : memref<2x8x8xbf16, #tpu.memory_space<vmem>>, vector<1x8x8xbf16>
    %6 = vector.shape_cast %5 : vector<1x8x8xbf16> to vector<8x8xbf16>
    %cst = arith.constant dense<0.000000e+00> : vector<64x8xf32>
    %7 = tpu.matmul %3, %6, %cst {dimension_numbers = #tpu.dot_dimension_numbers<[1], [0], [0], [1], [0, 0, 1, 1], [], []>} : vector<64x8xbf16>, vector<8x8xbf16>, vector<64x8xf32> -> vector<64x8xf32>
    %8 = vector.broadcast %4 : vector<1x8xf32> to vector<64x8xf32>
    %9 = arith.addf %7, %8 : vector<64x8xf32>
    %10 = vector.shape_cast %9 : vector<64x8xf32> to vector<8x8x8xf32>
    %11 = arith.truncf %10 : vector<8x8x8xf32> to vector<8x8x8xbf16>
    %c0_8 = arith.constant 0 : index
    %c0_9 = arith.constant 0 : index
    %c0_10 = arith.constant 0 : index
    %c0_11 = arith.constant 0 : index
    %c0_12 = arith.constant 0 : index
    %12 = vector.load %arg5[%c0_8, %c0_9, %c0_10, %c0_11, %c0_12] : memref<1x8x2x8x8xbf16, #tpu.memory_space<vmem>>, vector<1x8x1x8x8xbf16>
    %13 = vector.shape_cast %12 : vector<1x8x1x8x8xbf16> to vector<8x8x8xbf16>
    %14 = vector.shape_cast %11 : vector<8x8x8xbf16> to vector<1x8x1x8x8xbf16>
    tpu.vector_store %arg5[%c0_8, %c0_9, %c0_10, %c0_11, %c0_12], %14 {strides = array<i32>} : memref<1x8x2x8x8xbf16, #tpu.memory_space<vmem>>, vector<1x8x1x8x8xbf16>,
    %c1 = arith.constant 1 : index
    %c0_13 = arith.constant 0 : index
    %c0_14 = arith.constant 0 : index
    %15 = vector.load %arg3[%c1, %c0_13, %c0_14] : memref<2x8x8xbf16, #tpu.memory_space<vmem>>, vector<1x8x8xbf16>
    %16 = vector.shape_cast %15 : vector<1x8x8xbf16> to vector<8x8xbf16>
    %cst_15 = arith.constant dense<0.000000e+00> : vector<64x8xf32>
    %17 = tpu.matmul %3, %16, %cst_15 {dimension_numbers = #tpu.dot_dimension_numbers<[1], [0], [0], [1], [0, 0, 1, 1], [], []>} : vector<64x8xbf16>, vector<8x8xbf16>, vector<64x8xf32> -> vector<64x8xf32>
    %18 = vector.broadcast %4 : vector<1x8xf32> to vector<64x8xf32>
    %19 = arith.addf %17, %18 : vector<64x8xf32>
    %20 = vector.shape_cast %19 : vector<64x8xf32> to vector<8x8x8xf32>
    %21 = arith.truncf %20 : vector<8x8x8xf32> to vector<8x8x8xbf16>
    %c0_16 = arith.constant 0 : index
    %c0_17 = arith.constant 0 : index
    %c1_18 = arith.constant 1 : index
    %c0_19 = arith.constant 0 : index
    %c0_20 = arith.constant 0 : index
    %22 = vector.load %arg5[%c0_16, %c0_17, %c1_18, %c0_19, %c0_20] : memref<1x8x2x8x8xbf16, #tpu.memory_space<vmem>>, vector<1x8x1x8x8xbf16>
    %23 = vector.shape_cast %22 : vector<1x8x1x8x8xbf16> to vector<8x8x8xbf16>
    %24 = vector.shape_cast %21 : vector<8x8x8xbf16> to vector<1x8x1x8x8xbf16>
    tpu.vector_store %arg5[%c0_16, %c0_17, %c1_18, %c0_19, %c0_20], %24 {strides = array<i32>} : memref<1x8x2x8x8xbf16, #tpu.memory_space<vmem>>, vector<1x8x1x8x8xbf16>,
    return
  }
  func.func @transform_0(%arg0: i32, %arg1: i32) -> (i32, i32, i32, i32) {
    %c0_i32 = arith.constant 0 : i32
    %c0_i32_0 = arith.constant 0 : i32
    %c0_i32_1 = arith.constant 0 : i32
    return %arg0, %arg1, %c0_i32, %c0_i32_0 : i32, i32, i32, i32
  }
  func.func @transform_1(%arg0: i32, %arg1: i32) -> (i32, i32, i32) {
    %c0_i32 = arith.constant 0 : i32
    %c0_i32_0 = arith.constant 0 : i32
    %c0_i32_1 = arith.constant 0 : i32
    %c0_i32_2 = arith.constant 0 : i32
    return %c0_i32, %c0_i32_0, %c0_i32_1 : i32, i32, i32
  }
  func.func @transform_2(%arg0: i32, %arg1: i32) -> (i32, i32) {
    %c0_i32 = arith.constant 0 : i32
    %c0_i32_0 = arith.constant 0 : i32
    %c0_i32_1 = arith.constant 0 : i32
    return %c0_i32, %c0_i32_0 : i32, i32
  }
  func.func @transform_3(%arg0: i32, %arg1: i32) -> (i32, i32, i32, i32, i32) {
    %c0_i32 = arith.constant 0 : i32
    %c0_i32_0 = arith.constant 0 : i32
    %c0_i32_1 = arith.constant 0 : i32
    %c0_i32_2 = arith.constant 0 : i32
    return %arg0, %arg1, %c0_i32, %c0_i32_0, %c0_i32_1 : i32, i32, i32, i32, i32
  }
}

module attributes {stable_mosaic.version = 11 : i64} {
  func.func @_conv1_kernel(%arg0: i32, %arg1: i32, %arg2: memref<1x16x16x4xf32, #tpu.memory_space<vmem>>, %arg3: memref<1x16x16x4xbf16, #tpu.memory_space<vmem>>, %arg4: memref<3x12x4xbf16, #tpu.memory_space<vmem>>, %arg5: memref<3x12x4xbf16, #tpu.memory_space<vmem>>, %arg6: memref<1x16x16x4xbf16, #tpu.memory_space<vmem>>, %arg7: memref<1x1x2x4xf32, #tpu.memory_space<vmem>>) attributes {dimension_semantics = [#tpu.dimension_semantics<parallel>, #tpu.dimension_semantics<parallel>], iteration_bounds = array<i64: 2, 1>, scalar_prefetch = 0 : i64, scratch_operands = 0 : i64, tpu.core_type = #tpu.core_type<tc>, window_params = [{transform_indices = @transform_0, window_bounds = array<i64: 1, 16, 16, 4>}, {transform_indices = @transform_1, window_bounds = array<i64: 1, 16, 16, 4>}, {pipeline_mode = #tpu.pipeline_mode<synchronous>, transform_indices = @transform_2, window_bounds = array<i64: 3, 12, 4>}, {pipeline_mode = #tpu.pipeline_mode<synchronous>, transform_indices = @transform_3, window_bounds = array<i64: 3, 12, 4>}, {transform_indices = @transform_4, window_bounds = array<i64: 1, 16, 16, 4>}, {transform_indices = @transform_5, window_bounds = array<i64: 1, 1, 2, 4>}]} {
    %c16_i32 = arith.constant 16 : i32
    %0 = arith.muli %arg1, %c16_i32 : i32
    %c1_i32 = arith.constant 1 : i32
    %1 = arith.subi %0, %c1_i32 : i32
    %c0_i32 = arith.constant 0 : i32
    %2 = arith.maxsi %1, %c0_i32 : i32
    %c0 = arith.constant 0 : index
    %3 = arith.index_cast %2 : i32 to index
    %c0_0 = arith.constant 0 : index
    %c0_1 = arith.constant 0 : index
    %4 = vector.load %arg2[%c0, %3, %c0_0, %c0_1] : memref<1x16x16x4xf32, #tpu.memory_space<vmem>>, vector<1x1x16x4xf32>
    %5 = vector.shape_cast %4 : vector<1x1x16x4xf32> to vector<1x16x4xf32>
    %6 = arith.truncf %5 : vector<1x16x4xf32> to vector<1x16x4xbf16>
    %c0_2 = arith.constant 0 : index
    %7 = arith.index_cast %0 : i32 to index
    %c0_3 = arith.constant 0 : index
    %c0_4 = arith.constant 0 : index
    %8 = vector.load %arg2[%c0_2, %7, %c0_3, %c0_4] : memref<1x16x16x4xf32, #tpu.memory_space<vmem>>, vector<1x16x16x4xf32>
    %9 = vector.shape_cast %8 : vector<1x16x16x4xf32> to vector<16x16x4xf32>
    %10 = arith.truncf %9 : vector<16x16x4xf32> to vector<16x16x4xbf16>
    %c16_i32_5 = arith.constant 16 : i32
    %11 = arith.addi %0, %c16_i32_5 : i32
    %c15_i32 = arith.constant 15 : i32
    %12 = arith.minsi %11, %c15_i32 : i32
    %c0_6 = arith.constant 0 : index
    %13 = arith.index_cast %12 : i32 to index
    %c0_7 = arith.constant 0 : index
    %c0_8 = arith.constant 0 : index
    %14 = vector.load %arg2[%c0_6, %13, %c0_7, %c0_8] : memref<1x16x16x4xf32, #tpu.memory_space<vmem>>, vector<1x1x16x4xf32>
    %15 = vector.shape_cast %14 : vector<1x1x16x4xf32> to vector<1x16x4xf32>
    %16 = arith.truncf %15 : vector<1x16x4xf32> to vector<1x16x4xbf16>
    %c0_i32_9 = arith.constant 0 : i32
    %17 = arith.cmpi eq, %0, %c0_i32_9 : i32
    %cst = arith.constant 0.000000e+00 : bf16
    %18 = vector.broadcast %cst : bf16 to vector<1x16x4xbf16>
    %19 = arith.select %17, %18, %6 : vector<1x16x4xbf16>
    %c16_i32_10 = arith.constant 16 : i32
    %20 = arith.addi %0, %c16_i32_10 : i32
    %c16_i32_11 = arith.constant 16 : i32
    %21 = arith.cmpi sge, %20, %c16_i32_11 : i32
    %cst_12 = arith.constant 0.000000e+00 : bf16
    %22 = vector.broadcast %cst_12 : bf16 to vector<1x16x4xbf16>
    %23 = arith.select %21, %22, %16 : vector<1x16x4xbf16>
    %24 = tpu.concatenate %19, %10, %23 in 0 : vector<1x16x4xbf16>, vector<16x16x4xbf16>, vector<1x16x4xbf16> -> vector<18x16x4xbf16>
    %cst_13 = arith.constant 0.000000e+00 : bf16
    %25 = vector.broadcast %cst_13 : bf16 to vector<18x1x4xbf16>
    %26 = vector.extract_strided_slice %24 {offsets = [0, 0, 0], sizes = [18, 15, 4], strides = [1, 1, 1]} : vector<18x16x4xbf16> to vector<18x15x4xbf16>
    %27 = tpu.concatenate %25, %26 in 1 : vector<18x1x4xbf16>, vector<18x15x4xbf16> -> vector<18x16x4xbf16>
    %28 = vector.extract_strided_slice %24 {offsets = [0, 1, 0], sizes = [18, 15, 4], strides = [1, 1, 1]} : vector<18x16x4xbf16> to vector<18x15x4xbf16>
    %29 = tpu.concatenate %28, %25 in 1 : vector<18x15x4xbf16>, vector<18x1x4xbf16> -> vector<18x16x4xbf16>
    %30 = tpu.concatenate %27, %24, %29 in 2 : vector<18x16x4xbf16>, vector<18x16x4xbf16>, vector<18x16x4xbf16> -> vector<18x16x12xbf16>
    %cst_14 = arith.constant 0.000000e+00 : f32
    %31 = vector.broadcast %cst_14 : f32 to vector<256x4xf32>
    %32 = vector.extract_strided_slice %30 {offsets = [0, 0, 0], sizes = [16, 16, 12], strides = [1, 1, 1]} : vector<18x16x12xbf16> to vector<16x16x12xbf16>
    %33 = vector.shape_cast %32 : vector<16x16x12xbf16> to vector<256x12xbf16>
    %c0_15 = arith.constant 0 : index
    %c0_16 = arith.constant 0 : index
    %c0_17 = arith.constant 0 : index
    %34 = vector.load %arg4[%c0_15, %c0_16, %c0_17] : memref<3x12x4xbf16, #tpu.memory_space<vmem>>, vector<1x12x4xbf16>
    %35 = vector.shape_cast %34 : vector<1x12x4xbf16> to vector<12x4xbf16>
    %cst_18 = arith.constant dense<0.000000e+00> : vector<256x4xf32>
    %36 = tpu.matmul %33, %35, %cst_18 {dimension_numbers = #tpu.dot_dimension_numbers<[1], [0], [0], [1], [0, 0, 1, 1], [], []>} : vector<256x12xbf16>, vector<12x4xbf16>, vector<256x4xf32> -> vector<256x4xf32>
    %37 = arith.addf %31, %36 : vector<256x4xf32>
    %38 = vector.extract_strided_slice %30 {offsets = [1, 0, 0], sizes = [16, 16, 12], strides = [1, 1, 1]} : vector<18x16x12xbf16> to vector<16x16x12xbf16>
    %39 = vector.shape_cast %38 : vector<16x16x12xbf16> to vector<256x12xbf16>
    %c1 = arith.constant 1 : index
    %c0_19 = arith.constant 0 : index
    %c0_20 = arith.constant 0 : index
    %40 = vector.load %arg4[%c1, %c0_19, %c0_20] : memref<3x12x4xbf16, #tpu.memory_space<vmem>>, vector<1x12x4xbf16>
    %41 = vector.shape_cast %40 : vector<1x12x4xbf16> to vector<12x4xbf16>
    %cst_21 = arith.constant dense<0.000000e+00> : vector<256x4xf32>
    %42 = tpu.matmul %39, %41, %cst_21 {dimension_numbers = #tpu.dot_dimension_numbers<[1], [0], [0], [1], [0, 0, 1, 1], [], []>} : vector<256x12xbf16>, vector<12x4xbf16>, vector<256x4xf32> -> vector<256x4xf32>
    %43 = arith.addf %37, %42 : vector<256x4xf32>
    %44 = vector.extract_strided_slice %30 {offsets = [2, 0, 0], sizes = [16, 16, 12], strides = [1, 1, 1]} : vector<18x16x12xbf16> to vector<16x16x12xbf16>
    %45 = vector.shape_cast %44 : vector<16x16x12xbf16> to vector<256x12xbf16>
    %c2 = arith.constant 2 : index
    %c0_22 = arith.constant 0 : index
    %c0_23 = arith.constant 0 : index
    %46 = vector.load %arg4[%c2, %c0_22, %c0_23] : memref<3x12x4xbf16, #tpu.memory_space<vmem>>, vector<1x12x4xbf16>
    %47 = vector.shape_cast %46 : vector<1x12x4xbf16> to vector<12x4xbf16>
    %cst_24 = arith.constant dense<0.000000e+00> : vector<256x4xf32>
    %48 = tpu.matmul %45, %47, %cst_24 {dimension_numbers = #tpu.dot_dimension_numbers<[1], [0], [0], [1], [0, 0, 1, 1], [], []>} : vector<256x12xbf16>, vector<12x4xbf16>, vector<256x4xf32> -> vector<256x4xf32>
    %49 = arith.addf %43, %48 : vector<256x4xf32>
    %c16_i32_25 = arith.constant 16 : i32
    %50 = arith.muli %arg1, %c16_i32_25 : i32
    %c1_i32_26 = arith.constant 1 : i32
    %51 = arith.subi %50, %c1_i32_26 : i32
    %c0_i32_27 = arith.constant 0 : i32
    %52 = arith.maxsi %51, %c0_i32_27 : i32
    %c0_28 = arith.constant 0 : index
    %53 = arith.index_cast %52 : i32 to index
    %c0_29 = arith.constant 0 : index
    %c0_30 = arith.constant 0 : index
    %54 = vector.load %arg3[%c0_28, %53, %c0_29, %c0_30] : memref<1x16x16x4xbf16, #tpu.memory_space<vmem>>, vector<1x1x16x4xbf16>
    %55 = vector.shape_cast %54 : vector<1x1x16x4xbf16> to vector<1x16x4xbf16>
    %c0_31 = arith.constant 0 : index
    %56 = arith.index_cast %50 : i32 to index
    %c0_32 = arith.constant 0 : index
    %c0_33 = arith.constant 0 : index
    %57 = vector.load %arg3[%c0_31, %56, %c0_32, %c0_33] : memref<1x16x16x4xbf16, #tpu.memory_space<vmem>>, vector<1x16x16x4xbf16>
    %58 = vector.shape_cast %57 : vector<1x16x16x4xbf16> to vector<16x16x4xbf16>
    %c16_i32_34 = arith.constant 16 : i32
    %59 = arith.addi %50, %c16_i32_34 : i32
    %c15_i32_35 = arith.constant 15 : i32
    %60 = arith.minsi %59, %c15_i32_35 : i32
    %c0_36 = arith.constant 0 : index
    %61 = arith.index_cast %60 : i32 to index
    %c0_37 = arith.constant 0 : index
    %c0_38 = arith.constant 0 : index
    %62 = vector.load %arg3[%c0_36, %61, %c0_37, %c0_38] : memref<1x16x16x4xbf16, #tpu.memory_space<vmem>>, vector<1x1x16x4xbf16>
    %63 = vector.shape_cast %62 : vector<1x1x16x4xbf16> to vector<1x16x4xbf16>
    %c0_i32_39 = arith.constant 0 : i32
    %64 = arith.cmpi eq, %50, %c0_i32_39 : i32
    %cst_40 = arith.constant 0.000000e+00 : bf16
    %65 = vector.broadcast %cst_40 : bf16 to vector<1x16x4xbf16>
    %66 = arith.select %64, %65, %55 : vector<1x16x4xbf16>
    %c16_i32_41 = arith.constant 16 : i32
    %67 = arith.addi %50, %c16_i32_41 : i32
    %c16_i32_42 = arith.constant 16 : i32
    %68 = arith.cmpi sge, %67, %c16_i32_42 : i32
    %cst_43 = arith.constant 0.000000e+00 : bf16
    %69 = vector.broadcast %cst_43 : bf16 to vector<1x16x4xbf16>
    %70 = arith.select %68, %69, %63 : vector<1x16x4xbf16>
    %71 = tpu.concatenate %66, %58, %70 in 0 : vector<1x16x4xbf16>, vector<16x16x4xbf16>, vector<1x16x4xbf16> -> vector<18x16x4xbf16>
    %cst_44 = arith.constant 0.000000e+00 : bf16
    %72 = vector.broadcast %cst_44 : bf16 to vector<18x1x4xbf16>
    %73 = vector.extract_strided_slice %71 {offsets = [0, 0, 0], sizes = [18, 15, 4], strides = [1, 1, 1]} : vector<18x16x4xbf16> to vector<18x15x4xbf16>
    %74 = tpu.concatenate %72, %73 in 1 : vector<18x1x4xbf16>, vector<18x15x4xbf16> -> vector<18x16x4xbf16>
    %75 = vector.extract_strided_slice %71 {offsets = [0, 1, 0], sizes = [18, 15, 4], strides = [1, 1, 1]} : vector<18x16x4xbf16> to vector<18x15x4xbf16>
    %76 = tpu.concatenate %75, %72 in 1 : vector<18x15x4xbf16>, vector<18x1x4xbf16> -> vector<18x16x4xbf16>
    %77 = tpu.concatenate %74, %71, %76 in 2 : vector<18x16x4xbf16>, vector<18x16x4xbf16>, vector<18x16x4xbf16> -> vector<18x16x12xbf16>
    %cst_45 = arith.constant 0.000000e+00 : f32
    %78 = vector.broadcast %cst_45 : f32 to vector<256x4xf32>
    %79 = vector.extract_strided_slice %77 {offsets = [0, 0, 0], sizes = [16, 16, 12], strides = [1, 1, 1]} : vector<18x16x12xbf16> to vector<16x16x12xbf16>
    %80 = vector.shape_cast %79 : vector<16x16x12xbf16> to vector<256x12xbf16>
    %c0_46 = arith.constant 0 : index
    %c0_47 = arith.constant 0 : index
    %c0_48 = arith.constant 0 : index
    %81 = vector.load %arg5[%c0_46, %c0_47, %c0_48] : memref<3x12x4xbf16, #tpu.memory_space<vmem>>, vector<1x12x4xbf16>
    %82 = vector.shape_cast %81 : vector<1x12x4xbf16> to vector<12x4xbf16>
    %cst_49 = arith.constant dense<0.000000e+00> : vector<256x4xf32>
    %83 = tpu.matmul %80, %82, %cst_49 {dimension_numbers = #tpu.dot_dimension_numbers<[1], [0], [0], [1], [0, 0, 1, 1], [], []>} : vector<256x12xbf16>, vector<12x4xbf16>, vector<256x4xf32> -> vector<256x4xf32>
    %84 = arith.addf %78, %83 : vector<256x4xf32>
    %85 = vector.extract_strided_slice %77 {offsets = [1, 0, 0], sizes = [16, 16, 12], strides = [1, 1, 1]} : vector<18x16x12xbf16> to vector<16x16x12xbf16>
    %86 = vector.shape_cast %85 : vector<16x16x12xbf16> to vector<256x12xbf16>
    %c1_50 = arith.constant 1 : index
    %c0_51 = arith.constant 0 : index
    %c0_52 = arith.constant 0 : index
    %87 = vector.load %arg5[%c1_50, %c0_51, %c0_52] : memref<3x12x4xbf16, #tpu.memory_space<vmem>>, vector<1x12x4xbf16>
    %88 = vector.shape_cast %87 : vector<1x12x4xbf16> to vector<12x4xbf16>
    %cst_53 = arith.constant dense<0.000000e+00> : vector<256x4xf32>
    %89 = tpu.matmul %86, %88, %cst_53 {dimension_numbers = #tpu.dot_dimension_numbers<[1], [0], [0], [1], [0, 0, 1, 1], [], []>} : vector<256x12xbf16>, vector<12x4xbf16>, vector<256x4xf32> -> vector<256x4xf32>
    %90 = arith.addf %84, %89 : vector<256x4xf32>
    %91 = vector.extract_strided_slice %77 {offsets = [2, 0, 0], sizes = [16, 16, 12], strides = [1, 1, 1]} : vector<18x16x12xbf16> to vector<16x16x12xbf16>
    %92 = vector.shape_cast %91 : vector<16x16x12xbf16> to vector<256x12xbf16>
    %c2_54 = arith.constant 2 : index
    %c0_55 = arith.constant 0 : index
    %c0_56 = arith.constant 0 : index
    %93 = vector.load %arg5[%c2_54, %c0_55, %c0_56] : memref<3x12x4xbf16, #tpu.memory_space<vmem>>, vector<1x12x4xbf16>
    %94 = vector.shape_cast %93 : vector<1x12x4xbf16> to vector<12x4xbf16>
    %cst_57 = arith.constant dense<0.000000e+00> : vector<256x4xf32>
    %95 = tpu.matmul %92, %94, %cst_57 {dimension_numbers = #tpu.dot_dimension_numbers<[1], [0], [0], [1], [0, 0, 1, 1], [], []>} : vector<256x12xbf16>, vector<12x4xbf16>, vector<256x4xf32> -> vector<256x4xf32>
    %96 = arith.addf %90, %95 : vector<256x4xf32>
    %97 = arith.addf %49, %96 : vector<256x4xf32>
    %98 = vector.shape_cast %97 : vector<256x4xf32> to vector<1x16x16x4xf32>
    %99 = arith.truncf %98 : vector<1x16x16x4xf32> to vector<1x16x16x4xbf16>
    %c0_58 = arith.constant 0 : index
    %c0_59 = arith.constant 0 : index
    %c0_60 = arith.constant 0 : index
    %c0_61 = arith.constant 0 : index
    %100 = vector.load %arg6[%c0_58, %c0_59, %c0_60, %c0_61] : memref<1x16x16x4xbf16, #tpu.memory_space<vmem>>, vector<1x16x16x4xbf16>
    tpu.vector_store %arg6[%c0_58, %c0_59, %c0_60, %c0_61], %99 {strides = array<i32>} : memref<1x16x16x4xbf16, #tpu.memory_space<vmem>>, vector<1x16x16x4xbf16>,
    %cst_62 = arith.constant dense<0.000000e+00> : vector<4xf32>
    %101 = vector.multi_reduction <add>, %97, %cst_62 [0] : vector<256x4xf32> to vector<4xf32>
    %102 = vector.shape_cast %101 : vector<4xf32> to vector<1x4xf32>
    %103 = arith.mulf %97, %97 : vector<256x4xf32>
    %cst_63 = arith.constant dense<0.000000e+00> : vector<4xf32>
    %104 = vector.multi_reduction <add>, %103, %cst_63 [0] : vector<256x4xf32> to vector<4xf32>
    %105 = vector.shape_cast %104 : vector<4xf32> to vector<1x4xf32>
    %106 = tpu.concatenate %102, %105 in 0 : vector<1x4xf32>, vector<1x4xf32> -> vector<2x4xf32>
    %c0_64 = arith.constant 0 : index
    %c0_65 = arith.constant 0 : index
    %c0_66 = arith.constant 0 : index
    %c0_67 = arith.constant 0 : index
    %107 = vector.load %arg7[%c0_64, %c0_65, %c0_66, %c0_67] : memref<1x1x2x4xf32, #tpu.memory_space<vmem>>, vector<1x1x2x4xf32>
    %108 = vector.shape_cast %107 : vector<1x1x2x4xf32> to vector<2x4xf32>
    %109 = vector.shape_cast %106 : vector<2x4xf32> to vector<1x1x2x4xf32>
    tpu.vector_store %arg7[%c0_64, %c0_65, %c0_66, %c0_67], %109 {strides = array<i32>} : memref<1x1x2x4xf32, #tpu.memory_space<vmem>>, vector<1x1x2x4xf32>,
    return
  }
  func.func @transform_0(%arg0: i32, %arg1: i32) -> (i32, i32, i32, i32) {
    %c0_i32 = arith.constant 0 : i32
    %c0_i32_0 = arith.constant 0 : i32
    %c0_i32_1 = arith.constant 0 : i32
    %c0_i32_2 = arith.constant 0 : i32
    return %arg0, %c0_i32, %c0_i32_0, %c0_i32_1 : i32, i32, i32, i32
  }
  func.func @transform_1(%arg0: i32, %arg1: i32) -> (i32, i32, i32, i32) {
    %c0_i32 = arith.constant 0 : i32
    %c0_i32_0 = arith.constant 0 : i32
    %c0_i32_1 = arith.constant 0 : i32
    %c0_i32_2 = arith.constant 0 : i32
    return %arg0, %c0_i32, %c0_i32_0, %c0_i32_1 : i32, i32, i32, i32
  }
  func.func @transform_2(%arg0: i32, %arg1: i32) -> (i32, i32, i32) {
    %c0_i32 = arith.constant 0 : i32
    %c0_i32_0 = arith.constant 0 : i32
    %c0_i32_1 = arith.constant 0 : i32
    %c0_i32_2 = arith.constant 0 : i32
    return %c0_i32, %c0_i32_0, %c0_i32_1 : i32, i32, i32
  }
  func.func @transform_3(%arg0: i32, %arg1: i32) -> (i32, i32, i32) {
    %c0_i32 = arith.constant 0 : i32
    %c0_i32_0 = arith.constant 0 : i32
    %c0_i32_1 = arith.constant 0 : i32
    %c0_i32_2 = arith.constant 0 : i32
    return %c0_i32, %c0_i32_0, %c0_i32_1 : i32, i32, i32
  }
  func.func @transform_4(%arg0: i32, %arg1: i32) -> (i32, i32, i32, i32) {
    %c0_i32 = arith.constant 0 : i32
    %c0_i32_0 = arith.constant 0 : i32
    %c0_i32_1 = arith.constant 0 : i32
    return %arg0, %arg1, %c0_i32, %c0_i32_0 : i32, i32, i32, i32
  }
  func.func @transform_5(%arg0: i32, %arg1: i32) -> (i32, i32, i32, i32) {
    %c0_i32 = arith.constant 0 : i32
    %c0_i32_0 = arith.constant 0 : i32
    %c0_i32_1 = arith.constant 0 : i32
    return %arg0, %arg1, %c0_i32, %c0_i32_0 : i32, i32, i32, i32
  }
}

module attributes {stable_mosaic.version = 11 : i64} {
  func.func @_norm_relu_kernel(%arg0: i32, %arg1: i32, %arg2: memref<1x16x16x4xbf16, #tpu.memory_space<vmem>>, %arg3: memref<1x2x4xf32, #tpu.memory_space<vmem>>, %arg4: memref<1x16x16x4xf32, #tpu.memory_space<vmem>>) attributes {dimension_semantics = [#tpu.dimension_semantics<parallel>, #tpu.dimension_semantics<parallel>], iteration_bounds = array<i64: 2, 1>, scalar_prefetch = 0 : i64, scratch_operands = 0 : i64, tpu.core_type = #tpu.core_type<tc>, window_params = [{transform_indices = @transform_0, window_bounds = array<i64: 1, 16, 16, 4>}, {transform_indices = @transform_1, window_bounds = array<i64: 1, 2, 4>}, {transform_indices = @transform_2, window_bounds = array<i64: 1, 16, 16, 4>}]} {
    %c0 = arith.constant 0 : index
    %c0_0 = arith.constant 0 : index
    %c0_1 = arith.constant 0 : index
    %0 = vector.load %arg3[%c0, %c0_0, %c0_1] : memref<1x2x4xf32, #tpu.memory_space<vmem>>, vector<1x2x4xf32>
    %1 = vector.extract_strided_slice %0 {offsets = [0, 0, 0], sizes = [1, 1, 4], strides = [1, 1, 1]} : vector<1x2x4xf32> to vector<1x1x4xf32>
    %2 = vector.shape_cast %1 : vector<1x1x4xf32> to vector<1x1x1x4xf32>
    %3 = vector.extract_strided_slice %0 {offsets = [0, 1, 0], sizes = [1, 1, 4], strides = [1, 1, 1]} : vector<1x2x4xf32> to vector<1x1x4xf32>
    %4 = vector.shape_cast %3 : vector<1x1x4xf32> to vector<1x1x1x4xf32>
    %c0_2 = arith.constant 0 : index
    %c0_3 = arith.constant 0 : index
    %c0_4 = arith.constant 0 : index
    %c0_5 = arith.constant 0 : index
    %5 = vector.load %arg2[%c0_2, %c0_3, %c0_4, %c0_5] : memref<1x16x16x4xbf16, #tpu.memory_space<vmem>>, vector<1x16x16x4xbf16>
    %6 = arith.extf %5 : vector<1x16x16x4xbf16> to vector<1x16x16x4xf32>
    %7 = vector.broadcast %2 : vector<1x1x1x4xf32> to vector<1x16x16x4xf32>
    %8 = arith.subf %6, %7 : vector<1x16x16x4xf32>
    %9 = vector.broadcast %4 : vector<1x1x1x4xf32> to vector<1x16x16x4xf32>
    %10 = arith.mulf %8, %9 : vector<1x16x16x4xf32>
    %cst = arith.constant 0.000000e+00 : f32
    %11 = vector.broadcast %cst : f32 to vector<1x16x16x4xf32>
    %12 = arith.maximumf %10, %11 : vector<1x16x16x4xf32>
    %c0_6 = arith.constant 0 : index
    %c0_7 = arith.constant 0 : index
    %c0_8 = arith.constant 0 : index
    %c0_9 = arith.constant 0 : index
    %13 = vector.load %arg4[%c0_6, %c0_7, %c0_8, %c0_9] : memref<1x16x16x4xf32, #tpu.memory_space<vmem>>, vector<1x16x16x4xf32>
    tpu.vector_store %arg4[%c0_6, %c0_7, %c0_8, %c0_9], %12 {strides = array<i32>} : memref<1x16x16x4xf32, #tpu.memory_space<vmem>>, vector<1x16x16x4xf32>,
    return
  }
  func.func @transform_0(%arg0: i32, %arg1: i32) -> (i32, i32, i32, i32) {
    %c0_i32 = arith.constant 0 : i32
    %c0_i32_0 = arith.constant 0 : i32
    %c0_i32_1 = arith.constant 0 : i32
    return %arg0, %arg1, %c0_i32, %c0_i32_0 : i32, i32, i32, i32
  }
  func.func @transform_1(%arg0: i32, %arg1: i32) -> (i32, i32, i32) {
    %c0_i32 = arith.constant 0 : i32
    %c0_i32_0 = arith.constant 0 : i32
    %c0_i32_1 = arith.constant 0 : i32
    return %arg0, %c0_i32, %c0_i32_0 : i32, i32, i32
  }
  func.func @transform_2(%arg0: i32, %arg1: i32) -> (i32, i32, i32, i32) {
    %c0_i32 = arith.constant 0 : i32
    %c0_i32_0 = arith.constant 0 : i32
    %c0_i32_1 = arith.constant 0 : i32
    return %arg0, %arg1, %c0_i32, %c0_i32_0 : i32, i32, i32, i32
  }
}

module attributes {stable_mosaic.version = 11 : i64} {
  func.func @_conv2_kernel(%arg0: i32, %arg1: i32, %arg2: memref<1x16x16x4xbf16, #tpu.memory_space<vmem>>, %arg3: memref<1x2x4xf32, #tpu.memory_space<vmem>>, %arg4: memref<3x12x4xbf16, #tpu.memory_space<vmem>>, %arg5: memref<1x16x16x4xbf16, #tpu.memory_space<vmem>>, %arg6: memref<1x1x2x4xf32, #tpu.memory_space<vmem>>) attributes {dimension_semantics = [#tpu.dimension_semantics<parallel>, #tpu.dimension_semantics<parallel>], iteration_bounds = array<i64: 2, 1>, scalar_prefetch = 0 : i64, scratch_operands = 0 : i64, tpu.core_type = #tpu.core_type<tc>, window_params = [{transform_indices = @transform_0, window_bounds = array<i64: 1, 16, 16, 4>}, {transform_indices = @transform_1, window_bounds = array<i64: 1, 2, 4>}, {pipeline_mode = #tpu.pipeline_mode<synchronous>, transform_indices = @transform_2, window_bounds = array<i64: 3, 12, 4>}, {transform_indices = @transform_3, window_bounds = array<i64: 1, 16, 16, 4>}, {transform_indices = @transform_4, window_bounds = array<i64: 1, 1, 2, 4>}]} {
    %c0 = arith.constant 0 : index
    %c0_0 = arith.constant 0 : index
    %c0_1 = arith.constant 0 : index
    %0 = vector.load %arg3[%c0, %c0_0, %c0_1] : memref<1x2x4xf32, #tpu.memory_space<vmem>>, vector<1x2x4xf32>
    %1 = vector.extract_strided_slice %0 {offsets = [0, 0, 0], sizes = [1, 1, 4], strides = [1, 1, 1]} : vector<1x2x4xf32> to vector<1x1x4xf32>
    %2 = vector.extract_strided_slice %0 {offsets = [0, 1, 0], sizes = [1, 1, 4], strides = [1, 1, 1]} : vector<1x2x4xf32> to vector<1x1x4xf32>
    %c16_i32 = arith.constant 16 : i32
    %3 = arith.muli %arg1, %c16_i32 : i32
    %c1_i32 = arith.constant 1 : i32
    %4 = arith.subi %3, %c1_i32 : i32
    %c0_i32 = arith.constant 0 : i32
    %5 = arith.maxsi %4, %c0_i32 : i32
    %c0_2 = arith.constant 0 : index
    %6 = arith.index_cast %5 : i32 to index
    %c0_3 = arith.constant 0 : index
    %c0_4 = arith.constant 0 : index
    %7 = vector.load %arg2[%c0_2, %6, %c0_3, %c0_4] : memref<1x16x16x4xbf16, #tpu.memory_space<vmem>>, vector<1x1x16x4xbf16>
    %8 = vector.shape_cast %7 : vector<1x1x16x4xbf16> to vector<1x16x4xbf16>
    %9 = arith.extf %8 : vector<1x16x4xbf16> to vector<1x16x4xf32>
    %10 = vector.broadcast %1 : vector<1x1x4xf32> to vector<1x16x4xf32>
    %11 = arith.subf %9, %10 : vector<1x16x4xf32>
    %12 = vector.broadcast %2 : vector<1x1x4xf32> to vector<1x16x4xf32>
    %13 = arith.mulf %11, %12 : vector<1x16x4xf32>
    %cst = arith.constant 0.000000e+00 : f32
    %14 = vector.broadcast %cst : f32 to vector<1x16x4xf32>
    %15 = arith.maximumf %13, %14 : vector<1x16x4xf32>
    %16 = arith.truncf %15 : vector<1x16x4xf32> to vector<1x16x4xbf16>
    %c0_5 = arith.constant 0 : index
    %17 = arith.index_cast %3 : i32 to index
    %c0_6 = arith.constant 0 : index
    %c0_7 = arith.constant 0 : index
    %18 = vector.load %arg2[%c0_5, %17, %c0_6, %c0_7] : memref<1x16x16x4xbf16, #tpu.memory_space<vmem>>, vector<1x16x16x4xbf16>
    %19 = vector.shape_cast %18 : vector<1x16x16x4xbf16> to vector<16x16x4xbf16>
    %20 = arith.extf %19 : vector<16x16x4xbf16> to vector<16x16x4xf32>
    %21 = vector.broadcast %1 : vector<1x1x4xf32> to vector<16x16x4xf32>
    %22 = arith.subf %20, %21 : vector<16x16x4xf32>
    %23 = vector.broadcast %2 : vector<1x1x4xf32> to vector<16x16x4xf32>
    %24 = arith.mulf %22, %23 : vector<16x16x4xf32>
    %cst_8 = arith.constant 0.000000e+00 : f32
    %25 = vector.broadcast %cst_8 : f32 to vector<16x16x4xf32>
    %26 = arith.maximumf %24, %25 : vector<16x16x4xf32>
    %27 = arith.truncf %26 : vector<16x16x4xf32> to vector<16x16x4xbf16>
    %c16_i32_9 = arith.constant 16 : i32
    %28 = arith.addi %3, %c16_i32_9 : i32
    %c15_i32 = arith.constant 15 : i32
    %29 = arith.minsi %28, %c15_i32 : i32
    %c0_10 = arith.constant 0 : index
    %30 = arith.index_cast %29 : i32 to index
    %c0_11 = arith.constant 0 : index
    %c0_12 = arith.constant 0 : index
    %31 = vector.load %arg2[%c0_10, %30, %c0_11, %c0_12] : memref<1x16x16x4xbf16, #tpu.memory_space<vmem>>, vector<1x1x16x4xbf16>
    %32 = vector.shape_cast %31 : vector<1x1x16x4xbf16> to vector<1x16x4xbf16>
    %33 = arith.extf %32 : vector<1x16x4xbf16> to vector<1x16x4xf32>
    %34 = vector.broadcast %1 : vector<1x1x4xf32> to vector<1x16x4xf32>
    %35 = arith.subf %33, %34 : vector<1x16x4xf32>
    %36 = vector.broadcast %2 : vector<1x1x4xf32> to vector<1x16x4xf32>
    %37 = arith.mulf %35, %36 : vector<1x16x4xf32>
    %cst_13 = arith.constant 0.000000e+00 : f32
    %38 = vector.broadcast %cst_13 : f32 to vector<1x16x4xf32>
    %39 = arith.maximumf %37, %38 : vector<1x16x4xf32>
    %40 = arith.truncf %39 : vector<1x16x4xf32> to vector<1x16x4xbf16>
    %c0_i32_14 = arith.constant 0 : i32
    %41 = arith.cmpi eq, %3, %c0_i32_14 : i32
    %cst_15 = arith.constant 0.000000e+00 : bf16
    %42 = vector.broadcast %cst_15 : bf16 to vector<1x16x4xbf16>
    %43 = arith.select %41, %42, %16 : vector<1x16x4xbf16>
    %c16_i32_16 = arith.constant 16 : i32
    %44 = arith.addi %3, %c16_i32_16 : i32
    %c16_i32_17 = arith.constant 16 : i32
    %45 = arith.cmpi sge, %44, %c16_i32_17 : i32
    %cst_18 = arith.constant 0.000000e+00 : bf16
    %46 = vector.broadcast %cst_18 : bf16 to vector<1x16x4xbf16>
    %47 = arith.select %45, %46, %40 : vector<1x16x4xbf16>
    %48 = tpu.concatenate %43, %27, %47 in 0 : vector<1x16x4xbf16>, vector<16x16x4xbf16>, vector<1x16x4xbf16> -> vector<18x16x4xbf16>
    %cst_19 = arith.constant 0.000000e+00 : bf16
    %49 = vector.broadcast %cst_19 : bf16 to vector<18x1x4xbf16>
    %50 = vector.extract_strided_slice %48 {offsets = [0, 0, 0], sizes = [18, 15, 4], strides = [1, 1, 1]} : vector<18x16x4xbf16> to vector<18x15x4xbf16>
    %51 = tpu.concatenate %49, %50 in 1 : vector<18x1x4xbf16>, vector<18x15x4xbf16> -> vector<18x16x4xbf16>
    %52 = vector.extract_strided_slice %48 {offsets = [0, 1, 0], sizes = [18, 15, 4], strides = [1, 1, 1]} : vector<18x16x4xbf16> to vector<18x15x4xbf16>
    %53 = tpu.concatenate %52, %49 in 1 : vector<18x15x4xbf16>, vector<18x1x4xbf16> -> vector<18x16x4xbf16>
    %54 = tpu.concatenate %51, %48, %53 in 2 : vector<18x16x4xbf16>, vector<18x16x4xbf16>, vector<18x16x4xbf16> -> vector<18x16x12xbf16>
    %cst_20 = arith.constant 0.000000e+00 : f32
    %55 = vector.broadcast %cst_20 : f32 to vector<256x4xf32>
    %56 = vector.extract_strided_slice %54 {offsets = [0, 0, 0], sizes = [16, 16, 12], strides = [1, 1, 1]} : vector<18x16x12xbf16> to vector<16x16x12xbf16>
    %57 = vector.shape_cast %56 : vector<16x16x12xbf16> to vector<256x12xbf16>
    %c0_21 = arith.constant 0 : index
    %c0_22 = arith.constant 0 : index
    %c0_23 = arith.constant 0 : index
    %58 = vector.load %arg4[%c0_21, %c0_22, %c0_23] : memref<3x12x4xbf16, #tpu.memory_space<vmem>>, vector<1x12x4xbf16>
    %59 = vector.shape_cast %58 : vector<1x12x4xbf16> to vector<12x4xbf16>
    %cst_24 = arith.constant dense<0.000000e+00> : vector<256x4xf32>
    %60 = tpu.matmul %57, %59, %cst_24 {dimension_numbers = #tpu.dot_dimension_numbers<[1], [0], [0], [1], [0, 0, 1, 1], [], []>} : vector<256x12xbf16>, vector<12x4xbf16>, vector<256x4xf32> -> vector<256x4xf32>
    %61 = arith.addf %55, %60 : vector<256x4xf32>
    %62 = vector.extract_strided_slice %54 {offsets = [1, 0, 0], sizes = [16, 16, 12], strides = [1, 1, 1]} : vector<18x16x12xbf16> to vector<16x16x12xbf16>
    %63 = vector.shape_cast %62 : vector<16x16x12xbf16> to vector<256x12xbf16>
    %c1 = arith.constant 1 : index
    %c0_25 = arith.constant 0 : index
    %c0_26 = arith.constant 0 : index
    %64 = vector.load %arg4[%c1, %c0_25, %c0_26] : memref<3x12x4xbf16, #tpu.memory_space<vmem>>, vector<1x12x4xbf16>
    %65 = vector.shape_cast %64 : vector<1x12x4xbf16> to vector<12x4xbf16>
    %cst_27 = arith.constant dense<0.000000e+00> : vector<256x4xf32>
    %66 = tpu.matmul %63, %65, %cst_27 {dimension_numbers = #tpu.dot_dimension_numbers<[1], [0], [0], [1], [0, 0, 1, 1], [], []>} : vector<256x12xbf16>, vector<12x4xbf16>, vector<256x4xf32> -> vector<256x4xf32>
    %67 = arith.addf %61, %66 : vector<256x4xf32>
    %68 = vector.extract_strided_slice %54 {offsets = [2, 0, 0], sizes = [16, 16, 12], strides = [1, 1, 1]} : vector<18x16x12xbf16> to vector<16x16x12xbf16>
    %69 = vector.shape_cast %68 : vector<16x16x12xbf16> to vector<256x12xbf16>
    %c2 = arith.constant 2 : index
    %c0_28 = arith.constant 0 : index
    %c0_29 = arith.constant 0 : index
    %70 = vector.load %arg4[%c2, %c0_28, %c0_29] : memref<3x12x4xbf16, #tpu.memory_space<vmem>>, vector<1x12x4xbf16>
    %71 = vector.shape_cast %70 : vector<1x12x4xbf16> to vector<12x4xbf16>
    %cst_30 = arith.constant dense<0.000000e+00> : vector<256x4xf32>
    %72 = tpu.matmul %69, %71, %cst_30 {dimension_numbers = #tpu.dot_dimension_numbers<[1], [0], [0], [1], [0, 0, 1, 1], [], []>} : vector<256x12xbf16>, vector<12x4xbf16>, vector<256x4xf32> -> vector<256x4xf32>
    %73 = arith.addf %67, %72 : vector<256x4xf32>
    %74 = vector.shape_cast %73 : vector<256x4xf32> to vector<1x16x16x4xf32>
    %75 = arith.truncf %74 : vector<1x16x16x4xf32> to vector<1x16x16x4xbf16>
    %c0_31 = arith.constant 0 : index
    %c0_32 = arith.constant 0 : index
    %c0_33 = arith.constant 0 : index
    %c0_34 = arith.constant 0 : index
    %76 = vector.load %arg5[%c0_31, %c0_32, %c0_33, %c0_34] : memref<1x16x16x4xbf16, #tpu.memory_space<vmem>>, vector<1x16x16x4xbf16>
    tpu.vector_store %arg5[%c0_31, %c0_32, %c0_33, %c0_34], %75 {strides = array<i32>} : memref<1x16x16x4xbf16, #tpu.memory_space<vmem>>, vector<1x16x16x4xbf16>,
    %cst_35 = arith.constant dense<0.000000e+00> : vector<4xf32>
    %77 = vector.multi_reduction <add>, %73, %cst_35 [0] : vector<256x4xf32> to vector<4xf32>
    %78 = vector.shape_cast %77 : vector<4xf32> to vector<1x4xf32>
    %79 = arith.mulf %73, %73 : vector<256x4xf32>
    %cst_36 = arith.constant dense<0.000000e+00> : vector<4xf32>
    %80 = vector.multi_reduction <add>, %79, %cst_36 [0] : vector<256x4xf32> to vector<4xf32>
    %81 = vector.shape_cast %80 : vector<4xf32> to vector<1x4xf32>
    %82 = tpu.concatenate %78, %81 in 0 : vector<1x4xf32>, vector<1x4xf32> -> vector<2x4xf32>
    %c0_37 = arith.constant 0 : index
    %c0_38 = arith.constant 0 : index
    %c0_39 = arith.constant 0 : index
    %c0_40 = arith.constant 0 : index
    %83 = vector.load %arg6[%c0_37, %c0_38, %c0_39, %c0_40] : memref<1x1x2x4xf32, #tpu.memory_space<vmem>>, vector<1x1x2x4xf32>
    %84 = vector.shape_cast %83 : vector<1x1x2x4xf32> to vector<2x4xf32>
    %85 = vector.shape_cast %82 : vector<2x4xf32> to vector<1x1x2x4xf32>
    tpu.vector_store %arg6[%c0_37, %c0_38, %c0_39, %c0_40], %85 {strides = array<i32>} : memref<1x1x2x4xf32, #tpu.memory_space<vmem>>, vector<1x1x2x4xf32>,
    return
  }
  func.func @transform_0(%arg0: i32, %arg1: i32) -> (i32, i32, i32, i32) {
    %c0_i32 = arith.constant 0 : i32
    %c0_i32_0 = arith.constant 0 : i32
    %c0_i32_1 = arith.constant 0 : i32
    %c0_i32_2 = arith.constant 0 : i32
    return %arg0, %c0_i32, %c0_i32_0, %c0_i32_1 : i32, i32, i32, i32
  }
  func.func @transform_1(%arg0: i32, %arg1: i32) -> (i32, i32, i32) {
    %c0_i32 = arith.constant 0 : i32
    %c0_i32_0 = arith.constant 0 : i32
    %c0_i32_1 = arith.constant 0 : i32
    return %arg0, %c0_i32, %c0_i32_0 : i32, i32, i32
  }
  func.func @transform_2(%arg0: i32, %arg1: i32) -> (i32, i32, i32) {
    %c0_i32 = arith.constant 0 : i32
    %c0_i32_0 = arith.constant 0 : i32
    %c0_i32_1 = arith.constant 0 : i32
    %c0_i32_2 = arith.constant 0 : i32
    return %c0_i32, %c0_i32_0, %c0_i32_1 : i32, i32, i32
  }
  func.func @transform_3(%arg0: i32, %arg1: i32) -> (i32, i32, i32, i32) {
    %c0_i32 = arith.constant 0 : i32
    %c0_i32_0 = arith.constant 0 : i32
    %c0_i32_1 = arith.constant 0 : i32
    return %arg0, %arg1, %c0_i32, %c0_i32_0 : i32, i32, i32, i32
  }
  func.func @transform_4(%arg0: i32, %arg1: i32) -> (i32, i32, i32, i32) {
    %c0_i32 = arith.constant 0 : i32
    %c0_i32_0 = arith.constant 0 : i32
    %c0_i32_1 = arith.constant 0 : i32
    return %arg0, %arg1, %c0_i32, %c0_i32_0 : i32, i32, i32, i32
  }
}

</mosaic_0001>

<bundles_post_ra>
// kernel: tile.8
= control target key start
LH: loop header
LB: loop body
LE: loop exit
PB: predicated region body
PF: predicated region fallthrough
CT: control target
= control target key end

     0   :  { %s22_s0 = inlined_call_operand.vmem [shape: f32[4], index: 0, kind: input, shape index: {}]   ;;  %s23_s1 = inlined_call_operand.vmem [shape: f32[2,4], index: 1, kind: output, shape index: {}]  }
   0x1   :  { %v4_v0 = vld [vmem:[%s22_s0] ss:$0 sm:$0xff] }
   0x2   :  { %5 = vst [vmem:[%s23_s1] sm:$0x3] %v4_v0 }

// kernel: tile.9
= control target key start
LH: loop header
LB: loop body
LE: loop exit
PB: predicated region body
PF: predicated region fallthrough
CT: control target
= control target key end

     0   :  { %vm7_vm0 = vcmask 31744   ;;  %vm13_vm1 = vcmask 64544   ;;  %s39_s0 = inlined_call_operand.vmem [shape: f32[2,4], index: 0, kind: input, shape index: {}]   ;;  %s40_s1 = inlined_call_operand.vmem [shape: f32[1,8], index: 1, kind: output, shape index: {}]  }
   0x1   :  { %v4_v0 = vld [vmem:[%s39_s0] sm:$0x3]  ;;  %s22_s0 = smov 4  }
   0x2   :  { %5 = vst [vmem:[#allocation1] sm:$0x3] %v4_v0 }
   0x9   :  { %v10_v1 = vld [vmem:[#allocation1 + $0x1] sm:$0x1]   ;;  %v6_v2 = vld [vmem:[#allocation1] sm:$0x1]  }
   0xa   :  { %11 = vrot.lane.b32.xlu0 %v10_v1, %s22_s0  ;;  %8 = vst.msk [vmem:[#allocation0] sm:$0x1] %vm7_vm0, %v6_v2  }
  0x7c   :  { %v12_v3 = vpop.permute.xlu0 %11  }
  0x7d   :  { %14 = vst.msk [vmem:[#allocation0] sm:$0x1] %vm13_vm1, %v12_v3  }
  0x84   :  { %v18_v4 = vld [vmem:[#allocation0] sm:$0x1] }
  0x85   :  { %20 = vst [vmem:[%s40_s1] sm:$0x1] %v18_v4 }

// kernel: up_forward.4
= control target key start
LH: loop header
LB: loop body
LE: loop exit
PB: predicated region body
PF: predicated region fallthrough
CT: control target
= control target key end

     0   :  { %s643_s12 = smov 0   ;;  %s645_s13 = smov 0   ;;  %s734_s0 = inlined_call_operand.vmem [shape: f32[2,8,8,8], index: 0, kind: input, shape index: {}]   ;;  %s735_s1 = inlined_call_operand.vmem [shape: bf16[2,8,8], index: 1, kind: input, shape index: {}]   ;;  %s736_s2 = inlined_call_operand.vmem [shape: f32[1,8], index: 2, kind: input, shape index: {}]   ;;  %s737_s3 = inlined_call_operand.vmem [shape: bf16[2,8,2,8,8], index: 3, kind: output, shape index: {}]  }
   0x1   :  { %s647_s14 = smov 0  }
   0x2 LB: > { %s25_s15 = sadd.s32 1, %s617_s13  ;;  %p516_p0 = scmp.ge.s32.totalorder %s621_s14, 1  ;;  %s621_s14 = sphi %s647_s14, %s13_s14   ;;  %s617_s13 = sphi %s645_s13, %s739_s13   ;;  %s613_s12 = sphi %s643_s12, %s738_s12  }
   0x3   : > { %p27_p1 = scmp.ge.s32.totalorder %s25_s15, 2  ;;  %p158_p2 = scmp.lt.s32.totalorder %s621_s14, 3 }
   0x5   : > { %s741_s15 = smov (%p27_p1, %s25_s15), 0  ;;  %p159_p3 = pnand %p516_p0, %p158_p2 }
   0x6   : > { %v226_v0 = vld [vmem:[%s735_s1] sm:$0xf] (!%p159_p3)  ;;  %vm246_vm0 = vcmask (!%p159_p3), 1043456   ;;  %v526_v1 = vld [vmem:[%s735_s1 + $0x4] sm:$0xf] (!%p159_p3)  ;;  %p192_p4 = scmp.lt.s32.totalorder (!%p159_p3), %s613_s12, 1 }
   0x7   : > { %162 = sbr.rel (%p159_p3) target bundleno = 249 (0xf9), region = 32  ;;  %573 = vmatprep.subr.msk.bf16.mxu0 (!%p159_p3), %vm246_vm0, %v226_v0  ;;  %574 = vmatprep.subr.msk.bf16.mxu1 (!%p159_p3), %vm246_vm0, %v526_v1  ;;  %v248_v2 = vsel (!%p159_p3), %vm246_vm0, %v226_v0, 0  ;;  %v335_v3 = vsel (!%p159_p3), %vm246_vm0, %v526_v1, 0  ;;  %vm233_vm1 = vcmask (!%p159_p3), 64512   ;;  %v521_v16 = vld [vmem:[%s736_s2] ss:$0 sm:$0xff] (!%p159_p3) }
   0x8   : > { %554 = vmatpush3.bf16.msra.mxu0 (!%p159_p3), %v248_v2  ;;  %564 = vmatpush3.bf16.msra.mxu1 (!%p159_p3), %v335_v3  ;;  %vm323_vm2 = vcmask (!%p159_p3), 60416  }
   0xe   : > { %s743_s12 = smov (!%p192_p4, %s613_s12), 1 }
   0xf   : > { %s541_s20 = sshll.u32 %s743_s12, 6 }
  0x10   : > { %s199_s23 = scalar_lea.vmem %s734_s0, %s541_s20  ;;  %s691_s28 = scalar_lea.vmem %s737_s3, %s541_s20 }
  0x11   : > { %v213_v4 = vld [vmem:[%s199_s23] sm:$0xff]  ;;  %v214_v5 = vld [vmem:[%s199_s23 + $0x8] sm:$0xff]  ;;  %v215_v6 = vld [vmem:[%s199_s23 + $0x10] sm:$0xff] }
  0x12   : > { %v221_v7 = vpack.c.bf16 %v214_v5, %v213_v4  ;;  %v216_v8 = vld [vmem:[%s199_s23 + $0x18] sm:$0xff]  ;;  %v217_v9 = vld [vmem:[%s199_s23 + $0x20] sm:$0xff]  ;;  %v218_v10 = vld [vmem:[%s199_s23 + $0x28] sm:$0xff] }
  0x13   : > { %v222_v11 = vpack.c.bf16 %v216_v8, %v215_v6  ;;  %v223_v12 = vpack.c.bf16 %v218_v10, %v217_v9  ;;  %v219_v13 = vld [vmem:[%s199_s23 + $0x30] sm:$0xff]  ;;  %v220_v14 = vld [vmem:[%s199_s23 + $0x38] sm:$0xff] }
  0x14   : > { %555 = vmatprep.mubr.msk.bf16.mxu0 %vm233_vm1, %v221_v7  ;;  %565 = vmatprep.mubr.msk.bf16.mxu1 %vm233_vm1, %v221_v7  ;;  %v224_v15 = vpack.c.bf16 %v220_v14, %v219_v13 }
  0x15   : > { %556 = vmatmul.mubr.msk.bf16.vlgmr.msra.gmra.mrb[0].mxu0 %vm233_vm1, %v222_v11  ;;  %566 = vmatmul.mubr.msk.bf16.vlgmr.msra.gmra.mrb[0].mxu1 %vm233_vm1, %v222_v11 }
  0x16   : > { %559 = vmatprep.mubr.msk.bf16.mxu0 %vm233_vm1, %v223_v12  ;;  %569 = vmatprep.mubr.msk.bf16.mxu1 %vm233_vm1, %v223_v12 }
  0x1d   : > { %560 = vmatmul.mubr.msk.bf16.gmra.mrb[4].mxu0 %vm233_vm1, %v224_v15  ;;  %570 = vmatmul.mubr.msk.bf16.gmra.mrb[4].mxu1 %vm233_vm1, %v224_v15 }
  0xe8   : > { %v557_v17 = vpop.f32.mrb[0].mxu0  ;;  %v567_v18 = vpop.f32.mrb[0].mxu1 }
  0xe9   : > { %v293_v19 = vadd.f32 %v557_v17, %v521_v16  ;;  %v380_v20 = vadd.f32 %v567_v18, %v521_v16  ;;  %v284_v21 = vpop.f32.mrb[1].mxu0  ;;  %v371_v22 = vpop.f32.mrb[1].mxu1 }
  0xea   : > { %v285_v23 = vadd.f32 %v521_v16, %v284_v21  ;;  %v372_v24 = vadd.f32 %v521_v16, %v371_v22  ;;  %v558_v25 = vpop.f32.mrb[2].mxu0  ;;  %v568_v26 = vpop.f32.mrb[2].mxu1 }
  0xeb   : > { %v317_v27 = vpack.c.bf16 %v293_v19, %v293_v19  ;;  %v404_v28 = vpack.c.bf16 %v380_v20, %v380_v20  ;;  %v296_v29 = vadd.f32 %v558_v25, %v521_v16  ;;  %v383_v30 = vadd.f32 %v568_v26, %v521_v16  ;;  %v287_v31 = vpop.f32.mrb[3].mxu0  ;;  %v374_v32 = vpop.f32.mrb[3].mxu1 }
  0xec   : > { %v315_v33 = vpack.c.bf16 %v285_v23, %v285_v23  ;;  %v402_v34 = vpack.c.bf16 %v372_v24, %v372_v24  ;;  %v288_v35 = vadd.f32 %v521_v16, %v287_v31  ;;  %v375_v36 = vadd.f32 %v521_v16, %v374_v32 }
  0xed   : > { %326 = vst.msk [vmem:[%s691_s28 + $0x10] sm:$0xf] %vm323_vm2, %v317_v27  ;;  %533 = vst.msk [vmem:[%s691_s28 + $0x14] sm:$0xf] %vm323_vm2, %v404_v28  ;;  %v318_v37 = vpack.c.bf16 %v296_v29, %v296_v29  ;;  %v405_v38 = vpack.c.bf16 %v383_v30, %v383_v30 }
  0xee   : > { %324 = vst.msk [vmem:[%s691_s28] sm:$0xf] %vm323_vm2, %v315_v33  ;;  %531 = vst.msk [vmem:[%s691_s28 + $0x4] sm:$0xf] %vm323_vm2, %v402_v34  ;;  %v316_v39 = vpack.c.bf16 %v288_v35, %v288_v35  ;;  %v403_v40 = vpack.c.bf16 %v375_v36, %v375_v36 }
  0xef   : > { %327 = vst.msk [vmem:[%s691_s28 + $0x18] sm:$0xf] %vm323_vm2, %v318_v37  ;;  %534 = vst.msk [vmem:[%s691_s28 + $0x1c] sm:$0xf] %vm323_vm2, %v405_v38 }
  0xf0   : > { %325 = vst.msk [vmem:[%s691_s28 + $0x8] sm:$0xf] %vm323_vm2, %v316_v39  ;;  %532 = vst.msk [vmem:[%s691_s28 + $0xc] sm:$0xf] %vm323_vm2, %v403_v40  ;;  %v561_v41 = vpop.f32.mrb[4].mxu0  ;;  %v571_v42 = vpop.f32.mrb[4].mxu1 }
  0xf1   : > { %v309_v43 = vadd.f32 %v561_v41, %v521_v16  ;;  %v396_v44 = vadd.f32 %v571_v42, %v521_v16  ;;  %v300_v45 = vpop.f32.mrb[5].mxu0  ;;  %v387_v46 = vpop.f32.mrb[5].mxu1 }
  0xf2   : > { %v301_v47 = vadd.f32 %v521_v16, %v300_v45  ;;  %v388_v48 = vadd.f32 %v521_v16, %v387_v46  ;;  %v562_v49 = vpop.f32.mrb[6].mxu0  ;;  %v572_v50 = vpop.f32.mrb[6].mxu1 }
  0xf3   : > { %v321_v51 = vpack.c.bf16 %v309_v43, %v309_v43  ;;  %v408_v52 = vpack.c.bf16 %v396_v44, %v396_v44  ;;  %v312_v53 = vadd.f32 %v562_v49, %v521_v16  ;;  %v399_v54 = vadd.f32 %v572_v50, %v521_v16  ;;  %v303_v55 = vpop.f32.mrb[7].mxu0  ;;  %v390_v56 = vpop.f32.mrb[7].mxu1 }
  0xf4   : > { %v319_v57 = vpack.c.bf16 %v301_v47, %v301_v47  ;;  %v406_v58 = vpack.c.bf16 %v388_v48, %v388_v48  ;;  %v304_v59 = vadd.f32 %v521_v16, %v303_v55  ;;  %v391_v60 = vadd.f32 %v521_v16, %v390_v56 }
  0xf5   : > { %330 = vst.msk [vmem:[%s691_s28 + $0x30] sm:$0xf] %vm323_vm2, %v321_v51  ;;  %537 = vst.msk [vmem:[%s691_s28 + $0x34] sm:$0xf] %vm323_vm2, %v408_v52  ;;  %v322_v61 = vpack.c.bf16 %v312_v53, %v312_v53  ;;  %v409_v62 = vpack.c.bf16 %v399_v54, %v399_v54 }
  0xf6   : > { %328 = vst.msk [vmem:[%s691_s28 + $0x20] sm:$0xf] %vm323_vm2, %v319_v57  ;;  %535 = vst.msk [vmem:[%s691_s28 + $0x24] sm:$0xf] %vm323_vm2, %v406_v58  ;;  %v320_v63 = vpack.c.bf16 %v304_v59, %v304_v59  ;;  %v407_v0 = vpack.c.bf16 %v391_v60, %v391_v60 }
  0xf7   : > { %331 = vst.msk [vmem:[%s691_s28 + $0x38] sm:$0xf] %vm323_vm2, %v322_v61  ;;  %538 = vst.msk [vmem:[%s691_s28 + $0x3c] sm:$0xf] %vm323_vm2, %v409_v62 }
  0xf8   : > { %329 = vst.msk [vmem:[%s691_s28 + $0x28] sm:$0xf] %vm323_vm2, %v320_v63  ;;  %536 = vst.msk [vmem:[%s691_s28 + $0x2c] sm:$0xf] %vm323_vm2, %v407_v0 }
  0xf9 PF: > { %s13_s14 = sadd.s32 1, %s621_s14   ;;  %s738_s12 = smov %s617_s13 }
  0xfa   : > { %p10_p5 = scmp.ge.s32.totalorder %s13_s14, 4   ;;  %s739_s13 = smov %s741_s15 }
  0xfc   :  { %12 = sbr.rel (!%p10_p5) target bundleno = 2 (0x2), region = 64 }

// kernel: up_forward.7
= control target key start
LH: loop header
LB: loop body
LE: loop exit
PB: predicated region body
PF: predicated region fallthrough
CT: control target
= control target key end

     0   :  { %s671_s9 = smov 0   ;;  %s673_s10 = smov 0   ;;  %s864_s0 = inlined_call_operand.vmem [shape: bf16[2,16,16,4], index: 0, kind: input, shape index: {}]   ;;  %s865_s1 = inlined_call_operand.vmem [shape: f32[2,2,4], index: 1, kind: input, shape index: {}]   ;;  %s866_s2 = inlined_call_operand.vmem [shape: f32[2,16,16,4], index: 2, kind: output, shape index: {}]  }
   0x1   :  { %s675_s11 = smov 0  }
   0x2 LB: > { %s24_s12 = sadd.s32 1, %s650_s10  ;;  %p519_p0 = scmp.ge.s32.totalorder %s654_s11, 1  ;;  %s654_s11 = sphi %s675_s11, %s12_s11   ;;  %s650_s10 = sphi %s673_s10, %s868_s10   ;;  %s646_s9 = sphi %s671_s9, %s867_s9  }
   0x3   : > { %p26_p1 = scmp.ge.s32.totalorder %s24_s12, 2  ;;  %p143_p2 = scmp.lt.s32.totalorder %s654_s11, 3 }
   0x5   : > { %s870_s12 = smov (%p26_p1, %s24_s12), 0  ;;  %p144_p3 = pnand %p519_p0, %p143_p2 }
   0x6   : > { %p180_p4 = scmp.lt.s32.totalorder (!%p144_p3), %s646_s9, 1  ;;  %v270_v0 = vlaneseq (!%p144_p3)  ;;  %vm374_vm0 = vcmask (!%p144_p3), 31744  }
   0x7   : > { %147 = sbr.rel (%p144_p3) target bundleno = 54 (0x36), region = 28 }
   0x8   : > { %v271_v1 = vshrl.u32 (!%p144_p3), %v270_v0, 7 }
   0xa   : > { %v272_v2 = vsub.s32 (!%p144_p3), 0, %v271_v1  ;;  %v308_v3 = vsub.s32 (!%p144_p3), 1, %v271_v1 }
   0xe   : > { %s872_s9 = smov (!%p180_p4, %s646_s9), 1 }
   0xf   : > { %s527_s13 = sshll.u32 %s872_s9, 7  ;;  %s522_s14 = sshll.u32 %s872_s9, 1 }
  0x10   : > { %s696_s17 = scalar_lea.vmem %s864_s0, %s527_s13  ;;  %s193_s20 = scalar_lea.vmem %s865_s1, %s522_s14 }
  0x11   : > { %v205_v4 = vld [vmem:[%s193_s20] sm:$0x3]  ;;  %v593_v6 = vld [vmem:[%s696_s17 + $0x8] sm:$0xff]   ;;  %v594_v11 = vld [vmem:[%s696_s17 + $0x10] sm:$0xff]   ;;  %s528_s21 = sshll.u32 %s872_s9, 8 }
  0x12   : > { %v530_v5 = vld [vmem:[%s696_s17] sm:$0xff]   ;;  %v703_v8 = vrot.slane %v205_v4, %v272_v2  ;;  %v705_v9 = vrot.slane %v205_v4, %v308_v3  ;;  %v595_v12 = vld [vmem:[%s696_s17 + $0x18] sm:$0xff]   ;;  %v535_v13 = vunpack.c.l.bf16 %v593_v6  ;;  %v536_v14 = vunpack.c.h.bf16 %v593_v6  ;;  %s723_s24 = scalar_lea.vmem %s866_s2, %s528_s21  ;;  %v597_v38 = vld [vmem:[%s696_s17 + $0x28] sm:$0xff]  }
  0x13   : > { %v531_v7 = vunpack.c.l.bf16 %v530_v5  ;;  %v532_v10 = vunpack.c.h.bf16 %v530_v5  ;;  %v539_v15 = vunpack.c.l.bf16 %v594_v11  ;;  %v540_v16 = vunpack.c.h.bf16 %v594_v11  ;;  %v596_v33 = vld [vmem:[%s696_s17 + $0x20] sm:$0xff]   ;;  %v598_v39 = vld [vmem:[%s696_s17 + $0x30] sm:$0xff]   ;;  %v599_v44 = vld [vmem:[%s696_s17 + $0x38] sm:$0xff]  }
  0x14   : > { %v543_v19 = vunpack.c.l.bf16 %v595_v12  ;;  %v544_v20 = vunpack.c.h.bf16 %v595_v12  ;;  %v276_v21 = vsub.f32 %v535_v13, %v703_v8  ;;  %v277_v22 = vsub.f32 %v536_v14, %v703_v8  ;;  %v600_v5 = vld [vmem:[%s696_s17 + $0x40] sm:$0xff]   ;;  %v601_v12 = vld [vmem:[%s696_s17 + $0x48] sm:$0xff]   ;;  %v602_v13 = vld [vmem:[%s696_s17 + $0x50] sm:$0xff]  }
  0x15   : > { %v274_v17 = vsub.f32 %v531_v7, %v703_v8  ;;  %v275_v18 = vsub.f32 %v532_v10, %v703_v8  ;;  %v278_v23 = vsub.f32 %v539_v15, %v703_v8  ;;  %v279_v24 = vsub.f32 %v540_v16, %v703_v8 }
  0x16   : > { %v280_v27 = vsub.f32 %v543_v19, %v703_v8  ;;  %v281_v28 = vsub.f32 %v544_v20, %v703_v8  ;;  %v312_v29 = vmul.f32 %v705_v9, %v276_v21  ;;  %v313_v30 = vmul.f32 %v705_v9, %v277_v22 }
  0x17   : > { %v310_v25 = vmul.f32 %v705_v9, %v274_v17  ;;  %v311_v26 = vmul.f32 %v705_v9, %v275_v18  ;;  %v314_v31 = vmul.f32 %v705_v9, %v278_v23  ;;  %v315_v32 = vmul.f32 %v705_v9, %v279_v24  ;;  %v603_v18 = vld [vmem:[%s696_s17 + $0x58] sm:$0xff]  }
  0x18   : > { %v316_v36 = vmul.f32 %v705_v9, %v280_v27  ;;  %v317_v37 = vmul.f32 %v705_v9, %v281_v28  ;;  %v344_v40 = vmax.f32 %v312_v29, 0.0  ;;  %v345_v41 = vmax.f32 %v313_v30, 0.0 }
  0x19   : > { %v342_v34 = vmax.f32 %v310_v25, 0.0  ;;  %v343_v35 = vmax.f32 %v311_v26, 0.0  ;;  %v346_v42 = vmax.f32 %v314_v31, 0.0  ;;  %v347_v43 = vmax.f32 %v315_v32, 0.0 }
  0x1a   : > { %v348_v45 = vmax.f32 %v316_v36, 0.0  ;;  %v349_v46 = vmax.f32 %v317_v37, 0.0  ;;  %v547_v47 = vunpack.c.l.bf16 %v596_v33  ;;  %v548_v48 = vunpack.c.h.bf16 %v596_v33  ;;  %377 = vst.msk [vmem:[%s723_s24 + $0x10] sm:$0xff] %vm374_vm0, %v344_v40  ;;  %378 = vst.msk [vmem:[%s723_s24 + $0x18] sm:$0xff] %vm374_vm0, %v345_v41 }
  0x1b   : > { %375 = vst.msk [vmem:[%s723_s24] sm:$0xff] %vm374_vm0, %v342_v34  ;;  %376 = vst.msk [vmem:[%s723_s24 + $0x8] sm:$0xff] %vm374_vm0, %v343_v35  ;;  %v551_v49 = vunpack.c.l.bf16 %v597_v38  ;;  %v552_v50 = vunpack.c.h.bf16 %v597_v38  ;;  %v555_v51 = vunpack.c.l.bf16 %v598_v39  ;;  %v556_v52 = vunpack.c.h.bf16 %v598_v39 }
  0x1c   : > { %379 = vst.msk [vmem:[%s723_s24 + $0x20] sm:$0xff] %vm374_vm0, %v346_v42  ;;  %380 = vst.msk [vmem:[%s723_s24 + $0x28] sm:$0xff] %vm374_vm0, %v347_v43  ;;  %v282_v53 = vsub.f32 %v547_v47, %v703_v8  ;;  %v283_v54 = vsub.f32 %v548_v48, %v703_v8  ;;  %v559_v55 = vunpack.c.l.bf16 %v599_v44  ;;  %v560_v56 = vunpack.c.h.bf16 %v599_v44  ;;  %v604_v43 = vld [vmem:[%s696_s17 + $0x60] sm:$0xff]   ;;  %v605_v48 = vld [vmem:[%s696_s17 + $0x68] sm:$0xff]  }
  0x1d   : > { %381 = vst.msk [vmem:[%s723_s24 + $0x30] sm:$0xff] %vm374_vm0, %v348_v45  ;;  %382 = vst.msk [vmem:[%s723_s24 + $0x38] sm:$0xff] %vm374_vm0, %v349_v46  ;;  %v284_v57 = vsub.f32 %v551_v49, %v703_v8  ;;  %v285_v58 = vsub.f32 %v552_v50, %v703_v8  ;;  %v286_v59 = vsub.f32 %v555_v51, %v703_v8  ;;  %v563_v21 = vunpack.c.l.bf16 %v600_v5  ;;  %v606_v49 = vld [vmem:[%s696_s17 + $0x70] sm:$0xff]  }
  0x1e   : > { %v287_v60 = vsub.f32 %v556_v52, %v703_v8  ;;  %v318_v61 = vmul.f32 %v705_v9, %v282_v53  ;;  %v319_v62 = vmul.f32 %v705_v9, %v283_v54  ;;  %v288_v63 = vsub.f32 %v559_v55, %v703_v8  ;;  %v607_v54 = vld [vmem:[%s696_s17 + $0x78] sm:$0xff]  }
  0x1f   : > { %v289_v0 = vsub.f32 %v560_v56, %v703_v8  ;;  %v320_v1 = vmul.f32 %v705_v9, %v284_v57  ;;  %v321_v2 = vmul.f32 %v705_v9, %v285_v58  ;;  %v322_v3 = vmul.f32 %v705_v9, %v286_v59 }
  0x20   : > { %v323_v4 = vmul.f32 %v705_v9, %v287_v60  ;;  %v350_v6 = vmax.f32 %v318_v61, 0.0  ;;  %v351_v7 = vmax.f32 %v319_v62, 0.0  ;;  %v324_v10 = vmul.f32 %v705_v9, %v288_v63 }
  0x21   : > { %v325_v11 = vmul.f32 %v705_v9, %v289_v0  ;;  %v352_v14 = vmax.f32 %v320_v1, 0.0  ;;  %v353_v15 = vmax.f32 %v321_v2, 0.0  ;;  %v354_v16 = vmax.f32 %v322_v3, 0.0 }
  0x22   : > { %v355_v17 = vmax.f32 %v323_v4, 0.0  ;;  %383 = vst.msk [vmem:[%s723_s24 + $0x40] sm:$0xff] %vm374_vm0, %v350_v6  ;;  %384 = vst.msk [vmem:[%s723_s24 + $0x48] sm:$0xff] %vm374_vm0, %v351_v7  ;;  %v356_v19 = vmax.f32 %v324_v10, 0.0  ;;  %v564_v22 = vunpack.c.h.bf16 %v600_v5  ;;  %v567_v23 = vunpack.c.l.bf16 %v601_v12 }
  0x23   : > { %v357_v20 = vmax.f32 %v325_v11, 0.0  ;;  %385 = vst.msk [vmem:[%s723_s24 + $0x50] sm:$0xff] %vm374_vm0, %v352_v14  ;;  %386 = vst.msk [vmem:[%s723_s24 + $0x58] sm:$0xff] %vm374_vm0, %v353_v15  ;;  %v568_v24 = vunpack.c.h.bf16 %v601_v12  ;;  %v571_v25 = vunpack.c.l.bf16 %v602_v13  ;;  %v572_v26 = vunpack.c.h.bf16 %v602_v13 }
  0x24   : > { %387 = vst.msk [vmem:[%s723_s24 + $0x60] sm:$0xff] %vm374_vm0, %v354_v16  ;;  %388 = vst.msk [vmem:[%s723_s24 + $0x68] sm:$0xff] %vm374_vm0, %v355_v17  ;;  %v290_v27 = vsub.f32 %v563_v21, %v703_v8  ;;  %v291_v28 = vsub.f32 %v564_v22, %v703_v8  ;;  %v575_v29 = vunpack.c.l.bf16 %v603_v18  ;;  %v576_v30 = vunpack.c.h.bf16 %v603_v18 }
  0x25   : > { %389 = vst.msk [vmem:[%s723_s24 + $0x70] sm:$0xff] %vm374_vm0, %v356_v19  ;;  %390 = vst.msk [vmem:[%s723_s24 + $0x78] sm:$0xff] %vm374_vm0, %v357_v20  ;;  %v292_v31 = vsub.f32 %v567_v23, %v703_v8  ;;  %v293_v32 = vsub.f32 %v568_v24, %v703_v8  ;;  %v294_v33 = vsub.f32 %v571_v25, %v703_v8  ;;  %v579_v57 = vunpack.c.l.bf16 %v604_v43 }
  0x26   : > { %v295_v34 = vsub.f32 %v572_v26, %v703_v8  ;;  %v326_v35 = vmul.f32 %v705_v9, %v290_v27  ;;  %v327_v36 = vmul.f32 %v705_v9, %v291_v28  ;;  %v296_v37 = vsub.f32 %v575_v29, %v703_v8 }
  0x27   : > { %v297_v38 = vsub.f32 %v576_v30, %v703_v8  ;;  %v328_v39 = vmul.f32 %v705_v9, %v292_v31  ;;  %v329_v40 = vmul.f32 %v705_v9, %v293_v32  ;;  %v330_v41 = vmul.f32 %v705_v9, %v294_v33 }
  0x28   : > { %v331_v42 = vmul.f32 %v705_v9, %v295_v34  ;;  %v358_v44 = vmax.f32 %v326_v35, 0.0  ;;  %v359_v45 = vmax.f32 %v327_v36, 0.0  ;;  %v332_v46 = vmul.f32 %v705_v9, %v296_v37 }
  0x29   : > { %v333_v47 = vmul.f32 %v705_v9, %v297_v38  ;;  %v360_v50 = vmax.f32 %v328_v39, 0.0  ;;  %v361_v51 = vmax.f32 %v329_v40, 0.0  ;;  %v362_v52 = vmax.f32 %v330_v41, 0.0 }
  0x2a   : > { %v363_v53 = vmax.f32 %v331_v42, 0.0  ;;  %391 = vst.msk [vmem:[%s723_s24 + $0x80] sm:$0xff] %vm374_vm0, %v358_v44  ;;  %392 = vst.msk [vmem:[%s723_s24 + $0x88] sm:$0xff] %vm374_vm0, %v359_v45  ;;  %v364_v55 = vmax.f32 %v332_v46, 0.0  ;;  %v580_v58 = vunpack.c.h.bf16 %v604_v43  ;;  %v583_v59 = vunpack.c.l.bf16 %v605_v48 }
  0x2b   : > { %v365_v56 = vmax.f32 %v333_v47, 0.0  ;;  %393 = vst.msk [vmem:[%s723_s24 + $0x90] sm:$0xff] %vm374_vm0, %v360_v50  ;;  %394 = vst.msk [vmem:[%s723_s24 + $0x98] sm:$0xff] %vm374_vm0, %v361_v51  ;;  %v584_v60 = vunpack.c.h.bf16 %v605_v48  ;;  %v587_v61 = vunpack.c.l.bf16 %v606_v49  ;;  %v588_v62 = vunpack.c.h.bf16 %v606_v49 }
  0x2c   : > { %395 = vst.msk [vmem:[%s723_s24 + $0xa0] sm:$0xff] %vm374_vm0, %v362_v52  ;;  %396 = vst.msk [vmem:[%s723_s24 + $0xa8] sm:$0xff] %vm374_vm0, %v363_v53  ;;  %v298_v63 = vsub.f32 %v579_v57, %v703_v8  ;;  %v299_v0 = vsub.f32 %v580_v58, %v703_v8  ;;  %v591_v1 = vunpack.c.l.bf16 %v607_v54  ;;  %v592_v2 = vunpack.c.h.bf16 %v607_v54 }
  0x2d   : > { %397 = vst.msk [vmem:[%s723_s24 + $0xb0] sm:$0xff] %vm374_vm0, %v364_v55  ;;  %398 = vst.msk [vmem:[%s723_s24 + $0xb8] sm:$0xff] %vm374_vm0, %v365_v56  ;;  %v300_v3 = vsub.f32 %v583_v59, %v703_v8  ;;  %v301_v4 = vsub.f32 %v584_v60, %v703_v8  ;;  %v302_v5 = vsub.f32 %v587_v61, %v703_v8 }
  0x2e   : > { %v303_v6 = vsub.f32 %v588_v62, %v703_v8  ;;  %v334_v7 = vmul.f32 %v705_v9, %v298_v63  ;;  %v335_v10 = vmul.f32 %v705_v9, %v299_v0  ;;  %v304_v11 = vsub.f32 %v591_v1, %v703_v8 }
  0x2f   : > { %v305_v12 = vsub.f32 %v592_v2, %v703_v8  ;;  %v336_v13 = vmul.f32 %v705_v9, %v300_v3  ;;  %v337_v14 = vmul.f32 %v705_v9, %v301_v4  ;;  %v338_v15 = vmul.f32 %v705_v9, %v302_v5 }
  0x30   : > { %v339_v16 = vmul.f32 %v705_v9, %v303_v6  ;;  %v366_v17 = vmax.f32 %v334_v7, 0.0  ;;  %v367_v18 = vmax.f32 %v335_v10, 0.0  ;;  %v340_v19 = vmul.f32 %v705_v9, %v304_v11 }
  0x31   : > { %v341_v8 = vmul.f32 %v705_v9, %v305_v12  ;;  %v368_v20 = vmax.f32 %v336_v13, 0.0  ;;  %v369_v21 = vmax.f32 %v337_v14, 0.0  ;;  %v370_v22 = vmax.f32 %v338_v15, 0.0 }
  0x32   : > { %v371_v23 = vmax.f32 %v339_v16, 0.0  ;;  %399 = vst.msk [vmem:[%s723_s24 + $0xc0] sm:$0xff] %vm374_vm0, %v366_v17  ;;  %400 = vst.msk [vmem:[%s723_s24 + $0xc8] sm:$0xff] %vm374_vm0, %v367_v18  ;;  %v372_v24 = vmax.f32 %v340_v19, 0.0 }
  0x33   : > { %v373_v25 = vmax.f32 %v341_v8, 0.0  ;;  %401 = vst.msk [vmem:[%s723_s24 + $0xd0] sm:$0xff] %vm374_vm0, %v368_v20  ;;  %402 = vst.msk [vmem:[%s723_s24 + $0xd8] sm:$0xff] %vm374_vm0, %v369_v21 }
  0x34   : > { %403 = vst.msk [vmem:[%s723_s24 + $0xe0] sm:$0xff] %vm374_vm0, %v370_v22  ;;  %404 = vst.msk [vmem:[%s723_s24 + $0xe8] sm:$0xff] %vm374_vm0, %v371_v23 }
  0x35   : > { %405 = vst.msk [vmem:[%s723_s24 + $0xf0] sm:$0xff] %vm374_vm0, %v372_v24  ;;  %406 = vst.msk [vmem:[%s723_s24 + $0xf8] sm:$0xff] %vm374_vm0, %v373_v25 }
  0x36 PF: > { %s12_s11 = sadd.s32 1, %s654_s11   ;;  %s867_s9 = smov %s650_s10 }
  0x37   : > { %p9_p5 = scmp.ge.s32.totalorder %s12_s11, 4   ;;  %s868_s10 = smov %s870_s12 }
  0x39   :  { %11 = sbr.rel (!%p9_p5) target bundleno = 2 (0x2), region = 61 }

// kernel: up_forward.6
= control target key start
LH: loop header
LB: loop body
LE: loop exit
PB: predicated region body
PF: predicated region fallthrough
CT: control target
= control target key end

     0   :  { %s2519_s15 = smov 0   ;;  %s2521_s16 = smov 0   ;;  %s3291_s0 = inlined_call_operand.vmem [shape: bf16[2,16,16,4], index: 0, kind: input, shape index: {}]   ;;  %s3292_s1 = inlined_call_operand.vmem [shape: f32[2,2,4], index: 1, kind: input, shape index: {}]   ;;  %s3293_s2 = inlined_call_operand.vmem [shape: bf16[3,12,4], index: 2, kind: input, shape index: {}]   ;;  %s3294_s3 = inlined_call_operand.vmem [shape: bf16[2,16,16,4], index: 3, kind: output, shape index: {0}]   ;;  %s3295_s4 = inlined_call_operand.vmem [shape: f32[2,1,2,4], index: 4, kind: output, shape index: {1}]  }
   0x1   :  { %s2523_s17 = smov 0  }
   0x2 LB: > { %s27_s18 = sadd.s32 1, %s2485_s16  ;;  %p2003_p0 = scmp.ge.s32.totalorder %s2489_s17, 1  ;;  %s2489_s17 = sphi %s2523_s17, %s15_s17   ;;  %s2485_s16 = sphi %s2521_s16, %s3301_s16   ;;  %s2481_s15 = sphi %s2519_s15, %s3300_s15  }
   0x3   : > { %p29_p1 = scmp.ge.s32.totalorder %s27_s18, 2  ;;  %p190_p2 = scmp.lt.s32.totalorder %s2489_s17, 3 }
   0x5   : > { %s3303_s18 = smov (%p29_p1, %s27_s18), 0  ;;  %p191_p3 = pnand %p2003_p0, %p190_p2 }
   0x6   : > { %vm712_vm0 = vcmask (!%p191_p3), 1047552   ;;  %vm713_vm1 = vsmask.f32 (!%p191_p3), 7424  ;;  %v272_v0 = vlaneseq (!%p191_p3)  ;;  %v2491_v1 = vmov (!%p191_p3), 0   ;;  %s2492_s19 = smov (!%p191_p3), 4   ;;  %p232_p4 = scmp.lt.s32.totalorder (!%p191_p3), %s2481_s15, 1 }
   0x7   : > { %194 = sbr.rel (%p191_p3) target bundleno = 483 (0x1e3), region = 32  ;;  %751 = vrot.lane.b32.xlu0 (!%p191_p3), %v2491_v1, %s2492_s19  ;;  %v658_v2 = vrot.slane (!%p191_p3), %v2491_v1, 1  ;;  %vm2540_vm2 = vmand (!%p191_p3), %vm712_vm0, %vm713_vm1  ;;  %s2493_s20 = smov (!%p191_p3), 8   ;;  %v2569_v8 = vld [vmem:[%s3293_s2 + $0x8] sm:$0x3f] (!%p191_p3)   ;;  %vm976_vm3 = vcmask (!%p191_p3), 1045504  }
   0x8   : > { %v273_v4 = vshrl.u32 (!%p191_p3), %v272_v0, 7  ;;  %v2574_v9 = vld [vmem:[%s3293_s2] sm:$0x3f] (!%p191_p3)   ;;  %2433 = vmatprep.subr.msk.bf16.mxu1 (!%p191_p3), %vm976_vm3, %v2569_v8  ;;  %vm637_vm4 = vcmask (!%p191_p3), 1040384   ;;  %vm638_vm5 = vsmask.f32 (!%p191_p3), 256 }
   0x9   : > { %v2546_v5 = vsel (!%p191_p3), %vm2540_vm2, %v658_v2, 0  ;;  %2434 = vmatprep.subr.msk.bf16.mxu0 (!%p191_p3), %vm976_vm3, %v2574_v9  ;;  %vm2968_vm6 = vmand (!%p191_p3), %vm637_vm4, %vm638_vm5  ;;  %vm841_vm7 = vcmask (!%p191_p3), 31744   ;;  %vm896_vm8 = vcmask (!%p191_p3), 64512   ;;  %vm943_vm9 = vcmask (!%p191_p3), 97280  }
   0xa   : > { %805 = vrot.lane.b32.xlu1 (!%p191_p3), %v2546_v5, %s2493_s20  ;;  %v274_v6 = vsub.s32 (!%p191_p3), 0, %v273_v4  ;;  %v280_v7 = vsub.s32 (!%p191_p3), 1, %v273_v4  ;;  %vm1646_vm10 = vcmask (!%p191_p3), 27648   ;;  %vm1851_vm11 = vcmask (!%p191_p3), 25600  }
   0xe   : > { %s3305_s15 = smov (!%p232_p4, %s2481_s15), 1 }
   0xf   : > { %s2101_s21 = sshll.u32 %s3305_s15, 7  ;;  %s2006_s22 = sshll.u32 %s3305_s15, 1 }
  0x10   : > { %s2559_s25 = scalar_lea.vmem %s3291_s0, %s2101_s21  ;;  %s240_s28 = scalar_lea.vmem %s3292_s1, %s2006_s22 }
  0x11   : > { %v260_v10 = vld [vmem:[%s240_s28] sm:$0x3]  ;;  %v2199_v11 = vld [vmem:[%s2559_s25 + $0x8] sm:$0xff]   ;;  %v2201_v17 = vld [vmem:[%s2559_s25 + $0x18] sm:$0xff]   ;;  %s3138_s11 = scalar_lea.vmem %s3294_s3, %s2101_s21  ;;  %s258_s14 = scalar_lea.vmem %s3295_s4, %s2006_s22 }
  0x12   : > { %v2136_v12 = vld [vmem:[%s2559_s25] sm:$0xff]   ;;  %v2578_v13 = vrot.slane %v260_v10, %v274_v6  ;;  %v2580_v14 = vrot.slane %v260_v10, %v280_v7  ;;  %v2141_v15 = vunpack.c.l.bf16 %v2199_v11  ;;  %v2142_v16 = vunpack.c.h.bf16 %v2199_v11  ;;  %v2200_v18 = vld [vmem:[%s2559_s25 + $0x10] sm:$0xff]   ;;  %v2203_v39 = vld [vmem:[%s2559_s25 + $0x28] sm:$0xff]  }
  0x13   : > { %v2137_v19 = vunpack.c.l.bf16 %v2136_v12  ;;  %v2138_v20 = vunpack.c.h.bf16 %v2136_v12  ;;  %v2149_v21 = vunpack.c.l.bf16 %v2201_v17  ;;  %v2150_v22 = vunpack.c.h.bf16 %v2201_v17  ;;  %v2202_v55 = vld [vmem:[%s2559_s25 + $0x20] sm:$0xff]  }
  0x14   : > { %v356_v23 = vsub.f32 %v2141_v15, %v2578_v13  ;;  %v357_v24 = vsub.f32 %v2142_v16, %v2578_v13  ;;  %v2145_v25 = vunpack.c.l.bf16 %v2200_v18  ;;  %v2146_v26 = vunpack.c.h.bf16 %v2200_v18 }
  0x15   : > { %v354_v27 = vsub.f32 %v2137_v19, %v2578_v13  ;;  %v355_v28 = vsub.f32 %v2138_v20, %v2578_v13  ;;  %v360_v29 = vsub.f32 %v2149_v21, %v2578_v13  ;;  %v361_v30 = vsub.f32 %v2150_v22, %v2578_v13  ;;  %v2205_v20 = vld [vmem:[%s2559_s25 + $0x38] sm:$0xff]  }
  0x16   : > { %v388_v31 = vmul.f32 %v356_v23, %v2580_v14  ;;  %v389_v32 = vmul.f32 %v357_v24, %v2580_v14  ;;  %v358_v33 = vsub.f32 %v2145_v25, %v2578_v13  ;;  %v359_v34 = vsub.f32 %v2146_v26, %v2578_v13  ;;  %v2204_v25 = vld [vmem:[%s2559_s25 + $0x30] sm:$0xff]  }
  0x17   : > { %v386_v35 = vmul.f32 %v354_v27, %v2580_v14  ;;  %v387_v36 = vmul.f32 %v355_v28, %v2580_v14  ;;  %v392_v37 = vmul.f32 %v360_v29, %v2580_v14  ;;  %v393_v38 = vmul.f32 %v361_v30, %v2580_v14  ;;  %v2207_v30 = vld [vmem:[%s2559_s25 + $0x48] sm:$0xff]  }
  0x18   : > { %v420_v40 = vmax.f32 %v388_v31, 0.0  ;;  %v421_v41 = vmax.f32 %v389_v32, 0.0  ;;  %v390_v42 = vmul.f32 %v358_v33, %v2580_v14  ;;  %v391_v43 = vmul.f32 %v359_v34, %v2580_v14 }
  0x19   : > { %v418_v44 = vmax.f32 %v386_v35, 0.0  ;;  %v419_v45 = vmax.f32 %v387_v36, 0.0  ;;  %v424_v46 = vmax.f32 %v392_v37, 0.0  ;;  %v425_v47 = vmax.f32 %v393_v38, 0.0 }
  0x1a   : > { %v2605_v48 = vpack.c.bf16 %v421_v41, %v420_v40  ;;  %v422_v49 = vmax.f32 %v390_v42, 0.0  ;;  %v423_v50 = vmax.f32 %v391_v43, 0.0  ;;  %v2157_v51 = vunpack.c.l.bf16 %v2203_v39 }
  0x1b   : > { %v2607_v52 = vpack.c.bf16 %v419_v45, %v418_v44  ;;  %v2609_v53 = vpack.c.bf16 %v425_v47, %v424_v46  ;;  %v2158_v54 = vunpack.c.h.bf16 %v2203_v39  ;;  %v2153_v6 = vunpack.c.l.bf16 %v2202_v55 }
  0x1c   : > { %755 = vrot.lane.b32.xlu1 %v2605_v48, %s2492_s19  ;;  %v508_v56 = vshrl.u32 %v2605_v48, 16  ;;  %v511_v57 = vshll.u32 %v2605_v48, 16  ;;  %v2616_v58 = vpack.c.bf16 %v423_v50, %v422_v49  ;;  %v364_v59 = vsub.f32 %v2157_v51, %v2578_v13 }
  0x1d   : > { %753 = vrot.lane.b32.xlu0 %v2607_v52, %s2492_s19  ;;  %v501_v60 = vshrl.u32 %v2607_v52, 16  ;;  %v504_v61 = vshll.u32 %v2607_v52, 16  ;;  %v522_v62 = vshrl.u32 %v2609_v53, 16  ;;  %v525_v63 = vshll.u32 %v2609_v53, 16 }
  0x1e   : > { %v662_v0 = vrot.slane %v511_v57, 1  ;;  %v515_v2 = vshrl.u32 %v2616_v58, 16  ;;  %v518_v4 = vshll.u32 %v2616_v58, 16  ;;  %v365_v15 = vsub.f32 %v2158_v54, %v2578_v13 }
  0x1f   : > { %v660_v7 = vrot.slane %v504_v61, 1  ;;  %v666_v10 = vrot.slane %v525_v63, 1  ;;  %v396_v18 = vmul.f32 %v364_v59, %v2580_v14  ;;  %v2154_v19 = vunpack.c.h.bf16 %v2202_v55 }
  0x20   : > { %v663_v11 = vor.u32 %v662_v0, %v508_v56  ;;  %v664_v12 = vrot.slane %v518_v4, 1  ;;  %v397_v23 = vmul.f32 %v365_v15, %v2580_v14  ;;  %v362_v24 = vsub.f32 %v2153_v6, %v2578_v13 }
  0x21   : > { %v661_v16 = vor.u32 %v660_v7, %v501_v60  ;;  %v667_v17 = vor.u32 %v666_v10, %v522_v62  ;;  %v428_v28 = vmax.f32 %v396_v18, 0.0  ;;  %v363_v29 = vsub.f32 %v2154_v19, %v2578_v13 }
  0x22   : > { %v717_v21 = vsel %vm2540_vm2, %v663_v11, 0  ;;  %v665_v22 = vor.u32 %v664_v12, %v515_v2  ;;  %v429_v32 = vmax.f32 %v397_v23, 0.0  ;;  %v394_v33 = vmul.f32 %v362_v24, %v2580_v14  ;;  %v2206_v11 = vld [vmem:[%s2559_s25 + $0x40] sm:$0xff]  }
  0x23   : > { %809 = vrot.lane.b32.xlu1 %v717_v21, %s2493_s20  ;;  %v716_v26 = vsel %vm2540_vm2, %v661_v16, 0  ;;  %v719_v27 = vsel %vm2540_vm2, %v667_v17, 0  ;;  %v2165_v34 = vunpack.c.l.bf16 %v2205_v20  ;;  %v395_v35 = vmul.f32 %v363_v29, %v2580_v14 }
  0x24   : > { %807 = vrot.lane.b32.xlu0 %v716_v26, %s2493_s20  ;;  %v718_v31 = vsel %vm2540_vm2, %v665_v22, 0  ;;  %v2166_v36 = vunpack.c.h.bf16 %v2205_v20  ;;  %v2161_v37 = vunpack.c.l.bf16 %v2204_v25  ;;  %v2162_v38 = vunpack.c.h.bf16 %v2204_v25 }
  0x25   : > { %v2663_v39 = vpack.c.bf16 %v429_v32, %v428_v28  ;;  %v426_v40 = vmax.f32 %v394_v33, 0.0  ;;  %v368_v41 = vsub.f32 %v2165_v34, %v2578_v13  ;;  %v2173_v42 = vunpack.c.l.bf16 %v2207_v30 }
  0x26   : > { %v427_v43 = vmax.f32 %v395_v35, 0.0  ;;  %v369_v44 = vsub.f32 %v2166_v36, %v2578_v13  ;;  %v366_v45 = vsub.f32 %v2161_v37, %v2578_v13  ;;  %v367_v46 = vsub.f32 %v2162_v38, %v2578_v13  ;;  %v2209_v37 = vld [vmem:[%s2559_s25 + $0x58] sm:$0xff]  }
  0x27   : > { %759 = vrot.lane.b32.xlu1 %v2609_v53, %s2492_s19  ;;  %v536_v47 = vshrl.u32 %v2663_v39, 16  ;;  %v539_v49 = vshll.u32 %v2663_v39, 16  ;;  %v400_v50 = vmul.f32 %v368_v41, %v2580_v14  ;;  %v2174_v51 = vunpack.c.h.bf16 %v2207_v30 }
  0x28   : > { %757 = vrot.lane.b32.xlu0 %v2616_v58, %s2492_s19  ;;  %v2676_v54 = vpack.c.bf16 %v427_v43, %v426_v40  ;;  %v401_v55 = vmul.f32 %v369_v44, %v2580_v14  ;;  %v398_v59 = vmul.f32 %v366_v45, %v2580_v14  ;;  %v399_v0 = vmul.f32 %v367_v46, %v2580_v14 }
  0x29   : > { %v670_v6 = vrot.slane %v539_v49, 1  ;;  %v432_v7 = vmax.f32 %v400_v50, 0.0  ;;  %v372_v10 = vsub.f32 %v2173_v42, %v2578_v13  ;;  %v373_v20 = vsub.f32 %v2174_v51, %v2578_v13 }
  0x2a   : > { %v529_v12 = vshrl.u32 %v2676_v54, 16  ;;  %v532_v15 = vshll.u32 %v2676_v54, 16  ;;  %v433_v16 = vmax.f32 %v401_v55, 0.0  ;;  %v430_v17 = vmax.f32 %v398_v59, 0.0  ;;  %v2208_v59 = vld [vmem:[%s2559_s25 + $0x50] sm:$0xff]  }
  0x2b   : > { %813 = vrot.lane.b32.xlu1 %v719_v27, %s2493_s20  ;;  %v671_v18 = vor.u32 %v670_v6, %v536_v47  ;;  %v431_v19 = vmax.f32 %v399_v0, 0.0  ;;  %v404_v21 = vmul.f32 %v372_v10, %v2580_v14  ;;  %v2169_v24 = vunpack.c.l.bf16 %v2206_v11 }
  0x2c   : > { %811 = vrot.lane.b32.xlu0 %v718_v31, %s2493_s20  ;;  %v668_v22 = vrot.slane %v532_v15, 1  ;;  %v2695_v23 = vpack.c.bf16 %v433_v16, %v432_v7  ;;  %v405_v27 = vmul.f32 %v373_v20, %v2580_v14  ;;  %v2170_v32 = vunpack.c.h.bf16 %v2206_v11 }
  0x2d   : > { %v721_v25 = vsel %vm2540_vm2, %v671_v18, 0  ;;  %v2699_v26 = vpack.c.bf16 %v431_v19, %v430_v17  ;;  %v436_v28 = vmax.f32 %v404_v21, 0.0  ;;  %v370_v36 = vsub.f32 %v2169_v24, %v2578_v13  ;;  %v2211_v18 = vld [vmem:[%s2559_s25 + $0x68] sm:$0xff]  }
  0x2e   : > { %v669_v29 = vor.u32 %v668_v22, %v529_v12  ;;  %v550_v30 = vshrl.u32 %v2695_v23, 16  ;;  %v553_v31 = vshll.u32 %v2695_v23, 16  ;;  %v437_v35 = vmax.f32 %v405_v27, 0.0 }
  0x2f   : > { %763 = vrot.lane.b32.xlu1 %v2663_v39, %s2492_s19  ;;  %v543_v33 = vshrl.u32 %v2699_v26, 16  ;;  %v546_v34 = vshll.u32 %v2699_v26, 16  ;;  %v2716_v38 = vrot.slane %v508_v56, 7  ;;  %v371_v42 = vsub.f32 %v2170_v32, %v2578_v13 }
  0x30   : > { %761 = vrot.lane.b32.xlu0 %v2676_v54, %s2492_s19  ;;  %v720_v40 = vsel %vm2540_vm2, %v669_v29, 0  ;;  %v674_v41 = vrot.slane %v553_v31, 1  ;;  %v2725_v43 = vrot.slane %v501_v60, 7  ;;  %v2729_v45 = vpack.c.bf16 %v437_v35, %v436_v28 }
  0x31   : > { %v672_v44 = vrot.slane %v546_v34, 1  ;;  %v402_v56 = vmul.f32 %v370_v36, %v2580_v14  ;;  %v403_v50 = vmul.f32 %v371_v42, %v2580_v14  ;;  %v2181_v51 = vunpack.c.l.bf16 %v2209_v37 }
  0x32   : > { %v675_v46 = vor.u32 %v674_v41, %v550_v30  ;;  %v2182_v55 = vunpack.c.h.bf16 %v2209_v37  ;;  %v2739_v60 = vrot.slane %v522_v62, 7  ;;  %v567_v7 = vshll.u32 %v2729_v45, 16  ;;  %v2210_v41 = vld [vmem:[%s2559_s25 + $0x60] sm:$0xff]  }
  0x33   : > { %817 = vrot.lane.b32.xlu1 %v721_v25, %s2493_s20  ;;  %v673_v0 = vor.u32 %v672_v44, %v543_v33  ;;  %v434_v6 = vmax.f32 %v402_v56, 0.0  ;;  %v2747_v10 = vrot.slane %v515_v2, 7  ;;  %v435_v11 = vmax.f32 %v403_v50, 0.0 }
  0x34   : > { %815 = vrot.lane.b32.xlu0 %v720_v40, %s2493_s20  ;;  %v376_v16 = vsub.f32 %v2181_v51, %v2578_v13  ;;  %v377_v17 = vsub.f32 %v2182_v55, %v2578_v13  ;;  %v723_v62 = vsel %vm2540_vm2, %v675_v46, 0  ;;  %v564_v19 = vshrl.u32 %v2729_v45, 16 }
  0x35   : > { %v678_v20 = vrot.slane %v567_v7, 1  ;;  %v2177_v21 = vunpack.c.l.bf16 %v2208_v59  ;;  %v2759_v2 = vpack.c.bf16 %v435_v11, %v434_v6  ;;  %v2178_v25 = vunpack.c.h.bf16 %v2208_v59 }
  0x36   : > { %v408_v22 = vmul.f32 %v376_v16, %v2580_v14  ;;  %v409_v24 = vmul.f32 %v377_v17, %v2580_v14  ;;  %v722_v27 = vsel %vm2540_vm2, %v673_v0, 0  ;;  %v2189_v29 = vunpack.c.l.bf16 %v2211_v18 }
  0x37   : > { %767 = vrot.lane.b32.xlu1 %v2695_v23, %s2492_s19  ;;  %v374_v28 = vsub.f32 %v2177_v21, %v2578_v13  ;;  %v2190_v32 = vunpack.c.h.bf16 %v2211_v18  ;;  %v557_v35 = vshrl.u32 %v2759_v2, 16  ;;  %v560_v36 = vshll.u32 %v2759_v2, 16 }
  0x38   : > { %765 = vrot.lane.b32.xlu0 %v2699_v26, %s2492_s19  ;;  %v440_v37 = vmax.f32 %v408_v22, 0.0  ;;  %v441_v40 = vmax.f32 %v409_v24, 0.0  ;;  %v2773_v42 = vrot.slane %v536_v47, 7  ;;  %v375_v44 = vsub.f32 %v2178_v25, %v2578_v13 }
  0x39   : > { %v406_v56 = vmul.f32 %v374_v28, %v2580_v14  ;;  %v380_v46 = vsub.f32 %v2189_v29, %v2578_v13  ;;  %v679_v50 = vor.u32 %v678_v20, %v564_v19  ;;  %v676_v51 = vrot.slane %v560_v36, 1  ;;  %v2213_v20 = vld [vmem:[%s2559_s25 + $0x78] sm:$0xff]  }
  0x3a   : > { %v2783_v55 = vpack.c.bf16 %v441_v40, %v440_v37  ;;  %v381_v47 = vsub.f32 %v2190_v32, %v2578_v13  ;;  %v407_v59 = vmul.f32 %v375_v44, %v2580_v14  ;;  %v2185_v11 = vunpack.c.l.bf16 %v2210_v41 }
  0x3b   : > { %821 = vrot.lane.b32.xlu1 %v723_v62, %s2493_s20  ;;  %v438_v0 = vmax.f32 %v406_v56, 0.0  ;;  %v412_v6 = vmul.f32 %v380_v46, %v2580_v14  ;;  %v2791_v16 = vrot.slane %v529_v12, 7  ;;  %v677_v17 = vor.u32 %v676_v51, %v557_v35 }
  0x3c   : > { %819 = vrot.lane.b32.xlu0 %v722_v27, %s2493_s20  ;;  %v581_v18 = vshll.u32 %v2783_v55, 16  ;;  %v413_v62 = vmul.f32 %v381_v47, %v2580_v14  ;;  %v439_v21 = vmax.f32 %v407_v59, 0.0  ;;  %v2186_v24 = vunpack.c.h.bf16 %v2210_v41  ;;  %v2212_v27 = vld [vmem:[%s2559_s25 + $0x70] sm:$0xff]  }
  0x3d   : > { %v444_v22 = vmax.f32 %v412_v6, 0.0  ;;  %v378_v25 = vsub.f32 %v2185_v11, %v2578_v13  ;;  %v725_v12 = vsel %vm2540_vm2, %v679_v50, 0  ;;  %v578_v28 = vshrl.u32 %v2783_v55, 16 }
  0x3e   : > { %v682_v29 = vrot.slane %v581_v18, 1  ;;  %v445_v32 = vmax.f32 %v413_v62, 0.0  ;;  %v2809_v37 = vpack.c.bf16 %v439_v21, %v438_v0  ;;  %v379_v40 = vsub.f32 %v2186_v24, %v2578_v13 }
  0x3f   : > { %771 = vrot.lane.b32.xlu1 %v2729_v45, %s2492_s19  ;;  %v410_v41 = vmul.f32 %v378_v25, %v2580_v14  ;;  %v2197_v44 = vunpack.c.l.bf16 %v2213_v20  ;;  %v724_v56 = vsel %vm2540_vm2, %v677_v17, 0  ;;  %v2198_v50 = vunpack.c.h.bf16 %v2213_v20 }
  0x40   : > { %769 = vrot.lane.b32.xlu0 %v2759_v2, %s2492_s19  ;;  %v2815_v46 = vpack.c.bf16 %v445_v32, %v444_v22  ;;  %v2193_v51 = vunpack.c.l.bf16 %v2212_v27  ;;  %v571_v47 = vshrl.u32 %v2809_v37, 16  ;;  %v574_v59 = vshll.u32 %v2809_v37, 16 }
  0x41   : > { %v411_v6 = vmul.f32 %v379_v40, %v2580_v14  ;;  %v442_v0 = vmax.f32 %v410_v41, 0.0  ;;  %v2822_v11 = vrot.slane %v550_v30, 7  ;;  %v2826_v62 = vrot.slane %v543_v33, 7 }
  0x42   : > { %v595_v17 = vshll.u32 %v2815_v46, 16  ;;  %v384_v20 = vsub.f32 %v2197_v44, %v2578_v13  ;;  %v683_v21 = vor.u32 %v682_v29, %v578_v28  ;;  %v680_v22 = vrot.slane %v574_v59, 1 }
  0x43   : > { %825 = vrot.lane.b32.xlu1 %v725_v12, %s2493_s20  ;;  %v443_v24 = vmax.f32 %v411_v6, 0.0  ;;  %v385_v30 = vsub.f32 %v2198_v50, %v2578_v13  ;;  %v592_v25 = vshrl.u32 %v2815_v46, 16  ;;  %v2194_v32 = vunpack.c.h.bf16 %v2212_v27 }
  0x44   : > { %823 = vrot.lane.b32.xlu0 %v724_v56, %s2493_s20  ;;  %v686_v33 = vrot.slane %v595_v17, 1  ;;  %v416_v12 = vmul.f32 %v384_v20, %v2580_v14  ;;  %v681_v40 = vor.u32 %v680_v22, %v571_v47  ;;  %v382_v29 = vsub.f32 %v2193_v51, %v2578_v13 }
  0x45   : > { %v2839_v41 = vpack.c.bf16 %v443_v24, %v442_v0  ;;  %v417_v44 = vmul.f32 %v385_v30, %v2580_v14  ;;  %v566_v56 = vrot.slane %v564_v19, 7  ;;  %v383_v6 = vsub.f32 %v2194_v32, %v2578_v13 }
  0x46   : > { %v448_v50 = vmax.f32 %v416_v12, 0.0  ;;  %v2851_v27 = vor.u32 %v511_v57, %v2716_v38  ;;  %v727_v51 = vsel %vm2540_vm2, %v683_v21, 0  ;;  %v559_v22 = vrot.slane %v557_v35, 7  ;;  %v2466_v38 = vld [vmem:[%s3293_s2 + $0x10] sm:$0x3f]  }
  0x47   : > { %775 = vrot.lane.b32.xlu1 %v2783_v55, %s2492_s19  ;;  %v585_v0 = vshrl.u32 %v2839_v41, 16  ;;  %v588_v19 = vshll.u32 %v2839_v41, 16  ;;  %v449_v20 = vmax.f32 %v417_v44, 0.0  ;;  %v726_v13 = vsel %vm2540_vm2, %v681_v40, 0 }
  0x48   : > { %773 = vrot.lane.b32.xlu0 %v2809_v37, %s2492_s19  ;;  %v414_v48 = vmul.f32 %v382_v29, %v2580_v14  ;;  %v415_v57 = vmul.f32 %v383_v6, %v2580_v14  ;;  %v687_v21 = vor.u32 %v686_v33, %v592_v25  ;;  %v2871_v12 = vor.u32 %v504_v61, %v2725_v43 }
  0x49   : > { %v684_v24 = vrot.slane %v588_v19, 1  ;;  %v465_v30 = vpack.c.bf16 %v449_v20, %v448_v50  ;;  %v978_v40 = vsel %vm976_vm3, %v2569_v8, 0  ;;  %v2878_v14 = vsel %vm976_vm3, %v2574_v9, 0 }
  0x4a   : > { %v446_v35 = vmax.f32 %v414_v48, 0.0  ;;  %v447_v32 = vmax.f32 %v415_v57, 0.0  ;;  %v580_v44 = vrot.slane %v578_v28, 7  ;;  %v573_v33 = vrot.slane %v571_v47, 7  ;;  %2266 = vmatpush3.bf16.msra.mxu1 %v978_v40  ;;  %2300 = vmatpush3.bf16.msra.mxu0 %v2878_v14 }
  0x4b   : > { %829 = vrot.lane.b32.xlu1 %v727_v51, %s2493_s20  ;;  %v685_v29 = vor.u32 %v684_v24, %v585_v0  ;;  %v609_v50 = vshll.u32 %v465_v30, 16  ;;  %2435 = vmatprep.subr.msk.bf16.mxu1 %vm976_vm3, %v2574_v9  ;;  %v2885_v61 = vsel %vm976_vm3, %v2466_v38, 0  ;;  %v2890_v8 = vor.u32 %v525_v63, %v2739_v60 }
  0x4c   : > { %827 = vrot.lane.b32.xlu0 %v726_v13, %s2493_s20  ;;  %v464_v52 = vpack.c.bf16 %v447_v32, %v446_v35  ;;  %v2895_v43 = vor.u32 %v518_v4, %v2747_v10  ;;  %v594_v28 = vrot.slane %v592_v25, 7  ;;  %v729_v47 = vsel %vm2540_vm2, %v687_v21, 0  ;;  %2436 = vmatprep.subr.msk.bf16.mxu0 %vm976_vm3, %v2466_v38 }
  0x4d   : > { %v606_v6 = vshrl.u32 %v465_v30, 16  ;;  %v2903_v9 = vor.u32 %v539_v49, %v2773_v42  ;;  %v587_v53 = vrot.slane %v585_v0, 7  ;;  %v728_v58 = vsel %vm2540_vm2, %v685_v29, 0 }
  0x4e   : > { %v599_v63 = vshrl.u32 %v464_v52, 16  ;;  %v602_v4 = vshll.u32 %v464_v52, 16  ;;  %v690_v10 = vrot.slane %v609_v50, 1  ;;  %v2914_v39 = vor.u32 %v532_v15, %v2791_v16 }
  0x4f   : > { %779 = vrot.lane.b32.xlu1 %v2815_v46, %s2492_s19  ;;  %v608_v60 = vrot.slane %v606_v6, 7  ;;  %v2919_v49 = vor.u32 %v553_v31, %v2822_v11  ;;  %v2924_v51 = vor.u32 %v546_v34, %v2826_v62  ;;  %v2932_v54 = vor.u32 %v560_v36, %v559_v22 }
  0x50   : > { %777 = vrot.lane.b32.xlu0 %v2839_v41, %s2492_s19  ;;  %v601_v42 = vrot.slane %v599_v63, 7  ;;  %v688_v25 = vrot.slane %v602_v4, 1  ;;  %v2928_v41 = vor.u32 %v567_v7, %v566_v56  ;;  %v2937_v15 = vor.u32 %v581_v18, %v580_v44 }
  0x51   : > { %v691_v23 = vor.u32 %v690_v10, %v606_v6  ;;  %v2942_v26 = vor.u32 %v574_v59, %v573_v33  ;;  %v2946_v31 = vor.u32 %v595_v17, %v594_v28  ;;  %v2948_v34 = vor.u32 %v588_v19, %v587_v53 }
  0x52   : > { %v689_v45 = vor.u32 %v688_v25, %v599_v63  ;;  %v2950_v7 = vor.u32 %v609_v50, %v608_v60  ;;  %v2952_v2 = vor.u32 %v602_v4, %v601_v42  ;;  %v496_v16 = vrot.slane %v2491_v1, 7 }
  0x53   : > { %833 = vrot.lane.b32.xlu1 %v729_v47, %s2493_s20  ;;  %v731_v36 = vsel %vm2540_vm2, %v691_v23, 0  ;;  %v642_v62 = vsel %vm2968_vm6, 0, %v2851_v27  ;;  %v641_v17 = vsel %vm2968_vm6, 0, %v2871_v12  ;;  %v644_v48 = vsel %vm2968_vm6, 0, %v2890_v8 }
  0x54   : > { %831 = vrot.lane.b32.xlu0 %v728_v58, %s2493_s20  ;;  %v730_v55 = vsel %vm2540_vm2, %v689_v45, 0  ;;  %v2974_v3 = vsel %vm2968_vm6, 0, %v496_v16  ;;  %v643_v38 = vsel %vm2968_vm6, 0, %v2895_v43  ;;  %v645_v33 = vsel %vm2968_vm6, 0, %v2914_v39 }
  0x55   : > { %v648_v47 = vsel %vm2968_vm6, 0, %v2919_v49  ;;  %v650_v49 = vsel %vm2968_vm6, 0, %v2928_v41  ;;  %v649_v25 = vsel %vm2968_vm6, 0, %v2932_v54  ;;  %v652_v54 = vsel %vm2968_vm6, 0, %v2937_v15 }
  0x57   : > { %783 = vrot.lane.b32.xlu1 %v465_v30, %s2492_s19 }
  0x58   : > { %781 = vrot.lane.b32.xlu0 %v464_v52, %s2492_s19 }
  0x5b   : > { %837 = vrot.lane.b32.xlu1 %v731_v36, %s2493_s20 }
  0x5c   : > { %835 = vrot.lane.b32.xlu0 %v730_v55, %s2493_s20 }
  0x5f   : > { %839 = vrot.lane.b32.xlu1 %v2546_v5, %s2493_s20 }
  0x60   : > { %785 = vrot.lane.b32.xlu0 %v2491_v1, %s2492_s19 }
  0x79   : > { %v752_v37 = vpop.permute.xlu0 %751 }
  0x7a   : > { %v844_v5 = vsel %vm841_vm7, %v2974_v3, %v752_v37 }
  0x7c   : > { %v806_v46 = vpop.permute.xlu1 %805 }
  0x7d   : > { %v898_v59 = vsel %vm896_vm8, %v844_v5, %v806_v46  ;;  %v651_v5 = vsel %vm2968_vm6, 0, %v2942_v26  ;;  %v654_v26 = vsel %vm2968_vm6, 0, %v2946_v31 }
  0x7e   : > { %2301 = vmatprep.mubr.msk.bf16.mxu0 %vm943_vm9, %v898_v59 }
  0x8e   : > { %v756_v1 = vpop.permute.xlu1 %755 }
  0x8f   : > { %v754_v11 = vpop.permute.xlu0 %753  ;;  %v850_v56 = vsel %vm841_vm7, %v642_v62, %v756_v1 }
  0x90   : > { %v847_v19 = vsel %vm841_vm7, %v641_v17, %v754_v11 }
  0x95   : > { %v810_v0 = vpop.permute.xlu1 %809 }
  0x96   : > { %v902_v20 = vsel %vm896_vm8, %v850_v56, %v810_v0  ;;  %v808_v22 = vpop.permute.xlu0 %807  ;;  %v653_v0 = vsel %vm2968_vm6, 0, %v2948_v34  ;;  %v656_v34 = vsel %vm2968_vm6, 0, %v2950_v7 }
  0x97   : > { %v900_v13 = vsel %vm896_vm8, %v847_v19, %v808_v22 }
  0x98   : > { %2267 = vmatprep.mubr.msk.bf16.mxu1 %vm943_vm9, %v900_v13  ;;  %2302 = vmatmul.mubr.msk.bf16.vlgmr.msra.gmra.mrb[0].mxu0 %vm943_vm9, %v900_v13 }
  0x99   : > { %2268 = vmatmul.mubr.msk.bf16.vlgmr.msra.gmra.mrb[0].mxu1 %vm943_vm9, %v902_v20  ;;  %2305 = vmatprep.mubr.msk.bf16.mxu0 %vm943_vm9, %v902_v20  ;;  %v760_v27 = vpop.permute.xlu1 %759 }
  0x9a   : > { %2368 = vmatpush3.bf16.msra.mxu1 %v2878_v14  ;;  %2334 = vmatpush3.bf16.msra.mxu0 %v2885_v61  ;;  %v758_v57 = vpop.permute.xlu0 %757  ;;  %v856_v21 = vsel %vm841_vm7, %v644_v48, %v760_v27  ;;  %v646_v14 = vsel %vm2968_vm6, 0, %v2903_v9  ;;  %v647_v9 = vsel %vm2968_vm6, 0, %v2924_v51 }
  0x9b   : > { %v853_v30 = vsel %vm841_vm7, %v643_v38, %v758_v57  ;;  %v655_v38 = vsel %vm2968_vm6, 0, %v2952_v2 }
  0x9d   : > { %v814_v24 = vpop.permute.xlu1 %813 }
  0x9e   : > { %v906_v12 = vsel %vm896_vm8, %v856_v21, %v814_v24  ;;  %v812_v35 = vpop.permute.xlu0 %811 }
  0x9f   : > { %v904_v32 = vsel %vm896_vm8, %v853_v30, %v812_v35 }
  0xa0   : > { %2271 = vmatprep.mubr.msk.bf16.mxu1 %vm943_vm9, %v904_v32  ;;  %2306 = vmatmul.mubr.msk.bf16.gmra.mrb[4].mxu0 %vm943_vm9, %v904_v32 }
  0xa1   : > { %2272 = vmatmul.mubr.msk.bf16.gmra.mrb[4].mxu1 %vm943_vm9, %v906_v12  ;;  %2309 = vmatprep.mubr.msk.bf16.mxu0 %vm943_vm9, %v906_v12  ;;  %v764_v40 = vpop.permute.xlu1 %763 }
  0xa2   : > { %v762_v44 = vpop.permute.xlu0 %761  ;;  %v862_v29 = vsel %vm841_vm7, %v646_v14, %v764_v40 }
  0xa3   : > { %v859_v52 = vsel %vm841_vm7, %v645_v33, %v762_v44 }
  0xa5   : > { %v818_v50 = vpop.permute.xlu1 %817 }
  0xa6   : > { %v910_v61 = vsel %vm896_vm8, %v862_v29, %v818_v50  ;;  %v816_v8 = vpop.permute.xlu0 %815 }
  0xa7   : > { %v908_v43 = vsel %vm896_vm8, %v859_v52, %v816_v8 }
  0xa8   : > { %2275 = vmatprep.mubr.msk.bf16.mxu1 %vm943_vm9, %v908_v43  ;;  %2310 = vmatmul.mubr.msk.bf16.gmra.mrb[8].mxu0 %vm943_vm9, %v908_v43 }
  0xa9   : > { %2276 = vmatmul.mubr.msk.bf16.gmra.mrb[8].mxu1 %vm943_vm9, %v910_v61  ;;  %2313 = vmatprep.mubr.msk.bf16.mxu0 %vm943_vm9, %v910_v61  ;;  %v768_v28 = vpop.permute.xlu1 %767 }
  0xaa   : > { %v766_v6 = vpop.permute.xlu0 %765  ;;  %v868_v53 = vsel %vm841_vm7, %v648_v47, %v768_v28 }
  0xab   : > { %v865_v63 = vsel %vm841_vm7, %v647_v9, %v766_v6 }
  0xad   : > { %v822_v58 = vpop.permute.xlu1 %821 }
  0xae   : > { %v3033_v4 = vsel %vm896_vm8, %v868_v53, %v822_v58  ;;  %v820_v60 = vpop.permute.xlu0 %819 }
  0xaf   : > { %v912_v10 = vsel %vm896_vm8, %v865_v63, %v820_v60 }
  0xb0   : > { %2279 = vmatprep.mubr.msk.bf16.mxu1 %vm943_vm9, %v912_v10  ;;  %2314 = vmatmul.mubr.msk.bf16.gmra.mrb[12].mxu0 %vm943_vm9, %v912_v10 }
  0xb1   : > { %2280 = vmatmul.mubr.msk.bf16.gmra.mrb[12].mxu1 %vm943_vm9, %v3033_v4  ;;  %2335 = vmatprep.mubr.msk.bf16.mxu0 %vm943_vm9, %v902_v20  ;;  %v772_v39 = vpop.permute.xlu1 %771 }
  0xb2   : > { %v770_v42 = vpop.permute.xlu0 %769  ;;  %v874_v51 = vsel %vm841_vm7, %v650_v49, %v772_v39 }
  0xb3   : > { %v871_v45 = vsel %vm841_vm7, %v649_v25, %v770_v42 }
  0xb5   : > { %v826_v23 = vpop.permute.xlu1 %825 }
  0xb6   : > { %v918_v36 = vsel %vm896_vm8, %v874_v51, %v826_v23  ;;  %v824_v55 = vpop.permute.xlu0 %823 }
  0xb7   : > { %v916_v16 = vsel %vm896_vm8, %v871_v45, %v824_v55 }
  0xb8   : > { %2283 = vmatprep.mubr.msk.bf16.mxu1 %vm943_vm9, %v916_v16  ;;  %2336 = vmatmul.mubr.msk.bf16.vlgmr.msra.gmra.mrb[0].mxu0 %vm943_vm9, %v904_v32 }
  0xb9   : > { %2284 = vmatmul.mubr.msk.bf16.gmra.mrb[16].mxu1 %vm943_vm9, %v918_v36  ;;  %2339 = vmatprep.mubr.msk.bf16.mxu0 %vm943_vm9, %v906_v12  ;;  %v776_v41 = vpop.permute.xlu1 %775 }
  0xba   : > { %v774_v37 = vpop.permute.xlu0 %773  ;;  %v880_v46 = vsel %vm841_vm7, %v652_v54, %v776_v41 }
  0xbb   : > { %v877_v1 = vsel %vm841_vm7, %v651_v5, %v774_v37 }
  0xbd   : > { %v830_v59 = vpop.permute.xlu1 %829 }
  0xbe   : > { %v922_v11 = vsel %vm896_vm8, %v880_v46, %v830_v59  ;;  %v828_v62 = vpop.permute.xlu0 %827 }
  0xbf   : > { %v920_v17 = vsel %vm896_vm8, %v877_v1, %v828_v62 }
  0xc0   : > { %2287 = vmatprep.mubr.msk.bf16.mxu1 %vm943_vm9, %v920_v17  ;;  %2340 = vmatmul.mubr.msk.bf16.gmra.mrb[4].mxu0 %vm943_vm9, %v908_v43 }
  0xc1   : > { %2288 = vmatmul.mubr.msk.bf16.gmra.mrb[20].mxu1 %vm943_vm9, %v922_v11  ;;  %2343 = vmatprep.mubr.msk.bf16.mxu0 %vm943_vm9, %v910_v61  ;;  %v780_v15 = vpop.permute.xlu1 %779 }
  0xc2   : > { %v778_v56 = vpop.permute.xlu0 %777  ;;  %v886_v19 = vsel %vm841_vm7, %v654_v26, %v780_v15 }
  0xc3   : > { %v883_v22 = vsel %vm841_vm7, %v653_v0, %v778_v56 }
  0xc5   : > { %v834_v20 = vpop.permute.xlu1 %833 }
  0xc6   : > { %v926_v13 = vsel %vm896_vm8, %v886_v19, %v834_v20  ;;  %v832_v27 = vpop.permute.xlu0 %831 }
  0xc7   : > { %v924_v48 = vsel %vm896_vm8, %v883_v22, %v832_v27 }
  0xc8   : > { %2291 = vmatprep.mubr.msk.bf16.mxu1 %vm943_vm9, %v924_v48  ;;  %2344 = vmatmul.mubr.msk.bf16.gmra.mrb[8].mxu0 %vm943_vm9, %v912_v10 }
  0xc9   : > { %2292 = vmatmul.mubr.msk.bf16.gmra.mrb[24].mxu1 %vm943_vm9, %v926_v13  ;;  %2347 = vmatprep.mubr.msk.bf16.mxu0 %vm943_vm9, %v3033_v4  ;;  %v784_v31 = vpop.permute.xlu1 %783 }
  0xca   : > { %v782_v57 = vpop.permute.xlu0 %781  ;;  %v892_v21 = vsel %vm841_vm7, %v656_v34, %v784_v31 }
  0xcb   : > { %v889_v30 = vsel %vm841_vm7, %v655_v38, %v782_v57 }
  0xcd   : > { %v838_v24 = vpop.permute.xlu1 %837 }
  0xce   : > { %v930_v12 = vsel %vm896_vm8, %v892_v21, %v838_v24  ;;  %v836_v35 = vpop.permute.xlu0 %835 }
  0xcf   : > { %v928_v32 = vsel %vm896_vm8, %v889_v30, %v836_v35 }
  0xd0   : > { %2295 = vmatprep.mubr.msk.bf16.mxu1 %vm943_vm9, %v928_v32  ;;  %2348 = vmatmul.mubr.msk.bf16.gmra.mrb[12].mxu0 %vm943_vm9, %v916_v16 }
  0xd1   : > { %2296 = vmatmul.mubr.msk.bf16.gmra.mrb[28].mxu1 %vm943_vm9, %v930_v12  ;;  %2351 = vmatprep.mubr.msk.bf16.mxu0 %vm943_vm9, %v918_v36  ;;  %v840_v18 = vpop.permute.xlu1 %839 }
  0xd2   : > { %2317 = vmatprep.mubr.msk.bf16.mxu1 %vm943_vm9, %v3033_v4  ;;  %v786_v7 = vpop.permute.xlu0 %785 }
  0xd3   : > { %v895_v2 = vsel %vm841_vm7, %v2974_v3, %v786_v7 }
  0xd4   : > { %v932_v40 = vsel %vm896_vm8, %v895_v2, %v840_v18 }
  0xd8   : > { %2352 = vmatmul.mubr.msk.bf16.gmra.mrb[16].mxu0 %vm943_vm9, %v920_v17 }
  0xd9   : > { %2318 = vmatmul.mubr.msk.bf16.vlgmr.msra.gmra.mrb[16].mxu1 %vm943_vm9, %v916_v16  ;;  %2355 = vmatprep.mubr.msk.bf16.mxu0 %vm943_vm9, %v922_v11 }
  0xda   : > { %2321 = vmatprep.mubr.msk.bf16.mxu1 %vm943_vm9, %v918_v36 }
  0xe0   : > { %2356 = vmatmul.mubr.msk.bf16.gmra.mrb[20].mxu0 %vm943_vm9, %v924_v48 }
  0xe1   : > { %2322 = vmatmul.mubr.msk.bf16.gmra.mrb[20].mxu1 %vm943_vm9, %v920_v17  ;;  %2359 = vmatprep.mubr.msk.bf16.mxu0 %vm943_vm9, %v926_v13 }
  0xe2   : > { %2325 = vmatprep.mubr.msk.bf16.mxu1 %vm943_vm9, %v922_v11 }
  0xe8   : > { %2360 = vmatmul.mubr.msk.bf16.gmra.mrb[24].mxu0 %vm943_vm9, %v928_v32 }
  0xe9   : > { %2326 = vmatmul.mubr.msk.bf16.gmra.mrb[24].mxu1 %vm943_vm9, %v924_v48  ;;  %2363 = vmatprep.mubr.msk.bf16.mxu0 %vm943_vm9, %v930_v12 }
  0xea   : > { %2329 = vmatprep.mubr.msk.bf16.mxu1 %vm943_vm9, %v926_v13 }
  0xf0   : > { %2364 = vmatmul.mubr.msk.bf16.gmra.mrb[28].mxu0 %vm943_vm9, %v932_v40 }
  0xf1   : > { %2330 = vmatmul.mubr.msk.bf16.gmra.mrb[28].mxu1 %vm943_vm9, %v928_v32 }
 0x16c   : > { %v2269_v14 = vpop.f32.mrb[0].mxu1 }
 0x16d   : > { %v1014_v44 = vpop.f32.mrb[1].mxu1 }
 0x16e   : > { %v2270_v33 = vpop.f32.mrb[2].mxu1 }
 0x16f   : > { %v1017_v29 = vpop.f32.mrb[3].mxu1 }
 0x174   : > { %v2273_v50 = vpop.f32.mrb[4].mxu1 }
 0x175   : > { %v1030_v52 = vpop.f32.mrb[5].mxu1 }
 0x176   : > { %v2274_v61 = vpop.f32.mrb[6].mxu1 }
 0x177   : > { %v1033_v8 = vpop.f32.mrb[7].mxu1 }
 0x17c   : > { %v3117_v43 = vpop.f32.mrb[8].mxu1 }
 0x17d   : > { %v3119_v28 = vpop.f32.mrb[9].mxu1 }
 0x17e   : > { %v3121_v3 = vpop.f32.mrb[10].mxu1 }
 0x17f   : > { %v3123_v47 = vpop.f32.mrb[11].mxu1 }
 0x184   : > { %v3125_v6 = vpop.f32.mrb[12].mxu1 }
 0x185   : > { %v3127_v9 = vpop.f32.mrb[13].mxu1 }
 0x186   : > { %v3129_v53 = vpop.f32.mrb[14].mxu1 }
 0x187   : > { %v3131_v58 = vpop.f32.mrb[15].mxu1 }
 0x18b   : > { %v2337_v63 = vpop.f32.mrb[0].mxu0 }
 0x18c   : > { %v2369_v4 = vadd.f32 %v2337_v63, %v2269_v14  ;;  %v1359_v60 = vpop.f32.mrb[1].mxu0 }
 0x18d   : > { %v2370_v10 = vadd.f32 %v1359_v60, %v1014_v44  ;;  %v2338_v39 = vpop.f32.mrb[2].mxu0 }
 0x18e   : > { %v2105_v49 = vpack.c.bf16 %v2369_v4, %v2369_v4  ;;  %v2371_v42 = vadd.f32 %v2338_v39, %v2270_v33  ;;  %v1362_v25 = vpop.f32.mrb[3].mxu0  ;;  %v1750_v36 = vmul.f32 %v2369_v4, %v2369_v4  ;;  %v1682_v59 = vsel %vm841_vm7, %v2369_v4, 0.0 }
 0x18f   : > { %v2103_v51 = vpack.c.bf16 %v2370_v10, %v2370_v10  ;;  %v1748_v23 = vmul.f32 %v2370_v10, %v2370_v10  ;;  %v2372_v45 = vadd.f32 %v1362_v25, %v1017_v29  ;;  %v1679_v16 = vsel %vm841_vm7, %v2370_v10, 0.0 }
 0x190   : > { %1649 = vst.msk [vmem:[%s3138_s11 + $0x8] sm:$0xf] %vm1646_vm10, %v2105_v49  ;;  %v2106_v55 = vpack.c.bf16 %v2371_v42, %v2371_v42  ;;  %v1751_v5 = vmul.f32 %v2371_v42, %v2371_v42  ;;  %v1783_v0 = vsel %vm841_vm7, %v1750_v36, 0.0  ;;  %v1684_v22 = vsel %vm841_vm7, %v2371_v42, 0.0 }
 0x191   : > { %1647 = vst.msk [vmem:[%s3138_s11] sm:$0xf] %vm1646_vm10, %v2103_v51  ;;  %v2104_v41 = vpack.c.bf16 %v2372_v45, %v2372_v45  ;;  %v1680_v54 = vsel %vm841_vm7, %v2372_v45, 0.0  ;;  %v1749_v37 = vmul.f32 %v2372_v45, %v2372_v45  ;;  %v1780_v1 = vsel %vm841_vm7, %v1748_v23, 0.0 }
 0x192   : > { %1650 = vst.msk [vmem:[%s3138_s11 + $0xc] sm:$0xf] %vm1646_vm10, %v2106_v55  ;;  %v1681_v46 = vadd.f32 %v1680_v54, %v1679_v16  ;;  %v1785_v13 = vsel %vm841_vm7, %v1751_v5, 0.0 }
 0x193   : > { %1648 = vst.msk [vmem:[%s3138_s11 + $0x4] sm:$0xf] %vm1646_vm10, %v2104_v41  ;;  %v1781_v11 = vsel %vm841_vm7, %v1749_v37, 0.0  ;;  %v2341_v62 = vpop.f32.mrb[4].mxu0 }
 0x194   : > { %v1683_v17 = vadd.f32 %v1682_v59, %v1681_v46  ;;  %v1782_v15 = vadd.f32 %v1781_v11, %v1780_v1  ;;  %v2373_v26 = vadd.f32 %v2341_v62, %v2273_v50  ;;  %v1375_v56 = vpop.f32.mrb[5].mxu0 }
 0x195   : > { %v2374_v19 = vadd.f32 %v1375_v56, %v1030_v52  ;;  %v2342_v20 = vpop.f32.mrb[6].mxu0 }
 0x196   : > { %v1784_v27 = vadd.f32 %v1783_v0, %v1782_v15  ;;  %v2109_v48 = vpack.c.bf16 %v2373_v26, %v2373_v26  ;;  %v1378_v31 = vpop.f32.mrb[7].mxu0  ;;  %v1685_v57 = vadd.f32 %v1684_v22, %v1683_v17  ;;  %v2375_v30 = vadd.f32 %v2342_v20, %v2274_v61 }
 0x197   : > { %v2107_v34 = vpack.c.bf16 %v2374_v19, %v2374_v19  ;;  %v1686_v38 = vsel %vm841_vm7, %v2374_v19, 0.0  ;;  %v1752_v21 = vmul.f32 %v2374_v19, %v2374_v19  ;;  %v2376_v12 = vadd.f32 %v1378_v31, %v1033_v8 }
 0x198   : > { %1653 = vst.msk [vmem:[%s3138_s11 + $0x18] sm:$0xf] %vm1646_vm10, %v2109_v48  ;;  %v1786_v24 = vadd.f32 %v1785_v13, %v1784_v27  ;;  %v1687_v35 = vadd.f32 %v1686_v38, %v1685_v57  ;;  %v1754_v7 = vmul.f32 %v2373_v26, %v2373_v26  ;;  %v2110_v18 = vpack.c.bf16 %v2375_v30, %v2375_v30 }
 0x199   : > { %1651 = vst.msk [vmem:[%s3138_s11 + $0x10] sm:$0xf] %vm1646_vm10, %v2107_v34  ;;  %v1787_v32 = vsel %vm841_vm7, %v1752_v21, 0.0  ;;  %v2108_v40 = vpack.c.bf16 %v2376_v12, %v2376_v12  ;;  %v1688_v14 = vsel %vm841_vm7, %v2376_v12, 0.0  ;;  %v1753_v44 = vmul.f32 %v2376_v12, %v2376_v12 }
 0x19a   : > { %v1788_v2 = vadd.f32 %v1787_v32, %v1786_v24  ;;  %1654 = vst.msk [vmem:[%s3138_s11 + $0x1c] sm:$0xf] %vm1646_vm10, %v2110_v18  ;;  %v1689_v29 = vadd.f32 %v1688_v14, %v1687_v35  ;;  %v1690_v61 = vsel %vm841_vm7, %v2373_v26, 0.0  ;;  %v1755_v8 = vmul.f32 %v2375_v30, %v2375_v30 }
 0x19b   : > { %v2345_v33 = vpop.f32.mrb[8].mxu0  ;;  %1652 = vst.msk [vmem:[%s3138_s11 + $0x14] sm:$0xf] %vm1646_vm10, %v2108_v40  ;;  %v1789_v63 = vsel %vm841_vm7, %v1753_v44, 0.0  ;;  %v1791_v10 = vsel %vm841_vm7, %v1754_v7, 0.0 }
 0x19c   : > { %v2377_v50 = vadd.f32 %v2345_v33, %v3117_v43  ;;  %v1391_v52 = vpop.f32.mrb[9].mxu0  ;;  %v1691_v39 = vadd.f32 %v1690_v61, %v1689_v29  ;;  %v1790_v49 = vadd.f32 %v1789_v63, %v1788_v2  ;;  %v1692_v43 = vsel %vm841_vm7, %v2375_v30, 0.0 }
 0x19d   : > { %v2378_v4 = vadd.f32 %v1391_v52, %v3119_v28  ;;  %v2346_v60 = vpop.f32.mrb[10].mxu0  ;;  %v1793_v41 = vsel %vm841_vm7, %v1755_v8, 0.0 }
 0x19e   : > { %v2113_v42 = vpack.c.bf16 %v2377_v50, %v2377_v50  ;;  %v1394_v25 = vpop.f32.mrb[11].mxu0  ;;  %v1792_v36 = vadd.f32 %v1791_v10, %v1790_v49  ;;  %v1693_v55 = vadd.f32 %v1692_v43, %v1691_v39  ;;  %v2379_v28 = vadd.f32 %v2346_v60, %v3121_v3 }
 0x19f   : > { %v2111_v51 = vpack.c.bf16 %v2378_v4, %v2378_v4  ;;  %v1694_v23 = vsel %vm841_vm7, %v2378_v4, 0.0  ;;  %v1756_v45 = vmul.f32 %v2378_v4, %v2378_v4  ;;  %v2380_v16 = vadd.f32 %v1394_v25, %v3123_v47 }
 0x1a0   : > { %1657 = vst.msk [vmem:[%s3138_s11 + $0x28] sm:$0xf] %vm1646_vm10, %v2113_v42  ;;  %v1758_v37 = vmul.f32 %v2377_v50, %v2377_v50  ;;  %v1695_v5 = vadd.f32 %v1694_v23, %v1693_v55  ;;  %v1794_v46 = vadd.f32 %v1793_v41, %v1792_v36  ;;  %v2114_v59 = vpack.c.bf16 %v2379_v28, %v2379_v28 }
 0x1a1   : > { %1655 = vst.msk [vmem:[%s3138_s11 + $0x20] sm:$0xf] %vm1646_vm10, %v2111_v51  ;;  %v1795_v54 = vsel %vm841_vm7, %v1756_v45, 0.0  ;;  %v2112_v1 = vpack.c.bf16 %v2380_v16, %v2380_v16  ;;  %v1696_v11 = vsel %vm841_vm7, %v2380_v16, 0.0  ;;  %v1757_v62 = vmul.f32 %v2380_v16, %v2380_v16 }
 0x1a2   : > { %v1796_v15 = vadd.f32 %v1795_v54, %v1794_v46  ;;  %1658 = vst.msk [vmem:[%s3138_s11 + $0x2c] sm:$0xf] %vm1646_vm10, %v2114_v59  ;;  %v1697_v3 = vadd.f32 %v1696_v11, %v1695_v5  ;;  %v1698_v56 = vsel %vm841_vm7, %v2377_v50, 0.0  ;;  %v1759_v0 = vmul.f32 %v2379_v28, %v2379_v28 }
 0x1a3   : > { %v2349_v17 = vpop.f32.mrb[12].mxu0  ;;  %1656 = vst.msk [vmem:[%s3138_s11 + $0x24] sm:$0xf] %vm1646_vm10, %v2112_v1  ;;  %v1797_v19 = vsel %vm841_vm7, %v1757_v62, 0.0  ;;  %v1799_v13 = vsel %vm841_vm7, %v1758_v37, 0.0 }
 0x1a4   : > { %v2381_v47 = vadd.f32 %v2349_v17, %v3125_v6  ;;  %v1407_v26 = vpop.f32.mrb[13].mxu0  ;;  %v1699_v27 = vadd.f32 %v1698_v56, %v1697_v3  ;;  %v1798_v48 = vadd.f32 %v1797_v19, %v1796_v15  ;;  %v1700_v6 = vsel %vm841_vm7, %v2379_v28, 0.0 }
 0x1a5   : > { %v2382_v20 = vadd.f32 %v1407_v26, %v3127_v9  ;;  %v2350_v22 = vpop.f32.mrb[14].mxu0  ;;  %v1801_v35 = vsel %vm841_vm7, %v1759_v0, 0.0 }
 0x1a6   : > { %v2117_v31 = vpack.c.bf16 %v2381_v47, %v2381_v47  ;;  %v1410_v34 = vpop.f32.mrb[15].mxu0  ;;  %v1800_v24 = vadd.f32 %v1799_v13, %v1798_v48  ;;  %v1701_v30 = vadd.f32 %v1700_v6, %v1699_v27  ;;  %v2383_v9 = vadd.f32 %v2350_v22, %v3129_v53 }
 0x1a7   : > { %v2115_v57 = vpack.c.bf16 %v2382_v20, %v2382_v20  ;;  %v1702_v38 = vsel %vm841_vm7, %v2382_v20, 0.0  ;;  %v1760_v21 = vmul.f32 %v2382_v20, %v2382_v20  ;;  %v2384_v12 = vadd.f32 %v1410_v34, %v3131_v58 }
 0x1a8   : > { %1661 = vst.msk [vmem:[%s3138_s11 + $0x38] sm:$0xf] %vm1646_vm10, %v2117_v31  ;;  %v1703_v7 = vadd.f32 %v1702_v38, %v1701_v30  ;;  %v1802_v2 = vadd.f32 %v1801_v35, %v1800_v24  ;;  %v2118_v18 = vpack.c.bf16 %v2383_v9, %v2383_v9  ;;  %v1762_v40 = vmul.f32 %v2381_v47, %v2381_v47 }
 0x1a9   : > { %1659 = vst.msk [vmem:[%s3138_s11 + $0x30] sm:$0xf] %vm1646_vm10, %v2115_v57  ;;  %v1803_v32 = vsel %vm841_vm7, %v1760_v21, 0.0  ;;  %v2116_v14 = vpack.c.bf16 %v2384_v12, %v2384_v12  ;;  %v1704_v44 = vsel %vm841_vm7, %v2384_v12, 0.0  ;;  %v1761_v33 = vmul.f32 %v2384_v12, %v2384_v12 }
 0x1aa   : > { %v1804_v50 = vadd.f32 %v1803_v32, %v1802_v2  ;;  %1662 = vst.msk [vmem:[%s3138_s11 + $0x3c] sm:$0xf] %vm1646_vm10, %v2118_v18  ;;  %v1705_v53 = vadd.f32 %v1704_v44, %v1703_v7  ;;  %v1706_v61 = vsel %vm841_vm7, %v2381_v47, 0.0  ;;  %v1763_v8 = vmul.f32 %v2383_v9, %v2383_v9 }
 0x1ab   : > { %v2353_v29 = vpop.f32.mrb[16].mxu0  ;;  %1660 = vst.msk [vmem:[%s3138_s11 + $0x34] sm:$0xf] %vm1646_vm10, %v2116_v14  ;;  %v1805_v63 = vsel %vm841_vm7, %v1761_v33, 0.0  ;;  %v1807_v51 = vsel %vm841_vm7, %v1762_v40, 0.0  ;;  %v1708_v23 = vsel %vm841_vm7, %v2383_v9, 0.0 }
 0x1ac   : > { %v2319_v58 = vpop.f32.mrb[16].mxu1  ;;  %v1423_v52 = vpop.f32.mrb[17].mxu0  ;;  %v1707_v39 = vadd.f32 %v1706_v61, %v1705_v53  ;;  %v1806_v49 = vadd.f32 %v1805_v63, %v1804_v50  ;;  %v1809_v37 = vsel %vm841_vm7, %v1763_v8, 0.0 }
 0x1ad   : > { %v2385_v4 = vadd.f32 %v2353_v29, %v2319_v58  ;;  %v1249_v60 = vpop.f32.mrb[17].mxu1  ;;  %v2354_v10 = vpop.f32.mrb[18].mxu0 }
 0x1ae   : > { %v2386_v42 = vadd.f32 %v1423_v52, %v1249_v60  ;;  %v2320_v25 = vpop.f32.mrb[18].mxu1  ;;  %v1426_v43 = vpop.f32.mrb[19].mxu0  ;;  %v1808_v28 = vadd.f32 %v1807_v51, %v1806_v49  ;;  %v1709_v41 = vadd.f32 %v1708_v23, %v1707_v39 }
 0x1af   : > { %v2121_v45 = vpack.c.bf16 %v2385_v4, %v2385_v4  ;;  %v2387_v36 = vadd.f32 %v2354_v10, %v2320_v25  ;;  %v1252_v55 = vpop.f32.mrb[19].mxu1  ;;  %v1766_v59 = vmul.f32 %v2385_v4, %v2385_v4  ;;  %v1714_v48 = vsel %vm841_vm7, %v2385_v4, 0.0 }
 0x1b0   : > { %v2119_v16 = vpack.c.bf16 %v2386_v42, %v2386_v42  ;;  %v1710_v54 = vsel %vm841_vm7, %v2386_v42, 0.0  ;;  %v1764_v5 = vmul.f32 %v2386_v42, %v2386_v42  ;;  %v1810_v11 = vadd.f32 %v1809_v37, %v1808_v28 }
 0x1b1   : > { %1665 = vst.msk [vmem:[%s3138_s11 + $0x48] sm:$0xf] %vm1646_vm10, %v2121_v45  ;;  %v2122_v46 = vpack.c.bf16 %v2387_v36, %v2387_v36  ;;  %v1711_v1 = vadd.f32 %v1710_v54, %v1709_v41  ;;  %v2388_v62 = vadd.f32 %v1426_v43, %v1252_v55  ;;  %v1815_v31 = vsel %vm841_vm7, %v1766_v59, 0.0 }
 0x1b2   : > { %1663 = vst.msk [vmem:[%s3138_s11 + $0x40] sm:$0xf] %vm1646_vm10, %v2119_v16  ;;  %v1811_v17 = vsel %vm841_vm7, %v1764_v5, 0.0  ;;  %v1767_v38 = vmul.f32 %v2387_v36, %v2387_v36  ;;  %v1716_v12 = vsel %vm841_vm7, %v2387_v36, 0.0 }
 0x1b3   : > { %1666 = vst.msk [vmem:[%s3138_s11 + $0x4c] sm:$0xf] %vm1646_vm10, %v2122_v46  ;;  %v2357_v15 = vpop.f32.mrb[20].mxu0  ;;  %v1812_v3 = vadd.f32 %v1811_v17, %v1810_v11  ;;  %v2120_v47 = vpack.c.bf16 %v2388_v62, %v2388_v62  ;;  %v1712_v26 = vsel %vm841_vm7, %v2388_v62, 0.0  ;;  %v1765_v20 = vmul.f32 %v2388_v62, %v2388_v62 }
 0x1b4   : > { %v2323_v56 = vpop.f32.mrb[20].mxu1  ;;  %v1439_v0 = vpop.f32.mrb[21].mxu0  ;;  %v1713_v19 = vadd.f32 %v1712_v26, %v1711_v1  ;;  %v1817_v29 = vsel %vm841_vm7, %v1767_v38, 0.0 }
 0x1b5   : > { %v2389_v22 = vadd.f32 %v2357_v15, %v2323_v56  ;;  %v1265_v13 = vpop.f32.mrb[21].mxu1  ;;  %v2358_v27 = vpop.f32.mrb[22].mxu0  ;;  %1664 = vst.msk [vmem:[%s3138_s11 + $0x44] sm:$0xf] %vm1646_vm10, %v2120_v47  ;;  %v1813_v24 = vsel %vm841_vm7, %v1765_v20, 0.0 }
 0x1b6   : > { %v2390_v34 = vadd.f32 %v1439_v0, %v1265_v13  ;;  %v2324_v6 = vpop.f32.mrb[22].mxu1  ;;  %v1442_v57 = vpop.f32.mrb[23].mxu0  ;;  %v1715_v21 = vadd.f32 %v1714_v48, %v1713_v19  ;;  %v1814_v35 = vadd.f32 %v1813_v24, %v1812_v3 }
 0x1b7   : > { %v2125_v30 = vpack.c.bf16 %v2389_v22, %v2389_v22  ;;  %v1268_v9 = vpop.f32.mrb[23].mxu1  ;;  %v2391_v40 = vadd.f32 %v2358_v27, %v2324_v6  ;;  %v1770_v33 = vmul.f32 %v2389_v22, %v2389_v22  ;;  %v1722_v43 = vsel %vm841_vm7, %v2389_v22, 0.0 }
 0x1b8   : > { %v2123_v32 = vpack.c.bf16 %v2390_v34, %v2390_v34  ;;  %v1718_v7 = vsel %vm841_vm7, %v2390_v34, 0.0  ;;  %v1717_v2 = vadd.f32 %v1716_v12, %v1715_v21  ;;  %v1768_v18 = vmul.f32 %v2390_v34, %v2390_v34 }
 0x1b9   : > { %1669 = vst.msk [vmem:[%s3138_s11 + $0x58] sm:$0xf] %vm1646_vm10, %v2125_v30  ;;  %v2392_v14 = vadd.f32 %v1442_v57, %v1268_v9  ;;  %v1816_v44 = vadd.f32 %v1815_v31, %v1814_v35  ;;  %v2126_v58 = vpack.c.bf16 %v2391_v40, %v2391_v40  ;;  %v1823_v51 = vsel %vm841_vm7, %v1770_v33, 0.0 }
 0x1ba   : > { %1667 = vst.msk [vmem:[%s3138_s11 + $0x50] sm:$0xf] %vm1646_vm10, %v2123_v32  ;;  %v1719_v50 = vadd.f32 %v1718_v7, %v1717_v2  ;;  %v1819_v53 = vsel %vm841_vm7, %v1768_v18, 0.0  ;;  %v1771_v28 = vmul.f32 %v2391_v40, %v2391_v40  ;;  %v1724_v5 = vsel %vm841_vm7, %v2391_v40, 0.0 }
 0x1bb   : > { %v2361_v52 = vpop.f32.mrb[24].mxu0  ;;  %v1818_v61 = vadd.f32 %v1817_v29, %v1816_v44  ;;  %v2124_v8 = vpack.c.bf16 %v2392_v14, %v2392_v14  ;;  %v1720_v63 = vsel %vm841_vm7, %v2392_v14, 0.0  ;;  %1670 = vst.msk [vmem:[%s3138_s11 + $0x5c] sm:$0xf] %vm1646_vm10, %v2126_v58  ;;  %v1769_v39 = vmul.f32 %v2392_v14, %v2392_v14 }
 0x1bc   : > { %v2327_v4 = vpop.f32.mrb[24].mxu1  ;;  %v1455_v60 = vpop.f32.mrb[25].mxu0  ;;  %v1721_v10 = vadd.f32 %v1720_v63, %v1719_v50  ;;  %v1825_v26 = vsel %vm841_vm7, %v1771_v28, 0.0 }
 0x1bd   : > { %v2393_v49 = vadd.f32 %v2361_v52, %v2327_v4  ;;  %v1281_v42 = vpop.f32.mrb[25].mxu1  ;;  %v2362_v25 = vpop.f32.mrb[26].mxu0  ;;  %v1820_v23 = vadd.f32 %v1819_v53, %v1818_v61  ;;  %1668 = vst.msk [vmem:[%s3138_s11 + $0x54] sm:$0xf] %vm1646_vm10, %v2124_v8  ;;  %v1821_v41 = vsel %vm841_vm7, %v1769_v39, 0.0 }
 0x1be   : > { %v2394_v45 = vadd.f32 %v1455_v60, %v1281_v42  ;;  %v2328_v36 = vpop.f32.mrb[26].mxu1  ;;  %v1458_v55 = vpop.f32.mrb[27].mxu0  ;;  %v1723_v16 = vadd.f32 %v1722_v43, %v1721_v10 }
 0x1bf   : > { %v2129_v54 = vpack.c.bf16 %v2393_v49, %v2393_v49  ;;  %v1284_v37 = vpop.f32.mrb[27].mxu1  ;;  %v1822_v46 = vadd.f32 %v1821_v41, %v1820_v23  ;;  %v2395_v17 = vadd.f32 %v2362_v25, %v2328_v36  ;;  %v1774_v47 = vmul.f32 %v2393_v49, %v2393_v49 }
 0x1c0   : > { %v2127_v59 = vpack.c.bf16 %v2394_v45, %v2394_v45  ;;  %v1726_v1 = vsel %vm841_vm7, %v2394_v45, 0.0  ;;  %v1725_v11 = vadd.f32 %v1724_v5, %v1723_v16  ;;  %v1772_v62 = vmul.f32 %v2394_v45, %v2394_v45 }
 0x1c1   : > { %1673 = vst.msk [vmem:[%s3138_s11 + $0x68] sm:$0xf] %vm1646_vm10, %v2129_v54  ;;  %v2396_v15 = vadd.f32 %v1458_v55, %v1284_v37  ;;  %v1824_v3 = vadd.f32 %v1823_v51, %v1822_v46  ;;  %v2130_v19 = vpack.c.bf16 %v2395_v17, %v2395_v17  ;;  %v1730_v24 = vsel %vm841_vm7, %v2393_v49, 0.0 }
 0x1c2   : > { %1671 = vst.msk [vmem:[%s3138_s11 + $0x60] sm:$0xf] %vm1646_vm10, %v2127_v59  ;;  %v1727_v56 = vadd.f32 %v1726_v1, %v1725_v11  ;;  %v1827_v0 = vsel %vm841_vm7, %v1772_v62, 0.0  ;;  %v1831_v30 = vsel %vm841_vm7, %v1774_v47, 0.0  ;;  %v1775_v7 = vmul.f32 %v2395_v17, %v2395_v17 }
 0x1c3   : > { %v2365_v20 = vpop.f32.mrb[28].mxu0  ;;  %v1826_v22 = vadd.f32 %v1825_v26, %v1824_v3  ;;  %v2128_v13 = vpack.c.bf16 %v2396_v15, %v2396_v15  ;;  %v1728_v27 = vsel %vm841_vm7, %v2396_v15, 0.0  ;;  %1674 = vst.msk [vmem:[%s3138_s11 + $0x6c] sm:$0xf] %vm1646_vm10, %v2130_v19  ;;  %v1773_v6 = vmul.f32 %v2396_v15, %v2396_v15 }
 0x1c4   : > { %v2331_v48 = vpop.f32.mrb[28].mxu1  ;;  %v1471_v31 = vpop.f32.mrb[29].mxu0  ;;  %v1729_v34 = vadd.f32 %v1728_v27, %v1727_v56  ;;  %v1732_v44 = vsel %vm841_vm7, %v2395_v17, 0.0  ;;  %v1833_v63 = vsel %vm841_vm7, %v1775_v7, 0.0 }
 0x1c5   : > { %v2397_v57 = vadd.f32 %v2365_v20, %v2331_v48  ;;  %v1297_v38 = vpop.f32.mrb[29].mxu1  ;;  %v2366_v21 = vpop.f32.mrb[30].mxu0  ;;  %v1828_v9 = vadd.f32 %v1827_v0, %v1826_v22  ;;  %1672 = vst.msk [vmem:[%s3138_s11 + $0x64] sm:$0xf] %vm1646_vm10, %v2128_v13  ;;  %v1829_v18 = vsel %vm841_vm7, %v1773_v6, 0.0 }
 0x1c6   : > { %v2398_v12 = vadd.f32 %v1471_v31, %v1297_v38  ;;  %v2332_v35 = vpop.f32.mrb[30].mxu1  ;;  %v1474_v32 = vpop.f32.mrb[31].mxu0  ;;  %v1731_v2 = vadd.f32 %v1730_v24, %v1729_v34 }
 0x1c7   : > { %v2133_v40 = vpack.c.bf16 %v2397_v57, %v2397_v57  ;;  %v1300_v14 = vpop.f32.mrb[31].mxu1  ;;  %v1830_v33 = vadd.f32 %v1829_v18, %v1828_v9  ;;  %v2399_v52 = vadd.f32 %v2366_v21, %v2332_v35  ;;  %v1778_v25 = vmul.f32 %v2397_v57, %v2397_v57 }
 0x1c8   : > { %v2131_v29 = vpack.c.bf16 %v2398_v12, %v2398_v12  ;;  %v1734_v50 = vsel %vm841_vm7, %v2398_v12, 0.0  ;;  %v1733_v53 = vadd.f32 %v1732_v44, %v1731_v2  ;;  %v1776_v58 = vmul.f32 %v2398_v12, %v2398_v12 }
 0x1c9   : > { %1677 = vst.msk [vmem:[%s3138_s11 + $0x78] sm:$0xf] %vm1646_vm10, %v2133_v40  ;;  %v2400_v61 = vadd.f32 %v1474_v32, %v1300_v14  ;;  %v1832_v8 = vadd.f32 %v1831_v30, %v1830_v33  ;;  %v2134_v10 = vpack.c.bf16 %v2399_v52, %v2399_v52  ;;  %v1738_v23 = vsel %vm841_vm7, %v2397_v57, 0.0 }
 0x1ca   : > { %1675 = vst.msk [vmem:[%s3138_s11 + $0x70] sm:$0xf] %vm1646_vm10, %v2131_v29  ;;  %v1735_v4 = vadd.f32 %v1734_v50, %v1733_v53  ;;  %v1835_v60 = vsel %vm841_vm7, %v1776_v58, 0.0  ;;  %v1779_v36 = vmul.f32 %v2399_v52, %v2399_v52  ;;  %v1740_v16 = vsel %vm841_vm7, %v2399_v52, 0.0 }
 0x1cb   : > { %v1834_v39 = vadd.f32 %v1833_v63, %v1832_v8  ;;  %v2132_v49 = vpack.c.bf16 %v2400_v61, %v2400_v61  ;;  %v1736_v42 = vsel %vm841_vm7, %v2400_v61, 0.0  ;;  %1678 = vst.msk [vmem:[%s3138_s11 + $0x7c] sm:$0xf] %vm1646_vm10, %v2134_v10  ;;  %v1777_v51 = vmul.f32 %v2400_v61, %v2400_v61 }
 0x1cc   : > { %v1737_v43 = vadd.f32 %v1736_v42, %v1735_v4  ;;  %v1839_v54 = vsel %vm841_vm7, %v1778_v25, 0.0  ;;  %v1841_v46 = vsel %vm841_vm7, %v1779_v36, 0.0 }
 0x1cd   : > { %v1836_v45 = vadd.f32 %v1835_v60, %v1834_v39  ;;  %1676 = vst.msk [vmem:[%s3138_s11 + $0x74] sm:$0xf] %vm1646_vm10, %v2132_v49  ;;  %v1837_v28 = vsel %vm841_vm7, %v1777_v51, 0.0 }
 0x1ce   : > { %v1739_v55 = vadd.f32 %v1738_v23, %v1737_v43 }
 0x1cf   : > { %v1838_v41 = vadd.f32 %v1837_v28, %v1836_v45 }
 0x1d0   : > { %v1741_v37 = vadd.f32 %v1740_v16, %v1739_v55 }
 0x1d1   : > { %v1840_v5 = vadd.f32 %v1839_v54, %v1838_v41 }
 0x1d2   : > { %v1742_v59 = vrot.slane %v1741_v37, 4 }
 0x1d3   : > { %v1842_v1 = vadd.f32 %v1841_v46, %v1840_v5 }
 0x1d4   : > { %v1743_v11 = vadd.f32 %v1742_v59, %v1741_v37 }
 0x1d5   : > { %v1843_v62 = vrot.slane %v1842_v1, 4 }
 0x1d6   : > { %v1744_v17 = vrot.slane %v1743_v11, 2 }
 0x1d7   : > { %v1844_v15 = vadd.f32 %v1843_v62, %v1842_v1 }
 0x1d8   : > { %v1745_v3 = vadd.f32 %v1744_v17, %v1743_v11 }
 0x1d9   : > { %v1845_v47 = vrot.slane %v1844_v15, 2 }
 0x1da   : > { %v1746_v26 = vrot.slane %v1745_v3, 1 }
 0x1db   : > { %v1846_v56 = vadd.f32 %v1845_v47, %v1844_v15 }
 0x1dc   : > { %v1747_v19 = vadd.f32 %v1746_v26, %v1745_v3 }
 0x1dd   : > { %v1847_v0 = vrot.slane %v1846_v56, 1 }
 0x1df   : > { %v1848_v20 = vadd.f32 %v1847_v0, %v1846_v56 }
 0x1e1   : > { %v1850_v22 = vsel %vm637_vm4, %v1747_v19, %v1848_v20 }
 0x1e2   : > { %1852 = vst.msk [vmem:[%s258_s14] sm:$0x3] %vm1851_vm11, %v1850_v22 }
 0x1e3 PF: > { %s15_s17 = sadd.s32 1, %s2489_s17   ;;  %s3300_s15 = smov %s2485_s16 }
 0x1e4   : > { %p12_p5 = scmp.ge.s32.totalorder %s15_s17, 4   ;;  %s3301_s16 = smov %s3303_s18 }
 0x1e6   :  { %14 = sbr.rel (!%p12_p5) target bundleno = 2 (0x2), region = 82 }

// kernel: up_forward.5
= control target key start
LH: loop header
LB: loop body
LE: loop exit
PB: predicated region body
PF: predicated region fallthrough
CT: control target
= control target key end

     0   :  { %s3848_s18 = smov 0   ;;  %s3850_s19 = smov 0   ;;  %s5311_s0 = inlined_call_operand.vmem [shape: f32[2,16,16,4], index: 0, kind: input, shape index: {}]   ;;  %s5312_s1 = inlined_call_operand.vmem [shape: bf16[2,16,16,4], index: 1, kind: input, shape index: {}]   ;;  %s5313_s2 = inlined_call_operand.vmem [shape: bf16[3,12,4], index: 2, kind: input, shape index: {}]   ;;  %s5314_s3 = inlined_call_operand.vmem [shape: bf16[3,12,4], index: 3, kind: input, shape index: {}]   ;;  %s5315_s4 = inlined_call_operand.vmem [shape: bf16[2,16,16,4], index: 4, kind: output, shape index: {0}]   ;;  %s5316_s5 = inlined_call_operand.vmem [shape: f32[2,1,2,4], index: 5, kind: output, shape index: {1}]  }
   0x1   :  { %s3852_s20 = smov 0  }
   0x2 LB: > { %s28_s21 = sadd.s32 1, %s3809_s19  ;;  %p3051_p0 = scmp.ge.s32.totalorder %s3813_s20, 1  ;;  %s3813_s20 = sphi %s3852_s20, %s16_s20   ;;  %s3809_s19 = sphi %s3850_s19, %s5462_s19   ;;  %s3805_s18 = sphi %s3848_s18, %s5461_s18  }
   0x3   : > { %p30_p1 = scmp.ge.s32.totalorder %s28_s21, 2  ;;  %p216_p2 = scmp.lt.s32.totalorder %s3813_s20, 3 }
   0x5   : > { %s5464_s21 = smov (%p30_p1, %s28_s21), 0  ;;  %p217_p3 = pnand %p3051_p0, %p216_p2 }
   0x7   : > { %220 = sbr.rel (%p217_p3) target bundleno = 633 (0x279), region = 36 }
   0xe   : > { %p261_p4 = scmp.lt.s32.totalorder %s3805_s18, 1  ;;  %vm587_vm0 = vsmask.f32 7424  ;;  %s3815_s30 = smov 4   ;;  %vm586_vm1 = vcmask 1047552   ;;  %vm850_vm3 = vcmask 1045504  }
   0xf   : > { %vm3915_vm2 = vmand %vm586_vm1, %vm587_vm0  ;;  %s3816_s6 = smov 8   ;;  %vm511_vm4 = vcmask 1040384   ;;  %vm512_vm5 = vsmask.f32 256  ;;  %vm715_vm7 = vcmask 31744   ;;  %vm770_vm8 = vcmask 64512  }
  0x10   : > { %s5466_s18 = smov (!%p261_p4, %s3805_s18), 1  ;;  %vm4667_vm6 = vmand %vm511_vm4, %vm512_vm5  ;;  %vm817_vm9 = vcmask 97280   ;;  %v4746_v18 = vld [vmem:[%s5314_s3 + $0x10] sm:$0x3f]   ;;  %vm2688_vm10 = vcmask 27648   ;;  %vm2893_vm11 = vcmask 25600  }
  0x11   : > { %s3225_s22 = sshll.u32 %s5466_s18, 8  ;;  %s3226_s23 = sshll.u32 %s5466_s18, 7 }
  0x12   : > { %s3873_s26 = scalar_lea.vmem %s5311_s0, %s3225_s22  ;;  %s3880_s29 = scalar_lea.vmem %s5312_s1, %s3226_s23 }
  0x13   : > { %v303_v0 = vld [vmem:[%s3873_s26 + $0x10] sm:$0xff]  ;;  %v304_v1 = vld [vmem:[%s3873_s26 + $0x18] sm:$0xff]  ;;  %v301_v2 = vld [vmem:[%s3873_s26] sm:$0xff] }
  0x14   : > { %v3885_v3 = vpack.c.bf16 %v304_v1, %v303_v0  ;;  %v302_v4 = vld [vmem:[%s3873_s26 + $0x8] sm:$0xff]  ;;  %v3891_v6 = vld [vmem:[%s3880_s29 + $0x10] sm:$0xff]   ;;  %v3896_v7 = vld [vmem:[%s3880_s29] sm:$0xff]  }
  0x15   : > { %v3888_v5 = vpack.c.bf16 %v302_v4, %v301_v2  ;;  %v3901_v8 = vld [vmem:[%s3880_s29 + $0x8] sm:$0xff]   ;;  %v305_v11 = vld [vmem:[%s3873_s26 + $0x20] sm:$0xff]  ;;  %v1539_v14 = vshrl.u32 %v3896_v7, 16  ;;  %v5330_v15 = vshll.u32 %v3896_v7, 16  ;;  %v307_v21 = vld [vmem:[%s3873_s26 + $0x30] sm:$0xff]  ;;  %v5332_v39 = vshll.u32 %v3891_v6, 16 }
  0x16   : > { %629 = vrot.lane.b32.xlu1 %v3885_v3, %s3815_s30  ;;  %v306_v12 = vld [vmem:[%s3873_s26 + $0x28] sm:$0xff]  ;;  %v5336_v16 = vshll.u32 %v3885_v3, 16  ;;  %v5329_v20 = vshll.u32 %v3901_v8, 16  ;;  %v308_v22 = vld [vmem:[%s3873_s26 + $0x38] sm:$0xff]  ;;  %v382_v24 = vshrl.u32 %v3885_v3, 16  ;;  %v1546_v25 = vshrl.u32 %v3901_v8, 16 }
  0x17   : > { %627 = vrot.lane.b32.xlu0 %v3888_v5, %s3815_s30  ;;  %v375_v9 = vshrl.u32 %v3888_v5, 16  ;;  %v5334_v10 = vshll.u32 %v3888_v5, 16  ;;  %v3907_v13 = vpack.c.bf16 %v306_v12, %v305_v11  ;;  %v1695_v19 = vrot.slane %v5330_v15, 1  ;;  %v309_v32 = vld [vmem:[%s3873_s26 + $0x40] sm:$0xff]  ;;  %v310_v33 = vld [vmem:[%s3873_s26 + $0x48] sm:$0xff]  ;;  %v3948_v35 = vld [vmem:[%s3880_s29 + $0x18] sm:$0xff]  }
  0x18   : > { %v536_v27 = vrot.slane %v5336_v16, 1  ;;  %v1697_v28 = vrot.slane %v5329_v20, 1  ;;  %v3941_v31 = vpack.c.bf16 %v308_v22, %v307_v21  ;;  %v3958_v40 = vld [vmem:[%s3880_s29 + $0x20] sm:$0xff]   ;;  %v3960_v42 = vpack.c.bf16 %v310_v33, %v309_v32  ;;  %v311_v43 = vld [vmem:[%s3873_s26 + $0x50] sm:$0xff]  ;;  %v312_v44 = vld [vmem:[%s3873_s26 + $0x58] sm:$0xff] }
  0x19   : > { %v534_v17 = vrot.slane %v5334_v10, 1  ;;  %v1696_v26 = vor.u32 %v1695_v19, %v1539_v14  ;;  %v5324_v29 = vshll.u32 %v3907_v13, 16  ;;  %v389_v34 = vshrl.u32 %v3907_v13, 16  ;;  %v3993_v62 = vld [vmem:[%s3880_s29 + $0x28] sm:$0xff]  }
  0x1a   : > { %1771 = vrot.lane.b32.xlu1 %v3891_v6, %s3815_s30  ;;  %v1698_v37 = vor.u32 %v1697_v28, %v1546_v25  ;;  %v537_v41 = vor.u32 %v536_v27, %v382_v24  ;;  %v5322_v45 = vshll.u32 %v3941_v31, 16  ;;  %v1553_v46 = vshrl.u32 %v3891_v6, 16  ;;  %v4028_v28 = vld [vmem:[%s3880_s29 + $0x30] sm:$0xff]  }
  0x1b   : > { %1767 = vrot.lane.b32.xlu0 %v3896_v7, %s3815_s30  ;;  %v535_v23 = vor.u32 %v534_v17, %v375_v9  ;;  %v1748_v36 = vsel %vm3915_vm2, %v1696_v26, 0  ;;  %v538_v38 = vrot.slane %v5324_v29, 1  ;;  %v5321_v47 = vshll.u32 %v3948_v35, 16  ;;  %v314_v26 = vld [vmem:[%s3873_s26 + $0x68] sm:$0xff] }
  0x1c   : > { %v1749_v48 = vsel %vm3915_vm2, %v1698_v37, 0  ;;  %v1699_v50 = vrot.slane %v5332_v39, 1  ;;  %v3974_v51 = vpack.c.bf16 %v312_v44, %v311_v43  ;;  %v591_v52 = vsel %vm3915_vm2, %v537_v41, 0  ;;  %v320_v37 = vld [vmem:[%s3873_s26 + $0x98] sm:$0xff]  ;;  %v326_v39 = vld [vmem:[%s3873_s26 + $0xc8] sm:$0xff] }
  0x1d   : > { %v590_v30 = vsel %vm3915_vm2, %v535_v23, 0  ;;  %v539_v49 = vor.u32 %v538_v38, %v389_v34  ;;  %v5320_v53 = vshll.u32 %v3960_v42, 16  ;;  %v5319_v54 = vshll.u32 %v3958_v40, 16 }
  0x1e   : > { %681 = vrot.lane.b32.xlu1 %v590_v30, %s3816_s6  ;;  %v396_v55 = vshrl.u32 %v3941_v31, 16  ;;  %v540_v56 = vrot.slane %v5322_v45, 1  ;;  %v1560_v57 = vshrl.u32 %v3948_v35, 16  ;;  %v1701_v58 = vrot.slane %v5321_v47, 1 }
  0x1f   : > { %1769 = vrot.lane.b32.xlu0 %v3901_v8, %s3815_s30  ;;  %v3987_v59 = vrot.slane %v382_v24, 7  ;;  %v592_v60 = vsel %vm3915_vm2, %v539_v49, 0  ;;  %v1700_v61 = vor.u32 %v1699_v50, %v1553_v46  ;;  %v5318_v63 = vshll.u32 %v3974_v51, 16  ;;  %v313_v24 = vld [vmem:[%s3873_s26 + $0x60] sm:$0xff] }
  0x20   : > { %v403_v0 = vshrl.u32 %v3960_v42, 16  ;;  %v542_v1 = vrot.slane %v5320_v53, 1  ;;  %v1567_v2 = vshrl.u32 %v3958_v40, 16  ;;  %v1703_v4 = vrot.slane %v5319_v54, 1 }
  0x21   : > { %v4004_v11 = vrot.slane %v375_v9, 7  ;;  %v4008_v12 = vrot.slane %v1539_v14, 7  ;;  %v4010_v17 = vrot.slane %v1546_v25, 7  ;;  %v541_v19 = vor.u32 %v540_v56, %v396_v55 }
  0x22   : > { %1821 = vrot.lane.b32.xlu1 %v1748_v36, %s3816_s6  ;;  %v4012_v21 = vrot.slane %v389_v34, 7  ;;  %v4015_v22 = vrot.slane %v1553_v46, 7  ;;  %v1702_v23 = vor.u32 %v1701_v58, %v1560_v57  ;;  %v1750_v9 = vsel %vm3915_vm2, %v1700_v61, 0  ;;  %v319_v36 = vld [vmem:[%s3873_s26 + $0x90] sm:$0xff]  ;;  %v4048_v46 = vld [vmem:[%s3880_s29 + $0x40] sm:$0xff]   ;;  %v316_v58 = vld [vmem:[%s3873_s26 + $0x78] sm:$0xff] }
  0x23   : > { %631 = vrot.lane.b32.xlu0 %v3907_v13, %s3815_s30  ;;  %v410_v14 = vshrl.u32 %v3974_v51, 16  ;;  %v544_v25 = vrot.slane %v5318_v63, 1  ;;  %v5317_v27 = vshll.u32 %v3993_v62, 16  ;;  %v4030_v30 = vrot.slane %v396_v55, 7  ;;  %v328_v63 = vld [vmem:[%s3873_s26 + $0xd8] sm:$0xff] }
  0x24   : > { %v4032_v32 = vor.u32 %v542_v1, %v403_v0  ;;  %v4034_v33 = vor.u32 %v1703_v4, %v1567_v2  ;;  %v1574_v34 = vshrl.u32 %v3993_v62, 16  ;;  %v593_v38 = vsel %vm3915_vm2, %v541_v19, 0  ;;  %v4078_v4 = vld [vmem:[%s3880_s29 + $0x48] sm:$0xff]   ;;  %v321_v19 = vld [vmem:[%s3873_s26 + $0xa0] sm:$0xff] }
  0x25   : > { %v4041_v41 = vrot.slane %v1560_v57, 7  ;;  %v4043_v43 = vrot.slane %v403_v0, 7  ;;  %v4045_v44 = vpack.c.bf16 %v314_v26, %v313_v24  ;;  %v4053_v49 = vrot.slane %v1567_v2, 7  ;;  %v315_v57 = vld [vmem:[%s3873_s26 + $0x70] sm:$0xff] }
  0x26   : > { %1823 = vrot.lane.b32.xlu1 %v1749_v48, %s3816_s6  ;;  %v1751_v48 = vsel %vm3915_vm2, %v1702_v23, 0  ;;  %v4055_v50 = vrot.slane %v410_v14, 7  ;;  %v4061_v55 = vor.u32 %v544_v25, %v410_v14  ;;  %v1705_v56 = vrot.slane %v5317_v27, 1  ;;  %v322_v23 = vld [vmem:[%s3873_s26 + $0xa8] sm:$0xff]  ;;  %v324_v27 = vld [vmem:[%s3873_s26 + $0xb8] sm:$0xff] }
  0x27   : > { %683 = vrot.lane.b32.xlu0 %v591_v52, %s3816_s6  ;;  %v4057_v52 = vrot.slane %v1574_v34, 7  ;;  %v4068_v61 = vpack.c.bf16 %v320_v37, %v319_v36  ;;  %v594_v0 = vsel %vm3915_vm2, %v4032_v32, 0  ;;  %v1752_v1 = vsel %vm3915_vm2, %v4034_v33, 0  ;;  %v323_v37 = vld [vmem:[%s3873_s26 + $0xb0] sm:$0xff] }
  0x28   : > { %v5337_v2 = vshrl.u32 %v4045_v44, 16  ;;  %v5331_v24 = vshll.u32 %v4045_v44, 16  ;;  %v5323_v14 = vshll.u32 %v4048_v46, 16  ;;  %v4090_v25 = vpack.c.bf16 %v316_v58, %v315_v57  ;;  %v4106_v57 = vld [vmem:[%s3880_s29 + $0x50] sm:$0xff]  }
  0x29   : > { %v5328_v32 = vshrl.u32 %v4068_v61, 16  ;;  %v5325_v36 = vshll.u32 %v4068_v61, 16  ;;  %v4100_v54 = vor.u32 %v1705_v56, %v1574_v34  ;;  %v5335_v53 = vshll.u32 %v4028_v28, 16  ;;  %v4149_v56 = vld [vmem:[%s3880_s29 + $0x38] sm:$0xff]  }
  0x2a   : > { %685 = vrot.lane.b32.xlu1 %v592_v60, %s3816_s6  ;;  %v5333_v60 = vshrl.u32 %v4028_v28, 16  ;;  %v5340_v47 = vshrl.u32 %v4078_v4, 16  ;;  %v4112_v45 = vpack.c.bf16 %v322_v23, %v321_v19  ;;  %v4116_v34 = vrot.slane %v5337_v2, 7 }
  0x2b   : > { %633 = vrot.lane.b32.xlu0 %v3941_v31, %s3815_s30  ;;  %v552_v58 = vrot.slane %v5325_v36, 1  ;;  %v4123_v29 = vpack.c.bf16 %v324_v27, %v323_v37  ;;  %v546_v27 = vrot.slane %v5331_v24, 1  ;;  %v1707_v20 = vrot.slane %v5335_v53, 1 }
  0x2c   : > { %v4085_v26 = vrot.slane %v5333_v60, 7  ;;  %v5341_v36 = vshrl.u32 %v4112_v45, 16  ;;  %v327_v60 = vld [vmem:[%s3873_s26 + $0xd0] sm:$0xff] }
  0x2d   : > { %v4129_v19 = vor.u32 %v552_v58, %v5328_v32  ;;  %v5342_v58 = vshrl.u32 %v4106_v57, 16  ;;  %v325_v32 = vld [vmem:[%s3873_s26 + $0xc0] sm:$0xff]  ;;  %v5345_v16 = vshrl.u32 %v4123_v29, 16  ;;  %v5343_v2 = vshll.u32 %v4123_v29, 16 }
  0x2e   : > { %1825 = vrot.lane.b32.xlu1 %v1750_v9, %s3816_s6  ;;  %v5326_v9 = vshrl.u32 %v4048_v46, 16  ;;  %v4191_v10 = vpack.c.bf16 %v326_v39, %v325_v32  ;;  %v318_v39 = vld [vmem:[%s3873_s26 + $0x88] sm:$0xff] }
  0x2f   : > { %1773 = vrot.lane.b32.xlu0 %v3948_v35, %s3815_s30  ;;  %5363 = vst [vmem:[#allocation2_spill] sm:$0xff] %v4129_v19  ;;  %v330_v32 = vld [vmem:[%s3873_s26 + $0xe8] sm:$0xff] }
  0x30   : > { %v5372_v33 = vshrl.u32 %v4191_v10, 16 }
  0x32   : > { %1827 = vrot.lane.b32.xlu1 %v1751_v48, %s3816_s6  ;;  %v1711_v48 = vrot.slane %v5323_v14, 1 }
  0x33   : > { %687 = vrot.lane.b32.xlu0 %v593_v38, %s3816_s6  ;;  %v5327_v38 = vshll.u32 %v4078_v4, 16 }
  0x34   : > { %v4121_v14 = vor.u32 %v1711_v48, %v5326_v9  ;;  %v5338_v48 = vshll.u32 %v4112_v45, 16  ;;  %v4136_v9 = vld [vmem:[%s3880_s29 + $0x58] sm:$0xff]  }
  0x35   : > { %v1713_v23 = vrot.slane %v5327_v38, 1  ;;  %v5339_v38 = vshll.u32 %v4106_v57, 16 }
  0x36   : > { %1775 = vrot.lane.b32.xlu1 %v3958_v40, %s3815_s30  ;;  %v554_v37 = vrot.slane %v5338_v48, 1  ;;  %v4216_v48 = vld [vmem:[%s3880_s29 + $0x68] sm:$0xff]  }
  0x37   : > { %635 = vrot.lane.b32.xlu0 %v3960_v42, %s3815_s30  ;;  %v4158_v24 = vor.u32 %v1713_v23, %v5340_v47  ;;  %v1715_v53 = vrot.slane %v5339_v38, 1  ;;  %v5344_v38 = vshll.u32 %v4136_v9, 16  ;;  %v4181_v47 = vld [vmem:[%s3880_s29 + $0x60] sm:$0xff]   ;;  %v556_v23 = vrot.slane %v5343_v2, 1 }
  0x38   : > { %v4176_v15 = vor.u32 %v554_v37, %v5341_v36  ;;  %v4193_v37 = vpack.c.bf16 %v328_v63, %v327_v60  ;;  %v1753_v36 = vsel %vm3915_vm2, %v4100_v54, 0  ;;  %v317_v2 = vld [vmem:[%s3873_s26 + $0x80] sm:$0xff]  ;;  %v5368_v63 = vshrl.u32 %v4136_v9, 16 }
  0x39   : > { %5364 = vst [vmem:[#allocation3_spill] sm:$0xff] %v4158_v24  ;;  %v4211_v54 = vor.u32 %v556_v23, %v5345_v16  ;;  %v329_v60 = vld [vmem:[%s3873_s26 + $0xe0] sm:$0xff]  ;;  %v4241_v23 = vpack.c.bf16 %v318_v39, %v317_v2  ;;  %v331_v39 = vld [vmem:[%s3873_s26 + $0xf0] sm:$0xff]  ;;  %v332_v24 = vld [vmem:[%s3873_s26 + $0xf8] sm:$0xff]  ;;  %v5373_v16 = vshrl.u32 %v4045_v44, 16  ;;  %v5374_v19 = vshrl.u32 %v4181_v47, 16  ;;  %s5167_s26 = scalar_lea.vmem %s5315_s4, %s3226_s23 }
  0x3a   : > { %689 = vrot.lane.b32.xlu1 %v594_v0, %s3816_s6  ;;  %5365 = vst [vmem:[#allocation4_spill] sm:$0xff] %v4176_v15  ;;  %v4187_v0 = vor.u32 %v1715_v53, %v5342_v58  ;;  %v1717_v58 = vrot.slane %v5344_v38, 1  ;;  %v4256_v2 = vpack.c.bf16 %v330_v32, %v329_v60  ;;  %v5377_v60 = vshll.u32 %v3888_v5, 16  ;;  %s3058_s23 = sshll.u32 %s5466_s18, 1 }
  0x3b   : > { %637 = vrot.lane.b32.xlu0 %v3974_v51, %s3815_s30  ;;  %5367 = vst [vmem:[#allocation6_spill] sm:$0xff] %v4211_v54 }
  0x3c   : > { %5366 = vst [vmem:[#allocation5_spill] sm:$0xff] %v4187_v0  ;;  %v4226_v38 = vor.u32 %v1717_v58, %v5368_v63  ;;  %v5352_v63 = vshll.u32 %v4193_v37, 16  ;;  %v5371_v0 = vshll.u32 %v4181_v47, 16  ;;  %v5355_v58 = vshll.u32 %v4216_v48, 16 }
  0x3d   : > { %v4278_v32 = vor.u32 %v5377_v60, %v4004_v11  ;;  %v5381_v11 = vshll.u32 %v4090_v25, 16  ;;  %v5386_v60 = vshll.u32 %v3896_v7, 16 }
  0x3e   : > { %1829 = vrot.lane.b32.xlu1 %v1752_v1, %s3816_s6  ;;  %5369 = vst [vmem:[#allocation7_spill] sm:$0xff] %v4226_v38  ;;  %v5370_v1 = vshll.u32 %v4191_v10, 16  ;;  %v1719_v15 = vrot.slane %v5371_v0, 1  ;;  %v547_v0 = vor.u32 %v546_v27, %v5373_v16  ;;  %v5378_v16 = vsel %vm3915_vm2, %v4061_v55, 0 }
  0x3f   : > { %1777 = vrot.lane.b32.xlu0 %v3993_v62, %s3815_s30  ;;  %v1721_v5 = vrot.slane %v5355_v58, 1  ;;  %v548_v27 = vrot.slane %v5381_v11, 1  ;;  %v4324_v55 = vor.u32 %v5386_v60, %v4008_v12  ;;  %v5387_v12 = vshll.u32 %v3901_v8, 16 }
  0x40   : > { %v558_v53 = vrot.slane %v5370_v1, 1  ;;  %v560_v1 = vrot.slane %v5352_v63, 1  ;;  %v4265_v38 = vor.u32 %v1719_v15, %v5374_v19  ;;  %v5379_v15 = vshrl.u32 %v4028_v28, 16 }
  0x41   : > { %v4343_v60 = vor.u32 %v5387_v12, %v4010_v17 }
  0x42   : > { %v4251_v54 = vor.u32 %v558_v53, %v5372_v33  ;;  %1831 = vrot.lane.b32.xlu1 %v1753_v36, %s3816_s6  ;;  %v4268_v53 = vld [vmem:[%s3880_s29 + $0x70] sm:$0xff]   ;;  %v5375_v33 = vshll.u32 %v3885_v3, 16  ;;  %v1708_v36 = vor.u32 %v1707_v20, %v5379_v15  ;;  %v5356_v20 = vshrl.u32 %v4256_v2, 16 }
  0x43   : > { %691 = vrot.lane.b32.xlu0 %v5378_v16, %s3816_s6  ;;  %v5353_v15 = vshll.u32 %v4256_v2, 16  ;;  %v5354_v3 = vshll.u32 %v4268_v53, 16 }
  0x44   : > { %v4273_v63 = vor.u32 %v5375_v33, %v3987_v59  ;;  %v5380_v59 = vshrl.u32 %v4193_v37, 16  ;;  %v4301_v33 = vpack.c.bf16 %v332_v24, %v331_v39  ;;  %v5385_v24 = vshll.u32 %v4149_v56, 16 }
  0x45   : > { %v562_v7 = vrot.slane %v5353_v15, 1  ;;  %v1754_v15 = vsel %vm3915_vm2, %v1708_v36, 0  ;;  %v5388_v36 = vshll.u32 %v3907_v13, 16  ;;  %v431_v13 = vshrl.u32 %v4241_v23, 16 }
  0x46   : > { %5376 = vst [vmem:[#allocation8_spill] sm:$0xff] %v4273_v63  ;;  %v4292_v19 = vor.u32 %v560_v1, %v5380_v59  ;;  %v5382_v1 = vshrl.u32 %v4216_v48, 16  ;;  %v5383_v59 = vshll.u32 %v3891_v6, 16  ;;  %1779 = vrot.lane.b32.xlu1 %v4028_v28, %s3815_s30  ;;  %v1709_v39 = vrot.slane %v5385_v24, 1 }
  0x47   : > { %639 = vrot.lane.b32.xlu0 %v4045_v44, %s3815_s30  ;;  %v596_v6 = vsel %vm3915_vm2, %v547_v0, 0  ;;  %v1723_v24 = vrot.slane %v5354_v3, 1  ;;  %v3785_v0 = vld [vmem:[%s5313_s2 + $0x8] sm:$0x3f]   ;;  %v4358_v8 = vor.u32 %v562_v7, %v5356_v20  ;;  %v5360_v17 = vshrl.u32 %v4301_v33, 16 }
  0x48   : > { %v4309_v16 = vor.u32 %v1721_v5, %v5382_v1  ;;  %v4315_v11 = vor.u32 %v5383_v59, %v4015_v22  ;;  %v4327_v5 = vld [vmem:[%s3880_s29 + $0x78] sm:$0xff]   ;;  %v5357_v1 = vshrl.u32 %v4268_v53, 16  ;;  %v434_v59 = vshll.u32 %v4241_v23, 16  ;;  %v3786_v22 = vld [vmem:[%s5314_s3 + $0x8] sm:$0x3f]   ;;  %3726 = vmatprep.subr.msk.bf16.mxu1 %vm850_vm3, %v3785_v0  ;;  %s288_s29 = scalar_lea.vmem %s5316_s5, %s3058_s23 }
  0x49   : > { %v5358_v12 = vshll.u32 %v4301_v33, 16  ;;  %v4372_v63 = vor.u32 %v5388_v36, %v4012_v21  ;;  %v5389_v7 = vshrl.u32 %v4149_v56, 16  ;;  %3729 = vmatprep.subr.msk.bf16.mxu0 %vm850_vm3, %v3786_v22 }
  0x4a   : > { %5384 = vst [vmem:[#allocation9_spill] sm:$0xff] %v4315_v11  ;;  %693 = vrot.lane.b32.xlu1 %v596_v6, %s3816_s6  ;;  %v4365_v3 = vor.u32 %v1723_v24, %v5357_v1  ;;  %v5359_v11 = vshll.u32 %v4327_v5, 16  ;;  %v5390_v1 = vshrl.u32 %v4090_v25, 16  ;;  %v5392_v6 = vshrl.u32 %v4149_v56, 16 }
  0x4b   : > { %641 = vrot.lane.b32.xlu0 %v4090_v25, %s3815_s30  ;;  %v1710_v20 = vor.u32 %v1709_v39, %v5389_v7  ;;  %v564_v24 = vrot.slane %v5358_v12, 1  ;;  %v852_v39 = vsel %vm850_vm3, %v3785_v0, 0 }
  0x4c   : > { %v549_v58 = vor.u32 %v548_v27, %v5390_v1  ;;  %v1725_v21 = vrot.slane %v5359_v11, 1  ;;  %v5391_v36 = vmov %v5390_v1  ;;  %v1590_v12 = vrot.slane %v5392_v6, 7  ;;  %3363 = vmatpush3.bf16.msra.mxu1 %v852_v39 }
  0x4d   : > { %v426_v7 = vrot.slane %v5391_v36, 7  ;;  %v4399_v27 = vor.u32 %v564_v24, %v5360_v17  ;;  %v1988_v1 = vsel %vm850_vm3, %v3786_v22, 0  ;;  %v5393_v11 = vshrl.u32 %v4327_v5, 16 }
  0x4e   : > { %1833 = vrot.lane.b32.xlu1 %v1754_v15, %s3816_s6  ;;  %3465 = vmatpush3.bf16.msra.mxu0 %v1988_v1  ;;  %v5394_v36 = vshll.u32 %v3941_v31, 16  ;;  %v5395_v24 = vshll.u32 %v3948_v35, 16  ;;  %v4421_v15 = vld [vmem:[%s5313_s2] sm:$0x3f]   ;;  %v1755_v31 = vsel %vm3915_vm2, %v1710_v20, 0  ;;  %v433_v1 = vrot.slane %v431_v13, 7 }
  0x4f   : > { %v4406_v0 = vor.u32 %v1725_v21, %v5393_v11  ;;  %v4426_v11 = vld [vmem:[%s5314_s3] sm:$0x3f]   ;;  %1781 = vrot.lane.b32.xlu0 %v4149_v56, %s3815_s30  ;;  %v597_v21 = vsel %vm3915_vm2, %v549_v58, 0  ;;  %3727 = vmatprep.subr.msk.bf16.mxu1 %vm850_vm3, %v4421_v15  ;;  %v5400_v58 = vshll.u32 %v3958_v40, 16  ;;  %v5402_v20 = vshll.u32 %v3993_v62, 16 }
  0x50   : > { %v4411_v6 = vor.u32 %v5394_v36, %v4030_v30  ;;  %v4416_v39 = vor.u32 %v5395_v24, %v4041_v41  ;;  %v550_v30 = vrot.slane %v434_v59, 1  ;;  %v5396_v41 = vshll.u32 %v3960_v42, 16  ;;  %3730 = vmatprep.subr.msk.bf16.mxu0 %vm850_vm3, %v4426_v11 }
  0x51   : > { %v5398_v36 = vshrl.u32 %v4048_v46, 16  ;;  %v5399_v42 = vshrl.u32 %v4068_v61, 16  ;;  %v4466_v17 = vor.u32 %v5402_v20, %v4057_v52  ;;  %v5404_v40 = vshll.u32 %v4045_v44, 16 }
  0x52   : > { %v4438_v22 = vor.u32 %v5396_v41, %v4043_v43  ;;  %v4456_v41 = vor.u32 %v5400_v58, %v4053_v49  ;;  %1835 = vrot.lane.b32.xlu1 %v1755_v31, %s3816_s6  ;;  %v5406_v58 = vshll.u32 %v4090_v25, 16  ;;  %v551_v52 = vor.u32 %v550_v30, %v431_v13 }
  0x53   : > { %v1597_v24 = vrot.slane %v5398_v36, 7  ;;  %v440_v43 = vrot.slane %v5399_v42, 7  ;;  %v5401_v36 = vshll.u32 %v3974_v51, 16  ;;  %v4474_v49 = vor.u32 %v5404_v40, %v4116_v34  ;;  %695 = vrot.lane.b32.xlu0 %v597_v21, %s3816_s6 }
  0x54   : > { %5397 = vst [vmem:[#allocation10_spill] sm:$0xff] %v4438_v22  ;;  %v5403_v22 = vshrl.u32 %v4078_v4, 16  ;;  %v5405_v51 = vshll.u32 %v4028_v28, 16  ;;  %v4483_v62 = vor.u32 %v5406_v58, %v426_v7  ;;  %v5407_v31 = vshrl.u32 %v4112_v45, 16 }
  0x55   : > { %v4461_v35 = vor.u32 %v5401_v36, %v4055_v50  ;;  %v5408_v20 = vshll.u32 %v4149_v56, 16  ;;  %v5409_v34 = vshrl.u32 %v4106_v57, 16  ;;  %v4494_v28 = vor.u32 %v434_v59, %v433_v1 }
  0x56   : > { %v1604_v42 = vrot.slane %v5403_v22, 7  ;;  %v4479_v50 = vor.u32 %v5405_v51, %v4085_v26  ;;  %v447_v22 = vrot.slane %v5407_v31, 7  ;;  %v5410_v26 = vshll.u32 %v4048_v46, 16  ;;  %1783 = vrot.lane.b32.xlu1 %v4048_v46, %s3815_s30 }
  0x57   : > { %v4490_v44 = vor.u32 %v5408_v20, %v1590_v12  ;;  %v1611_v36 = vrot.slane %v5409_v34, 7  ;;  %v5411_v7 = vshll.u32 %v4068_v61, 16  ;;  %v5412_v56 = vshrl.u32 %v4123_v29, 16  ;;  %643 = vrot.lane.b32.xlu0 %v4241_v23, %s3815_s30 }
  0x58   : > { %v4498_v25 = vor.u32 %v5410_v26, %v1597_v24  ;;  %v5413_v13 = vshll.u32 %v4078_v4, 16  ;;  %v598_v59 = vsel %vm3915_vm2, %v551_v52, 0  ;;  %v5414_v1 = vshll.u32 %v4112_v45, 16 }
  0x59   : > { %v4502_v21 = vor.u32 %v5411_v7, %v440_v43  ;;  %v454_v12 = vrot.slane %v5412_v56, 7  ;;  %v5415_v43 = vshll.u32 %v4106_v57, 16  ;;  %v5416_v40 = vshrl.u32 %v4136_v9, 16 }
  0x5a   : > { %v4510_v30 = vor.u32 %v5413_v13, %v1604_v42  ;;  %v4518_v24 = vor.u32 %v5414_v1, %v447_v22  ;;  %697 = vrot.lane.b32.xlu1 %v598_v59, %s3816_s6  ;;  %v5417_v51 = vshll.u32 %v4123_v29, 16  ;;  %v5418_v23 = vsel %vm3915_vm2, %v4121_v14, 0  ;;  %v5420_v22 = vld [vmem:[#allocation3_spill] sm:$0xff] }
  0x5b   : > { %v4522_v46 = vor.u32 %v5415_v43, %v1611_v36  ;;  %v1618_v42 = vrot.slane %v5416_v40, 7  ;;  %645 = vrot.lane.b32.xlu0 %v4068_v61, %s3815_s30  ;;  %v5419_v52 = vshll.u32 %v4136_v9, 16  ;;  %v5421_v20 = vsel %vm3915_vm2, %v5420_v22, 0  ;;  %v5422_v61 = vld [vmem:[#allocation2_spill] sm:$0xff]  ;;  %v5429_v43 = vld [vmem:[#allocation4_spill] sm:$0xff] }
  0x5c   : > { %v4529_v58 = vor.u32 %v5417_v51, %v454_v12  ;;  %v5423_v34 = vsel %vm3915_vm2, %v5422_v61, 0  ;;  %v5424_v14 = vshrl.u32 %v4191_v10, 16  ;;  %v5425_v26 = vshrl.u32 %v4181_v47, 16  ;;  %v5436_v61 = vld [vmem:[#allocation7_spill] sm:$0xff] }
  0x5d   : > { %v4540_v31 = vor.u32 %v5419_v52, %v1618_v42  ;;  %v5427_v12 = vshll.u32 %v4191_v10, 16  ;;  %v5428_v59 = vshll.u32 %v4181_v47, 16  ;;  %v5430_v40 = vsel %vm3915_vm2, %v5429_v43, 0 }
  0x5e   : > { %1837 = vrot.lane.b32.xlu1 %v5418_v23, %s3816_s6  ;;  %v461_v36 = vrot.slane %v5424_v14, 7  ;;  %v1625_v7 = vrot.slane %v5425_v26, 7  ;;  %v5432_v51 = vshll.u32 %v4193_v37, 16  ;;  %v5433_v23 = vld [vmem:[#allocation5_spill] sm:$0xff]  ;;  %v5435_v22 = vshll.u32 %v4216_v48, 16 }
  0x5f   : > { %1785 = vrot.lane.b32.xlu0 %v4078_v4, %s3815_s30  ;;  %v5426_v4 = vshrl.u32 %v4193_v37, 16  ;;  %v5434_v52 = vsel %vm3915_vm2, %v5433_v23, 0  ;;  %v5444_v43 = vshll.u32 %v4268_v53, 16  ;;  %v5448_v23 = vsel %vm3915_vm2, %v4265_v38, 0 }
  0x60   : > { %v4566_v13 = vor.u32 %v5427_v12, %v461_v36  ;;  %v4570_v1 = vor.u32 %v5428_v59, %v1625_v7  ;;  %v5440_v36 = vshrl.u32 %v4256_v2, 16  ;;  %v5441_v7 = vshrl.u32 %v4268_v53, 16 }
  0x61   : > { %v468_v56 = vrot.slane %v5426_v4, 7  ;;  %v5443_v12 = vshll.u32 %v4256_v2, 16  ;;  %v5451_v38 = vsel %vm3915_vm2, %v4292_v19, 0  ;;  %v515_v19 = vsel %vm4667_vm6, 0, %v4278_v32 }
  0x62   : > { %1839 = vrot.lane.b32.xlu1 %v5421_v20, %s3816_s6  ;;  %v475_v26 = vrot.slane %v5440_v36, 7  ;;  %v1639_v4 = vrot.slane %v5441_v7, 7  ;;  %v1676_v32 = vsel %vm4667_vm6, 0, %v4324_v55 }
  0x63   : > { %699 = vrot.lane.b32.xlu0 %v5423_v34, %s3816_s6  ;;  %v5437_v34 = vsel %vm3915_vm2, %v5436_v61, 0 }
  0x64   : > { %v4618_v59 = vor.u32 %v5443_v12, %v475_v26 }
  0x66   : > { %1787 = vrot.lane.b32.xlu1 %v4106_v57, %s3815_s30  ;;  %v5431_v57 = vshrl.u32 %v4216_v48, 16 }
  0x67   : > { %647 = vrot.lane.b32.xlu0 %v4112_v45, %s3815_s30  ;;  %v4581_v45 = vor.u32 %v5432_v51, %v468_v56  ;;  %v5447_v51 = vshll.u32 %v4301_v33, 16 }
  0x68   : > { %v1632_v42 = vrot.slane %v5431_v57, 7  ;;  %v5445_v57 = vsel %vm3915_vm2, %v4251_v54, 0 }
  0x6a   : > { %701 = vrot.lane.b32.xlu1 %v5430_v40, %s3816_s6  ;;  %v4592_v20 = vor.u32 %v5435_v22, %v1632_v42  ;;  %v4622_v40 = vor.u32 %v5444_v43, %v1639_v4  ;;  %v3817_v22 = vmov 0   ;;  %v5455_v4 = vsel %vm3915_vm2, %v4365_v3, 0 }
  0x6b   : > { %649 = vrot.lane.b32.xlu0 %v4123_v29, %s3815_s30  ;;  %v5438_v29 = vld [vmem:[#allocation6_spill] sm:$0xff]  ;;  %v3118_v61 = vcombine.low %v3817_v22, %v3817_v22  ;;  %v5456_v3 = vsel %vm3915_vm2, %v4406_v0, 0  ;;  %v1677_v0 = vsel %vm4667_vm6, 0, %v4343_v60  ;;  %v517_v60 = vsel %vm4667_vm6, 0, %v4372_v63  ;;  %v4741_v63 = vld [vmem:[%s5313_s2 + $0x10] sm:$0x3f]  }
  0x6c   : > { %v5439_v14 = vsel %vm3915_vm2, %v5438_v29, 0 }
  0x6e   : > { %1841 = vrot.lane.b32.xlu1 %v5434_v52, %s3816_s6  ;;  %v5449_v52 = vshll.u32 %v4327_v5, 16 }
  0x6f   : > { %1789 = vrot.lane.b32.xlu0 %v4136_v9, %s3815_s30  ;;  %v5442_v9 = vshrl.u32 %v4301_v33, 16 }
  0x71   : > { %v482_v56 = vrot.slane %v5442_v9, 7 }
  0x72   : > { %1843 = vrot.lane.b32.xlu1 %v5437_v34, %s3816_s6  ;;  %v1532_v34 = vshrl.u32 %v3118_v61, 16 }
  0x73   : > { %703 = vrot.lane.b32.xlu0 %v5439_v14, %s3816_s6 }
  0x74   : > { %v1534_v29 = vrot.slane %v1532_v34, 7 }
  0x76   : > { %1791 = vrot.lane.b32.xlu1 %v4181_v47, %s3815_s30  ;;  %v5446_v47 = vshrl.u32 %v4327_v5, 16 }
  0x77   : > { %651 = vrot.lane.b32.xlu0 %v4191_v10, %s3815_s30  ;;  %v4633_v10 = vor.u32 %v5447_v51, %v482_v56 }
  0x78   : > { %v1646_v42 = vrot.slane %v5446_v47, 7 }
  0x7a   : > { %705 = vrot.lane.b32.xlu1 %v5445_v57, %s3816_s6  ;;  %v4644_v54 = vor.u32 %v5449_v52, %v1646_v42  ;;  %v5458_v52 = vld [vmem:[#allocation8_spill] sm:$0xff] }
  0x7b   : > { %653 = vrot.lane.b32.xlu0 %v4193_v37, %s3815_s30  ;;  %v5450_v37 = vsel %vm3915_vm2, %v4309_v16, 0 }
  0x7e   : > { %1845 = vrot.lane.b32.xlu1 %v5448_v23, %s3816_s6 }
  0x7f   : > { %1793 = vrot.lane.b32.xlu0 %v4216_v48, %s3815_s30  ;;  %v1535_v48 = vshll.u32 %v3118_v61, 16 }
  0x81   : > { %v4664_v36 = vor.u32 %v1535_v48, %v1534_v29  ;;  %v1693_v56 = vrot.slane %v1535_v48, 1 }
  0x82   : > { %1847 = vrot.lane.b32.xlu1 %v5450_v37, %s3816_s6 }
  0x83   : > { %707 = vrot.lane.b32.xlu0 %v5451_v38, %s3816_s6  ;;  %v1694_v42 = vor.u32 %v1693_v56, %v1532_v34  ;;  %v1679_v56 = vsel %vm4667_vm6, 0, %v4416_v39 }
  0x85   : > { %v1747_v34 = vsel %vm3915_vm2, %v1694_v42, 0  ;;  %v5460_v42 = vld [vmem:[#allocation10_spill] sm:$0xff] }
  0x86   : > { %1795 = vrot.lane.b32.xlu1 %v4268_v53, %s3815_s30  ;;  %v5454_v53 = vsel %vm3915_vm2, %v4358_v8, 0 }
  0x87   : > { %655 = vrot.lane.b32.xlu0 %v4256_v2, %s3815_s30 }
  0x88   : > { %v630_v14 = vpop.permute.xlu1 %629 }
  0x89   : > { %v628_v16 = vpop.permute.xlu0 %627 }
  0x8a   : > { %709 = vrot.lane.b32.xlu1 %v5454_v53, %s3816_s6  ;;  %v721_v8 = vsel %vm715_vm7, %v515_v19, %v628_v16  ;;  %v1023_v53 = vsel %vm850_vm3, %v4421_v15, 0  ;;  %v2159_v19 = vsel %vm850_vm3, %v4426_v11, 0 }
  0x8b   : > { %657 = vrot.lane.b32.xlu0 %v4301_v33, %s3815_s30  ;;  %v532_v33 = vrot.slane %v3817_v22, 1 }
  0x8c   : > { %v1772_v2 = vpop.permute.xlu1 %1771 }
  0x8d   : > { %v1768_v7 = vpop.permute.xlu0 %1767  ;;  %v589_v55 = vsel %vm3915_vm2, %v532_v33, 0 }
  0x8e   : > { %1849 = vrot.lane.b32.xlu1 %v5455_v4, %s3816_s6  ;;  %v1860_v57 = vsel %vm715_vm7, %v1676_v32, %v1768_v7  ;;  %v5459_v7 = vld [vmem:[#allocation9_spill] sm:$0xff] }
  0x8f   : > { %1797 = vrot.lane.b32.xlu0 %v4327_v5, %s3815_s30  ;;  %v5457_v5 = vsel %vm3915_vm2, %v4399_v27, 0  ;;  %v516_v27 = vsel %vm4667_vm6, 0, %v5458_v52  ;;  %v1678_v4 = vsel %vm4667_vm6, 0, %v5459_v7 }
  0x90   : > { %v682_v9 = vpop.permute.xlu1 %681  ;;  %v724_v29 = vsel %vm715_vm7, %v516_v27, %v630_v14 }
  0x91   : > { %v1770_v12 = vpop.permute.xlu0 %1769  ;;  %v4694_v43 = vsel %vm770_vm8, %v721_v8, %v682_v9 }
  0x92   : > { %1851 = vrot.lane.b32.xlu1 %v5456_v3, %s3816_s6  ;;  %3364 = vmatprep.mubr.msk.bf16.mxu1 %vm817_vm9, %v4694_v43  ;;  %v1863_v37 = vsel %vm715_vm7, %v1677_v0, %v1770_v12  ;;  %v518_v3 = vsel %vm4667_vm6, 0, %v4411_v6  ;;  %v519_v0 = vsel %vm4667_vm6, 0, %v5460_v42 }
  0x93   : > { %711 = vrot.lane.b32.xlu0 %v5457_v5, %s3816_s6 }
  0x94   : > { %v1822_v47 = vpop.permute.xlu1 %1821 }
  0x95   : > { %v632_v51 = vpop.permute.xlu0 %631  ;;  %v4715_v23 = vsel %vm770_vm8, %v1860_v57, %v1822_v47 }
  0x96   : > { %3466 = vmatprep.mubr.msk.bf16.mxu0 %vm817_vm9, %v4715_v23  ;;  %679 = vrot.lane.b32.xlu1 %v589_v55, %s3816_s6  ;;  %v727_v15 = vsel %vm715_vm7, %v517_v60, %v632_v51 }
  0x97   : > { %3760 = vrot.lane.b32.xlu0 %v3118_v61, %s3815_s30 }
  0x98   : > { %v1824_v38 = vpop.permute.xlu1 %1823 }
  0x99   : > { %v684_v48 = vpop.permute.xlu0 %683  ;;  %v4732_v16 = vsel %vm770_vm8, %v1863_v37, %v1824_v38  ;;  %v1680_v37 = vsel %vm4667_vm6, 0, %v4456_v41  ;;  %v520_v41 = vsel %vm4667_vm6, 0, %v4461_v35 }
  0x9a   : > { %v4749_v14 = vsel %vm770_vm8, %v724_v29, %v684_v48  ;;  %3467 = vmatmul.mubr.msk.bf16.vlgmr.msra.gmra.mrb[0].mxu0 %vm817_vm9, %v4732_v16  ;;  %3765 = vrot.lane.b32.xlu1 %v3118_v61, %s3815_s30  ;;  %v1866_v61 = vsel %vm715_vm7, %v1678_v4, %v1772_v2  ;;  %v1681_v48 = vsel %vm4667_vm6, 0, %v4466_v17 }
  0x9b   : > { %1819 = vrot.lane.b32.xlu0 %v1747_v34, %s3816_s6  ;;  %3365 = vmatmul.mubr.msk.bf16.vlgmr.msra.gmra.mrb[0].mxu1 %vm817_vm9, %v4749_v14 }
  0x9c   : > { %v686_v11 = vpop.permute.xlu1 %685  ;;  %3397 = vmatpush3.bf16.msra.mxu1 %v1023_v53  ;;  %3499 = vmatpush3.bf16.msra.mxu0 %v2159_v19 }
  0x9d   : > { %v634_v33 = vpop.permute.xlu0 %633  ;;  %v4762_v8 = vsel %vm770_vm8, %v727_v15, %v686_v11  ;;  %3728 = vmatprep.subr.msk.bf16.mxu1 %vm850_vm3, %v4741_v63  ;;  %3731 = vmatprep.subr.msk.bf16.mxu0 %vm850_vm3, %v4746_v18 }
  0x9e   : > { %3368 = vmatprep.mubr.msk.bf16.mxu1 %vm817_vm9, %v4762_v8  ;;  %1853 = vrot.lane.b32.xlu1 %v1747_v34, %s3816_s6  ;;  %v730_v2 = vsel %vm715_vm7, %v518_v3, %v634_v33  ;;  %v1682_v3 = vsel %vm4667_vm6, 0, %v4479_v50  ;;  %v522_v50 = vsel %vm4667_vm6, 0, %v4483_v62 }
  0x9f   : > { %713 = vrot.lane.b32.xlu0 %v589_v55, %s3816_s6 }
  0xa0   : > { %v1826_v9 = vpop.permute.xlu1 %1825 }
  0xa1   : > { %v1774_v32 = vpop.permute.xlu0 %1773  ;;  %v4777_v12 = vsel %vm770_vm8, %v1866_v61, %v1826_v9  ;;  %v521_v61 = vsel %vm4667_vm6, 0, %v4474_v49  ;;  %v1683_v49 = vsel %vm4667_vm6, 0, %v4490_v44 }
  0xa2   : > { %3470 = vmatprep.mubr.msk.bf16.mxu0 %vm817_vm9, %v4777_v12  ;;  %v1869_v5 = vsel %vm715_vm7, %v1679_v56, %v1774_v32 }
  0xa4   : > { %v1828_v55 = vpop.permute.xlu1 %1827 }
  0xa5   : > { %v688_v57 = vpop.permute.xlu0 %687  ;;  %v4787_v47 = vsel %vm770_vm8, %v1869_v5, %v1828_v55 }
  0xa6   : > { %v4790_v39 = vsel %vm770_vm8, %v730_v2, %v688_v57  ;;  %3471 = vmatmul.mubr.msk.bf16.gmra.mrb[4].mxu0 %vm817_vm9, %v4787_v47 }
  0xa7   : > { %3369 = vmatmul.mubr.msk.bf16.gmra.mrb[4].mxu1 %vm817_vm9, %v4790_v39 }
  0xa8   : > { %v1776_v6 = vpop.permute.xlu1 %1775 }
  0xa9   : > { %v636_v51 = vpop.permute.xlu0 %635  ;;  %v1872_v34 = vsel %vm715_vm7, %v1680_v37, %v1776_v6 }
  0xaa   : > { %v733_v52 = vsel %vm715_vm7, %v519_v0, %v636_v51 }
  0xac   : > { %v690_v27 = vpop.permute.xlu1 %689 }
  0xad   : > { %v638_v60 = vpop.permute.xlu0 %637  ;;  %v4804_v38 = vsel %vm770_vm8, %v733_v52, %v690_v27 }
  0xae   : > { %3372 = vmatprep.mubr.msk.bf16.mxu1 %vm817_vm9, %v4804_v38  ;;  %v736_v7 = vsel %vm715_vm7, %v520_v41, %v638_v60  ;;  %v523_v60 = vsel %vm4667_vm6, 0, %v4494_v28  ;;  %v1685_v28 = vsel %vm4667_vm6, 0, %v4510_v30 }
  0xb0   : > { %v1830_v29 = vpop.permute.xlu1 %1829 }
  0xb1   : > { %v1778_v53 = vpop.permute.xlu0 %1777  ;;  %v4813_v19 = vsel %vm770_vm8, %v1872_v34, %v1830_v29 }
  0xb2   : > { %3474 = vmatprep.mubr.msk.bf16.mxu0 %vm817_vm9, %v4813_v19  ;;  %v1875_v15 = vsel %vm715_vm7, %v1681_v48, %v1778_v53  ;;  %v1684_v53 = vsel %vm4667_vm6, 0, %v4498_v25  ;;  %v524_v25 = vsel %vm4667_vm6, 0, %v4502_v21 }
  0xb4   : > { %v1832_v11 = vpop.permute.xlu1 %1831 }
  0xb5   : > { %v692_v4 = vpop.permute.xlu0 %691  ;;  %v4823_v33 = vsel %vm770_vm8, %v1875_v15, %v1832_v11 }
  0xb6   : > { %v4826_v17 = vsel %vm770_vm8, %v736_v7, %v692_v4  ;;  %3475 = vmatmul.mubr.msk.bf16.gmra.mrb[8].mxu0 %vm817_vm9, %v4823_v33 }
  0xb7   : > { %3373 = vmatmul.mubr.msk.bf16.gmra.mrb[8].mxu1 %vm817_vm9, %v4826_v17 }
  0xb8   : > { %v1780_v35 = vpop.permute.xlu1 %1779 }
  0xb9   : > { %v640_v9 = vpop.permute.xlu0 %639  ;;  %v1878_v2 = vsel %vm715_vm7, %v1682_v3, %v1780_v35 }
  0xba   : > { %v739_v56 = vsel %vm715_vm7, %v521_v61, %v640_v9 }
  0xbc   : > { %v694_v32 = vpop.permute.xlu1 %693 }
  0xbd   : > { %v642_v5 = vpop.permute.xlu0 %641  ;;  %v4840_v55 = vsel %vm770_vm8, %v739_v56, %v694_v32 }
  0xbe   : > { %3376 = vmatprep.mubr.msk.bf16.mxu1 %vm817_vm9, %v4840_v55  ;;  %v742_v52 = vsel %vm715_vm7, %v522_v50, %v642_v5  ;;  %v525_v5 = vsel %vm4667_vm6, 0, %v4518_v24  ;;  %v1687_v24 = vsel %vm4667_vm6, 0, %v4540_v31 }
  0xc0   : > { %v1834_v57 = vpop.permute.xlu1 %1833 }
  0xc1   : > { %v1782_v6 = vpop.permute.xlu0 %1781  ;;  %v4849_v42 = vsel %vm770_vm8, %v1878_v2, %v1834_v57 }
  0xc2   : > { %3478 = vmatprep.mubr.msk.bf16.mxu0 %vm817_vm9, %v4849_v42  ;;  %v1881_v0 = vsel %vm715_vm7, %v1683_v49, %v1782_v6  ;;  %v1686_v6 = vsel %vm4667_vm6, 0, %v4522_v46  ;;  %v526_v46 = vsel %vm4667_vm6, 0, %v4529_v58 }
  0xc4   : > { %v1836_v51 = vpop.permute.xlu1 %1835 }
  0xc5   : > { %v696_v27 = vpop.permute.xlu0 %695  ;;  %v4859_v37 = vsel %vm770_vm8, %v1881_v0, %v1836_v51 }
  0xc6   : > { %v4862_v44 = vsel %vm770_vm8, %v742_v52, %v696_v27  ;;  %3479 = vmatmul.mubr.msk.bf16.gmra.mrb[12].mxu0 %vm817_vm9, %v4859_v37 }
  0xc7   : > { %3377 = vmatmul.mubr.msk.bf16.gmra.mrb[12].mxu1 %vm817_vm9, %v4862_v44 }
  0xc8   : > { %v1784_v62 = vpop.permute.xlu1 %1783 }
  0xc9   : > { %v644_v34 = vpop.permute.xlu0 %643  ;;  %v1884_v11 = vsel %vm715_vm7, %v1684_v53, %v1784_v62 }
  0xca   : > { %v745_v29 = vsel %vm715_vm7, %v523_v60, %v644_v34 }
  0xcc   : > { %v698_v48 = vpop.permute.xlu1 %697 }
  0xcd   : > { %v646_v41 = vpop.permute.xlu0 %645  ;;  %v4876_v15 = vsel %vm770_vm8, %v745_v29, %v698_v48 }
  0xce   : > { %3380 = vmatprep.mubr.msk.bf16.mxu1 %vm817_vm9, %v4876_v15  ;;  %v748_v56 = vsel %vm715_vm7, %v524_v25, %v646_v41  ;;  %v527_v41 = vsel %vm4667_vm6, 0, %v4566_v13  ;;  %v1689_v13 = vsel %vm4667_vm6, 0, %v4592_v20 }
  0xd0   : > { %v1838_v7 = vpop.permute.xlu1 %1837 }
  0xd1   : > { %v1786_v4 = vpop.permute.xlu0 %1785  ;;  %v4885_v35 = vsel %vm770_vm8, %v1884_v11, %v1838_v7 }
  0xd2   : > { %3482 = vmatprep.mubr.msk.bf16.mxu0 %vm817_vm9, %v4885_v35  ;;  %v1887_v61 = vsel %vm715_vm7, %v1685_v28, %v1786_v4  ;;  %v1688_v4 = vsel %vm4667_vm6, 0, %v4570_v1  ;;  %v528_v1 = vsel %vm4667_vm6, 0, %v4581_v45 }
  0xd4   : > { %v1840_v9 = vpop.permute.xlu1 %1839 }
  0xd5   : > { %v700_v32 = vpop.permute.xlu0 %699  ;;  %v4895_v3 = vsel %vm770_vm8, %v1887_v61, %v1840_v9 }
  0xd6   : > { %v4898_v30 = vsel %vm770_vm8, %v748_v56, %v700_v32  ;;  %3483 = vmatmul.mubr.msk.bf16.gmra.mrb[16].mxu0 %vm817_vm9, %v4895_v3 }
  0xd7   : > { %3381 = vmatmul.mubr.msk.bf16.gmra.mrb[16].mxu1 %vm817_vm9, %v4898_v30 }
  0xd8   : > { %v1788_v21 = vpop.permute.xlu1 %1787 }
  0xd9   : > { %v648_v2 = vpop.permute.xlu0 %647  ;;  %v1890_v51 = vsel %vm715_vm7, %v1686_v6, %v1788_v21 }
  0xda   : > { %v751_v57 = vsel %vm715_vm7, %v525_v5, %v648_v2 }
  0xdc   : > { %v702_v49 = vpop.permute.xlu1 %701 }
  0xdd   : > { %v650_v50 = vpop.permute.xlu0 %649  ;;  %v4912_v0 = vsel %vm770_vm8, %v751_v57, %v702_v49 }
  0xde   : > { %3384 = vmatprep.mubr.msk.bf16.mxu1 %vm817_vm9, %v4912_v0  ;;  %v754_v29 = vsel %vm715_vm7, %v526_v46, %v650_v50  ;;  %v529_v50 = vsel %vm4667_vm6, 0, %v4618_v59  ;;  %v1691_v59 = vsel %vm4667_vm6, 0, %v4644_v54  ;;  %v370_v54 = vrot.slane %v3817_v22, 7 }
  0xe0   : > { %v1842_v52 = vpop.permute.xlu1 %1841 }
  0xe1   : > { %v1790_v27 = vpop.permute.xlu0 %1789  ;;  %v4921_v62 = vsel %vm770_vm8, %v1890_v51, %v1842_v52 }
  0xe2   : > { %3486 = vmatprep.mubr.msk.bf16.mxu0 %vm817_vm9, %v4921_v62  ;;  %v1893_v60 = vsel %vm715_vm7, %v1687_v24, %v1790_v27  ;;  %v1690_v27 = vsel %vm4667_vm6, 0, %v4622_v40  ;;  %v530_v40 = vsel %vm4667_vm6, 0, %v4633_v10 }
  0xe4   : > { %v1844_v34 = vpop.permute.xlu1 %1843 }
  0xe5   : > { %v704_v48 = vpop.permute.xlu0 %703  ;;  %v4931_v53 = vsel %vm770_vm8, %v1893_v60, %v1844_v34 }
  0xe6   : > { %v4934_v31 = vsel %vm770_vm8, %v754_v29, %v704_v48  ;;  %3487 = vmatmul.mubr.msk.bf16.gmra.mrb[20].mxu0 %vm817_vm9, %v4931_v53 }
  0xe7   : > { %3385 = vmatmul.mubr.msk.bf16.gmra.mrb[20].mxu1 %vm817_vm9, %v4934_v31 }
  0xe8   : > { %v1792_v58 = vpop.permute.xlu1 %1791 }
  0xe9   : > { %v652_v11 = vpop.permute.xlu0 %651  ;;  %v1896_v9 = vsel %vm715_vm7, %v1688_v4, %v1792_v58 }
  0xea   : > { %v757_v7 = vsel %vm715_vm7, %v527_v41, %v652_v11 }
  0xec   : > { %v706_v28 = vpop.permute.xlu1 %705 }
  0xed   : > { %v654_v25 = vpop.permute.xlu0 %653  ;;  %v4948_v61 = vsel %vm770_vm8, %v757_v7, %v706_v28 }
  0xee   : > { %3388 = vmatprep.mubr.msk.bf16.mxu1 %vm817_vm9, %v4948_v61  ;;  %v760_v57 = vsel %vm715_vm7, %v528_v1, %v654_v25 }
  0xf0   : > { %v1846_v56 = vpop.permute.xlu1 %1845 }
  0xf1   : > { %v1794_v32 = vpop.permute.xlu0 %1793  ;;  %v4957_v21 = vsel %vm770_vm8, %v1896_v9, %v1846_v56  ;;  %v5015_v9 = vsel %vm4667_vm6, 0, %v370_v54  ;;  %v5020_v56 = vsel %vm4667_vm6, 0, %v4664_v36  ;;  %v2333_v36 = vsel %vm850_vm3, %v4746_v18, 0 }
  0xf2   : > { %3490 = vmatprep.mubr.msk.bf16.mxu0 %vm817_vm9, %v4957_v21  ;;  %v1899_v5 = vsel %vm715_vm7, %v1689_v13, %v1794_v32 }
  0xf4   : > { %v1848_v2 = vpop.permute.xlu1 %1847 }
  0xf5   : > { %v708_v49 = vpop.permute.xlu0 %707  ;;  %v4967_v6 = vsel %vm770_vm8, %v1899_v5, %v1848_v2 }
  0xf6   : > { %v4970_v20 = vsel %vm770_vm8, %v760_v57, %v708_v49  ;;  %3491 = vmatmul.mubr.msk.bf16.gmra.mrb[24].mxu0 %vm817_vm9, %v4967_v6  ;;  %v1197_v49 = vsel %vm850_vm3, %v4741_v63, 0 }
  0xf7   : > { %3389 = vmatmul.mubr.msk.bf16.gmra.mrb[24].mxu1 %vm817_vm9, %v4970_v20 }
  0xf8   : > { %v1796_v45 = vpop.permute.xlu1 %1795 }
  0xf9   : > { %v656_v51 = vpop.permute.xlu0 %655  ;;  %v1902_v34 = vsel %vm715_vm7, %v1690_v27, %v1796_v45 }
  0xfa   : > { %v763_v52 = vsel %vm715_vm7, %v529_v50, %v656_v51 }
  0xfc   : > { %v710_v24 = vpop.permute.xlu1 %709 }
  0xfd   : > { %v658_v46 = vpop.permute.xlu0 %657  ;;  %v4984_v60 = vsel %vm770_vm8, %v763_v52, %v710_v24 }
  0xfe   : > { %3392 = vmatprep.mubr.msk.bf16.mxu1 %vm817_vm9, %v4984_v60  ;;  %v766_v7 = vsel %vm715_vm7, %v530_v40, %v658_v46 }
 0x100   : > { %v1850_v29 = vpop.permute.xlu1 %1849 }
 0x101   : > { %v1798_v48 = vpop.permute.xlu0 %1797  ;;  %v4993_v58 = vsel %vm770_vm8, %v1902_v34, %v1850_v29 }
 0x102   : > { %3494 = vmatprep.mubr.msk.bf16.mxu0 %vm817_vm9, %v4993_v58  ;;  %v1905_v41 = vsel %vm715_vm7, %v1691_v59, %v1798_v48 }
 0x104   : > { %v1852_v11 = vpop.permute.xlu1 %1851 }
 0x105   : > { %v712_v28 = vpop.permute.xlu0 %711  ;;  %v5003_v4 = vsel %vm770_vm8, %v1905_v41, %v1852_v11 }
 0x106   : > { %v5007_v25 = vsel %vm770_vm8, %v766_v7, %v712_v28  ;;  %3495 = vmatmul.mubr.msk.bf16.gmra.mrb[28].mxu0 %vm817_vm9, %v5003_v4 }
 0x107   : > { %3393 = vmatmul.mubr.msk.bf16.gmra.mrb[28].mxu1 %vm817_vm9, %v5007_v25 }
 0x108   : > { %v680_v32 = vpop.permute.xlu1 %679 }
 0x109   : > { %v3761_v10 = vpop.permute.xlu0 %3760 }
 0x10a   : > { %v3763_v22 = vunpack.i.h.bf16 %v3761_v10  ;;  %v3762_v13 = vunpack.i.l.bf16 %v3761_v10 }
 0x10c   : > { %v718_v1 = vsel %vm715_vm7, %v5015_v9, %v3762_v13  ;;  %v1857_v5 = vsel %vm715_vm7, %v5020_v56, %v3763_v22  ;;  %v3766_v26 = vpop.permute.xlu1 %3765 }
 0x10d   : > { %v772_v2 = vsel %vm770_vm8, %v718_v1, %v680_v32  ;;  %v1820_v57 = vpop.permute.xlu0 %1819 }
 0x10e   : > { %v1910_v45 = vsel %vm770_vm8, %v1857_v5, %v1820_v57  ;;  %3398 = vmatprep.mubr.msk.bf16.mxu1 %vm817_vm9, %v772_v2 }
 0x10f   : > { %3399 = vmatmul.mubr.msk.bf16.vlgmr.msra.gmra.mrb[0].mxu1 %vm817_vm9, %v4694_v43  ;;  %3500 = vmatprep.mubr.msk.bf16.mxu0 %vm817_vm9, %v1910_v45  ;;  %v3767_v43 = vunpack.i.l.bf16 %v3766_v26 }
 0x110   : > { %3402 = vmatprep.mubr.msk.bf16.mxu1 %vm817_vm9, %v4749_v14  ;;  %3431 = vmatpush3.bf16.msra.mxu1 %v1197_v49  ;;  %v1854_v18 = vpop.permute.xlu1 %1853 }
 0x111   : > { %3501 = vmatmul.mubr.msk.bf16.vlgmr.msra.gmra.mrb[0].mxu0 %vm817_vm9, %v4715_v23  ;;  %v3768_v23 = vunpack.i.h.bf16 %v3766_v26  ;;  %v769_v63 = vsel %vm715_vm7, %v5015_v9, %v3767_v43 }
 0x112   : > { %3533 = vmatpush3.bf16.msra.mxu0 %v2333_v36  ;;  %3504 = vmatprep.mubr.msk.bf16.mxu0 %vm817_vm9, %v4732_v16 }
 0x117   : > { %3403 = vmatmul.mubr.msk.bf16.gmra.mrb[4].mxu1 %vm817_vm9, %v4762_v8 }
 0x118   : > { %3406 = vmatprep.mubr.msk.bf16.mxu1 %vm817_vm9, %v4790_v39 }
 0x119   : > { %3505 = vmatmul.mubr.msk.bf16.gmra.mrb[4].mxu0 %vm817_vm9, %v4777_v12 }
 0x11a   : > { %3508 = vmatprep.mubr.msk.bf16.mxu0 %vm817_vm9, %v4787_v47 }
 0x11f   : > { %3407 = vmatmul.mubr.msk.bf16.gmra.mrb[8].mxu1 %vm817_vm9, %v4804_v38 }
 0x120   : > { %3410 = vmatprep.mubr.msk.bf16.mxu1 %vm817_vm9, %v4826_v17 }
 0x121   : > { %3509 = vmatmul.mubr.msk.bf16.gmra.mrb[8].mxu0 %vm817_vm9, %v4813_v19 }
 0x122   : > { %3512 = vmatprep.mubr.msk.bf16.mxu0 %vm817_vm9, %v4823_v33 }
 0x127   : > { %3411 = vmatmul.mubr.msk.bf16.gmra.mrb[12].mxu1 %vm817_vm9, %v4840_v55 }
 0x128   : > { %3414 = vmatprep.mubr.msk.bf16.mxu1 %vm817_vm9, %v4862_v44 }
 0x129   : > { %3513 = vmatmul.mubr.msk.bf16.gmra.mrb[12].mxu0 %vm817_vm9, %v4849_v42 }
 0x12a   : > { %3516 = vmatprep.mubr.msk.bf16.mxu0 %vm817_vm9, %v4859_v37 }
 0x12f   : > { %3415 = vmatmul.mubr.msk.bf16.gmra.mrb[16].mxu1 %vm817_vm9, %v4876_v15 }
 0x130   : > { %3418 = vmatprep.mubr.msk.bf16.mxu1 %vm817_vm9, %v4898_v30 }
 0x131   : > { %3517 = vmatmul.mubr.msk.bf16.gmra.mrb[16].mxu0 %vm817_vm9, %v4885_v35 }
 0x132   : > { %3520 = vmatprep.mubr.msk.bf16.mxu0 %vm817_vm9, %v4895_v3 }
 0x137   : > { %3419 = vmatmul.mubr.msk.bf16.gmra.mrb[20].mxu1 %vm817_vm9, %v4912_v0 }
 0x138   : > { %3422 = vmatprep.mubr.msk.bf16.mxu1 %vm817_vm9, %v4934_v31 }
 0x139   : > { %3521 = vmatmul.mubr.msk.bf16.gmra.mrb[20].mxu0 %vm817_vm9, %v4921_v62 }
 0x13a   : > { %3524 = vmatprep.mubr.msk.bf16.mxu0 %vm817_vm9, %v4931_v53 }
 0x13f   : > { %3423 = vmatmul.mubr.msk.bf16.gmra.mrb[24].mxu1 %vm817_vm9, %v4948_v61 }
 0x140   : > { %3426 = vmatprep.mubr.msk.bf16.mxu1 %vm817_vm9, %v4970_v20 }
 0x141   : > { %3525 = vmatmul.mubr.msk.bf16.gmra.mrb[24].mxu0 %vm817_vm9, %v4957_v21 }
 0x142   : > { %3528 = vmatprep.mubr.msk.bf16.mxu0 %vm817_vm9, %v4967_v6 }
 0x147   : > { %3427 = vmatmul.mubr.msk.bf16.gmra.mrb[28].mxu1 %vm817_vm9, %v4984_v60 }
 0x148   : > { %3432 = vmatprep.mubr.msk.bf16.mxu1 %vm817_vm9, %v4749_v14  ;;  %v1908_v14 = vsel %vm715_vm7, %v5020_v56, %v3768_v23 }
 0x149   : > { %3529 = vmatmul.mubr.msk.bf16.gmra.mrb[28].mxu0 %vm817_vm9, %v4993_v58 }
 0x14a   : > { %3534 = vmatprep.mubr.msk.bf16.mxu0 %vm817_vm9, %v4732_v16  ;;  %v714_v16 = vpop.permute.xlu0 %713 }
 0x14f   : > { %3433 = vmatmul.mubr.msk.bf16.vlgmr.msra.gmra.mrb[0].mxu1 %vm817_vm9, %v4762_v8  ;;  %v806_v8 = vsel %vm770_vm8, %v769_v63, %v714_v16 }
 0x150   : > { %3436 = vmatprep.mubr.msk.bf16.mxu1 %vm817_vm9, %v4790_v39 }
 0x151   : > { %3535 = vmatmul.mubr.msk.bf16.vlgmr.msra.gmra.mrb[0].mxu0 %vm817_vm9, %v4777_v12  ;;  %v1944_v12 = vsel %vm770_vm8, %v1908_v14, %v1854_v18 }
 0x152   : > { %3538 = vmatprep.mubr.msk.bf16.mxu0 %vm817_vm9, %v4787_v47 }
 0x157   : > { %3437 = vmatmul.mubr.msk.bf16.gmra.mrb[4].mxu1 %vm817_vm9, %v4804_v38 }
 0x158   : > { %3440 = vmatprep.mubr.msk.bf16.mxu1 %vm817_vm9, %v4826_v17 }
 0x159   : > { %3539 = vmatmul.mubr.msk.bf16.gmra.mrb[4].mxu0 %vm817_vm9, %v4813_v19 }
 0x15a   : > { %3542 = vmatprep.mubr.msk.bf16.mxu0 %vm817_vm9, %v4823_v33 }
 0x15f   : > { %3441 = vmatmul.mubr.msk.bf16.gmra.mrb[8].mxu1 %vm817_vm9, %v4840_v55 }
 0x160   : > { %3444 = vmatprep.mubr.msk.bf16.mxu1 %vm817_vm9, %v4862_v44 }
 0x161   : > { %3543 = vmatmul.mubr.msk.bf16.gmra.mrb[8].mxu0 %vm817_vm9, %v4849_v42 }
 0x162   : > { %3546 = vmatprep.mubr.msk.bf16.mxu0 %vm817_vm9, %v4859_v37 }
 0x167   : > { %3445 = vmatmul.mubr.msk.bf16.gmra.mrb[12].mxu1 %vm817_vm9, %v4876_v15 }
 0x168   : > { %3448 = vmatprep.mubr.msk.bf16.mxu1 %vm817_vm9, %v4898_v30 }
 0x169   : > { %3547 = vmatmul.mubr.msk.bf16.gmra.mrb[12].mxu0 %vm817_vm9, %v4885_v35 }
 0x16a   : > { %3550 = vmatprep.mubr.msk.bf16.mxu0 %vm817_vm9, %v4895_v3 }
 0x16f   : > { %3449 = vmatmul.mubr.msk.bf16.gmra.mrb[16].mxu1 %vm817_vm9, %v4912_v0 }
 0x170   : > { %3452 = vmatprep.mubr.msk.bf16.mxu1 %vm817_vm9, %v4934_v31 }
 0x171   : > { %3551 = vmatmul.mubr.msk.bf16.gmra.mrb[16].mxu0 %vm817_vm9, %v4921_v62 }
 0x172   : > { %3554 = vmatprep.mubr.msk.bf16.mxu0 %vm817_vm9, %v4931_v53 }
 0x177   : > { %3453 = vmatmul.mubr.msk.bf16.gmra.mrb[20].mxu1 %vm817_vm9, %v4948_v61 }
 0x178   : > { %3456 = vmatprep.mubr.msk.bf16.mxu1 %vm817_vm9, %v4970_v20 }
 0x179   : > { %3555 = vmatmul.mubr.msk.bf16.gmra.mrb[20].mxu0 %vm817_vm9, %v4957_v21 }
 0x17a   : > { %3558 = vmatprep.mubr.msk.bf16.mxu0 %vm817_vm9, %v4967_v6 }
 0x17f   : > { %3457 = vmatmul.mubr.msk.bf16.gmra.mrb[24].mxu1 %vm817_vm9, %v4984_v60 }
 0x180   : > { %3460 = vmatprep.mubr.msk.bf16.mxu1 %vm817_vm9, %v5007_v25 }
 0x181   : > { %3559 = vmatmul.mubr.msk.bf16.gmra.mrb[24].mxu0 %vm817_vm9, %v4993_v58 }
 0x182   : > { %3562 = vmatprep.mubr.msk.bf16.mxu0 %vm817_vm9, %v5003_v4 }
 0x187   : > { %3461 = vmatmul.mubr.msk.bf16.gmra.mrb[28].mxu1 %vm817_vm9, %v806_v8 }
 0x189   : > { %3563 = vmatmul.mubr.msk.bf16.gmra.mrb[28].mxu0 %vm817_vm9, %v1944_v12 }
 0x222   : > { %v3434_v47 = vpop.f32.mrb[0].mxu1 }
 0x223   : > { %v1233_v39 = vpop.f32.mrb[1].mxu1 }
 0x224   : > { %v3536_v38 = vpop.f32.mrb[0].mxu0  ;;  %v3435_v19 = vpop.f32.mrb[2].mxu1 }
 0x225   : > { %v3566_v33 = vadd.f32 %v3536_v38, %v3434_v47  ;;  %v2369_v17 = vpop.f32.mrb[1].mxu0  ;;  %v1236_v55 = vpop.f32.mrb[3].mxu1 }
 0x226   : > { %v3567_v42 = vadd.f32 %v2369_v17, %v1233_v39  ;;  %v3537_v37 = vpop.f32.mrb[2].mxu0 }
 0x227   : > { %v3230_v44 = vpack.c.bf16 %v3566_v33, %v3566_v33  ;;  %v3568_v15 = vadd.f32 %v3537_v37, %v3435_v19  ;;  %v2372_v35 = vpop.f32.mrb[3].mxu0  ;;  %v2792_v62 = vmul.f32 %v3566_v33, %v3566_v33  ;;  %v2724_v24 = vsel %vm715_vm7, %v3566_v33, 0.0 }
 0x228   : > { %v3228_v3 = vpack.c.bf16 %v3567_v42, %v3567_v42  ;;  %v2790_v30 = vmul.f32 %v3567_v42, %v3567_v42  ;;  %v3569_v0 = vadd.f32 %v2372_v35, %v1236_v55  ;;  %v2721_v31 = vsel %vm715_vm7, %v3567_v42, 0.0 }
 0x229   : > { %2691 = vst.msk [vmem:[%s5167_s26 + $0x8] sm:$0xf] %vm2688_vm10, %v3230_v44  ;;  %v3231_v53 = vpack.c.bf16 %v3568_v15, %v3568_v15  ;;  %v2793_v50 = vmul.f32 %v3568_v15, %v3568_v15  ;;  %v2825_v41 = vsel %vm715_vm7, %v2792_v62, 0.0  ;;  %v2726_v28 = vsel %vm715_vm7, %v3568_v15, 0.0 }
 0x22a   : > { %2689 = vst.msk [vmem:[%s5167_s26] sm:$0xf] %vm2688_vm10, %v3228_v3  ;;  %v3229_v61 = vpack.c.bf16 %v3569_v0, %v3569_v0  ;;  %v2722_v21 = vsel %vm715_vm7, %v3569_v0, 0.0  ;;  %v2791_v6 = vmul.f32 %v3569_v0, %v3569_v0  ;;  %v3438_v20 = vpop.f32.mrb[4].mxu1  ;;  %v2822_v27 = vsel %vm715_vm7, %v2790_v30, 0.0 }
 0x22b   : > { %2692 = vst.msk [vmem:[%s5167_s26 + $0xc] sm:$0xf] %vm2688_vm10, %v3231_v53  ;;  %v2723_v51 = vadd.f32 %v2722_v21, %v2721_v31  ;;  %v1249_v52 = vpop.f32.mrb[5].mxu1  ;;  %v2827_v4 = vsel %vm715_vm7, %v2793_v50, 0.0 }
 0x22c   : > { %2690 = vst.msk [vmem:[%s5167_s26 + $0x4] sm:$0xf] %vm2688_vm10, %v3229_v61  ;;  %v2823_v46 = vsel %vm715_vm7, %v2791_v6, 0.0  ;;  %v3540_v60 = vpop.f32.mrb[4].mxu0  ;;  %v3439_v34 = vpop.f32.mrb[6].mxu1 }
 0x22d   : > { %v2725_v29 = vadd.f32 %v2724_v24, %v2723_v51  ;;  %v2824_v59 = vadd.f32 %v2823_v46, %v2822_v27  ;;  %v3570_v48 = vadd.f32 %v3540_v60, %v3438_v20  ;;  %v2385_v58 = vpop.f32.mrb[5].mxu0  ;;  %v1252_v40 = vpop.f32.mrb[7].mxu1 }
 0x22e   : > { %v3571_v11 = vadd.f32 %v2385_v58, %v1249_v52  ;;  %v3541_v7 = vpop.f32.mrb[6].mxu0 }
 0x22f   : > { %v2826_v54 = vadd.f32 %v2825_v41, %v2824_v59  ;;  %v3234_v25 = vpack.c.bf16 %v3570_v48, %v3570_v48  ;;  %v2388_v10 = vpop.f32.mrb[7].mxu0  ;;  %v2727_v56 = vadd.f32 %v2726_v28, %v2725_v29  ;;  %v3572_v1 = vadd.f32 %v3541_v7, %v3439_v34 }
 0x230   : > { %v3232_v9 = vpack.c.bf16 %v3571_v11, %v3571_v11  ;;  %v2728_v22 = vsel %vm715_vm7, %v3571_v11, 0.0  ;;  %v2794_v13 = vmul.f32 %v3571_v11, %v3571_v11  ;;  %v3573_v5 = vadd.f32 %v2388_v10, %v1252_v40 }
 0x231   : > { %2695 = vst.msk [vmem:[%s5167_s26 + $0x18] sm:$0xf] %vm2688_vm10, %v3234_v25  ;;  %v2828_v32 = vadd.f32 %v2827_v4, %v2826_v54  ;;  %v2729_v2 = vadd.f32 %v2728_v22, %v2727_v56  ;;  %v2796_v45 = vmul.f32 %v3570_v48, %v3570_v48  ;;  %v3235_v26 = vpack.c.bf16 %v3572_v1, %v3572_v1 }
 0x232   : > { %2693 = vst.msk [vmem:[%s5167_s26 + $0x10] sm:$0xf] %vm2688_vm10, %v3232_v9  ;;  %v2829_v57 = vsel %vm715_vm7, %v2794_v13, 0.0  ;;  %v3442_v49 = vpop.f32.mrb[8].mxu1  ;;  %v3233_v23 = vpack.c.bf16 %v3573_v5, %v3573_v5  ;;  %v2730_v16 = vsel %vm715_vm7, %v3573_v5, 0.0  ;;  %v2795_v63 = vmul.f32 %v3573_v5, %v3573_v5 }
 0x233   : > { %v2830_v36 = vadd.f32 %v2829_v57, %v2828_v32  ;;  %v1265_v43 = vpop.f32.mrb[9].mxu1  ;;  %2696 = vst.msk [vmem:[%s5167_s26 + $0x1c] sm:$0xf] %vm2688_vm10, %v3235_v26  ;;  %v2731_v8 = vadd.f32 %v2730_v16, %v2729_v2  ;;  %v2732_v38 = vsel %vm715_vm7, %v3570_v48, 0.0  ;;  %v2797_v19 = vmul.f32 %v3572_v1, %v3572_v1 }
 0x234   : > { %v3544_v18 = vpop.f32.mrb[8].mxu0  ;;  %v3443_v14 = vpop.f32.mrb[10].mxu1  ;;  %2694 = vst.msk [vmem:[%s5167_s26 + $0x14] sm:$0xf] %vm2688_vm10, %v3233_v23  ;;  %v2831_v33 = vsel %vm715_vm7, %v2795_v63, 0.0  ;;  %v2833_v42 = vsel %vm715_vm7, %v2796_v45, 0.0 }
 0x235   : > { %v3574_v12 = vadd.f32 %v3544_v18, %v3442_v49  ;;  %v2401_v47 = vpop.f32.mrb[9].mxu0  ;;  %v1268_v39 = vpop.f32.mrb[11].mxu1  ;;  %v2733_v37 = vadd.f32 %v2732_v38, %v2731_v8  ;;  %v2832_v44 = vadd.f32 %v2831_v33, %v2830_v36  ;;  %v2734_v3 = vsel %vm715_vm7, %v3572_v1, 0.0 }
 0x236   : > { %v3575_v17 = vadd.f32 %v2401_v47, %v1265_v43  ;;  %v3545_v55 = vpop.f32.mrb[10].mxu0  ;;  %v2835_v6 = vsel %vm715_vm7, %v2797_v19, 0.0 }
 0x237   : > { %v3238_v15 = vpack.c.bf16 %v3574_v12, %v3574_v12  ;;  %v2404_v35 = vpop.f32.mrb[11].mxu0  ;;  %v2834_v53 = vadd.f32 %v2833_v42, %v2832_v44  ;;  %v2735_v31 = vadd.f32 %v2734_v3, %v2733_v37  ;;  %v3576_v61 = vadd.f32 %v3545_v55, %v3443_v14 }
 0x238   : > { %v3236_v30 = vpack.c.bf16 %v3575_v17, %v3575_v17  ;;  %v2736_v0 = vsel %vm715_vm7, %v3575_v17, 0.0  ;;  %v2798_v62 = vmul.f32 %v3575_v17, %v3575_v17  ;;  %v3577_v21 = vadd.f32 %v2404_v35, %v1268_v39 }
 0x239   : > { %2699 = vst.msk [vmem:[%s5167_s26 + $0x28] sm:$0xf] %vm2688_vm10, %v3238_v15  ;;  %v2800_v51 = vmul.f32 %v3574_v12, %v3574_v12  ;;  %v2737_v52 = vadd.f32 %v2736_v0, %v2735_v31  ;;  %v2836_v24 = vadd.f32 %v2835_v6, %v2834_v53  ;;  %v3239_v27 = vpack.c.bf16 %v3576_v61, %v3576_v61 }
 0x23a   : > { %2697 = vst.msk [vmem:[%s5167_s26 + $0x20] sm:$0xf] %vm2688_vm10, %v3236_v30  ;;  %v2837_v20 = vsel %vm715_vm7, %v2798_v62, 0.0  ;;  %v3446_v50 = vpop.f32.mrb[12].mxu1  ;;  %v3237_v60 = vpack.c.bf16 %v3577_v21, %v3577_v21  ;;  %v2738_v34 = vsel %vm715_vm7, %v3577_v21, 0.0  ;;  %v2799_v29 = vmul.f32 %v3577_v21, %v3577_v21 }
 0x23b   : > { %v1281_v46 = vpop.f32.mrb[13].mxu1  ;;  %v2838_v58 = vadd.f32 %v2837_v20, %v2836_v24  ;;  %2700 = vst.msk [vmem:[%s5167_s26 + $0x2c] sm:$0xf] %vm2688_vm10, %v3239_v27  ;;  %v2739_v40 = vadd.f32 %v2738_v34, %v2737_v52  ;;  %v2740_v28 = vsel %vm715_vm7, %v3574_v12, 0.0  ;;  %v2801_v4 = vmul.f32 %v3576_v61, %v3576_v61 }
 0x23c   : > { %v3548_v59 = vpop.f32.mrb[12].mxu0  ;;  %v3447_v48 = vpop.f32.mrb[14].mxu1  ;;  %2698 = vst.msk [vmem:[%s5167_s26 + $0x24] sm:$0xf] %vm2688_vm10, %v3237_v60  ;;  %v2839_v54 = vsel %vm715_vm7, %v2799_v29, 0.0  ;;  %v2841_v9 = vsel %vm715_vm7, %v2800_v51, 0.0 }
 0x23d   : > { %v3578_v41 = vadd.f32 %v3548_v59, %v3446_v50  ;;  %v2417_v11 = vpop.f32.mrb[13].mxu0  ;;  %v1284_v7 = vpop.f32.mrb[15].mxu1  ;;  %v2741_v56 = vadd.f32 %v2740_v28, %v2739_v40  ;;  %v2840_v22 = vadd.f32 %v2839_v54, %v2838_v58  ;;  %v2742_v1 = vsel %vm715_vm7, %v3576_v61, 0.0 }
 0x23e   : > { %v3579_v25 = vadd.f32 %v2417_v11, %v1281_v46  ;;  %v3549_v10 = vpop.f32.mrb[14].mxu0  ;;  %v2843_v43 = vsel %vm715_vm7, %v2801_v4, 0.0 }
 0x23f   : > { %v3242_v13 = vpack.c.bf16 %v3578_v41, %v3578_v41  ;;  %v2420_v32 = vpop.f32.mrb[15].mxu0  ;;  %v2842_v49 = vadd.f32 %v2841_v9, %v2840_v22  ;;  %v2743_v45 = vadd.f32 %v2742_v1, %v2741_v56  ;;  %v3580_v36 = vadd.f32 %v3549_v10, %v3447_v48 }
 0x240   : > { %v3240_v5 = vpack.c.bf16 %v3579_v25, %v3579_v25  ;;  %v2744_v2 = vsel %vm715_vm7, %v3579_v25, 0.0  ;;  %v2802_v57 = vmul.f32 %v3579_v25, %v3579_v25  ;;  %v3581_v26 = vadd.f32 %v2420_v32, %v1284_v7 }
 0x241   : > { %2703 = vst.msk [vmem:[%s5167_s26 + $0x38] sm:$0xf] %vm2688_vm10, %v3242_v13  ;;  %v2804_v63 = vmul.f32 %v3578_v41, %v3578_v41  ;;  %v2745_v18 = vadd.f32 %v2744_v2, %v2743_v45  ;;  %v2844_v14 = vadd.f32 %v2843_v43, %v2842_v49  ;;  %v3243_v8 = vpack.c.bf16 %v3580_v36, %v3580_v36 }
 0x242   : > { %2701 = vst.msk [vmem:[%s5167_s26 + $0x30] sm:$0xf] %vm2688_vm10, %v3240_v5  ;;  %v2845_v23 = vsel %vm715_vm7, %v2802_v57, 0.0  ;;  %v3450_v16 = vpop.f32.mrb[16].mxu1  ;;  %v3241_v47 = vpack.c.bf16 %v3581_v26, %v3581_v26  ;;  %v2746_v39 = vsel %vm715_vm7, %v3581_v26, 0.0  ;;  %v2803_v38 = vmul.f32 %v3581_v26, %v3581_v26 }
 0x243   : > { %v1297_v12 = vpop.f32.mrb[17].mxu1  ;;  %v2846_v17 = vadd.f32 %v2845_v23, %v2844_v14  ;;  %2704 = vst.msk [vmem:[%s5167_s26 + $0x3c] sm:$0xf] %vm2688_vm10, %v3243_v8  ;;  %v2747_v55 = vadd.f32 %v2746_v39, %v2745_v18  ;;  %v2748_v15 = vsel %vm715_vm7, %v3578_v41, 0.0  ;;  %v2805_v35 = vmul.f32 %v3580_v36, %v3580_v36 }
 0x244   : > { %v3552_v19 = vpop.f32.mrb[16].mxu0  ;;  %v3451_v33 = vpop.f32.mrb[18].mxu1  ;;  %2702 = vst.msk [vmem:[%s5167_s26 + $0x34] sm:$0xf] %vm2688_vm10, %v3241_v47  ;;  %v2847_v3 = vsel %vm715_vm7, %v2803_v38, 0.0  ;;  %v2849_v62 = vsel %vm715_vm7, %v2804_v63, 0.0 }
 0x245   : > { %v3582_v42 = vadd.f32 %v3552_v19, %v3450_v16  ;;  %v2433_v37 = vpop.f32.mrb[17].mxu0  ;;  %v1300_v44 = vpop.f32.mrb[19].mxu1  ;;  %v2749_v53 = vadd.f32 %v2748_v15, %v2747_v55  ;;  %v2848_v31 = vadd.f32 %v2847_v3, %v2846_v17  ;;  %v2750_v6 = vsel %vm715_vm7, %v3580_v36, 0.0 }
 0x246   : > { %v3583_v30 = vadd.f32 %v2433_v37, %v1297_v12  ;;  %v3553_v0 = vpop.f32.mrb[18].mxu0  ;;  %v2851_v60 = vsel %vm715_vm7, %v2805_v35, 0.0 }
 0x247   : > { %v3246_v61 = vpack.c.bf16 %v3582_v42, %v3582_v42  ;;  %v2436_v21 = vpop.f32.mrb[19].mxu0  ;;  %v2850_v52 = vadd.f32 %v2849_v62, %v2848_v31  ;;  %v2751_v24 = vadd.f32 %v2750_v6, %v2749_v53  ;;  %v3584_v27 = vadd.f32 %v3553_v0, %v3451_v33 }
 0x248   : > { %v3244_v20 = vpack.c.bf16 %v3583_v30, %v3583_v30  ;;  %v2752_v50 = vsel %vm715_vm7, %v3583_v30, 0.0  ;;  %v2806_v51 = vmul.f32 %v3583_v30, %v3583_v30  ;;  %v3585_v46 = vadd.f32 %v2436_v21, %v1300_v44 }
 0x249   : > { %2707 = vst.msk [vmem:[%s5167_s26 + $0x48] sm:$0xf] %vm2688_vm10, %v3246_v61  ;;  %v2808_v59 = vmul.f32 %v3582_v42, %v3582_v42  ;;  %v2753_v48 = vadd.f32 %v2752_v50, %v2751_v24  ;;  %v2852_v58 = vadd.f32 %v2851_v60, %v2850_v52  ;;  %v3247_v40 = vpack.c.bf16 %v3584_v27, %v3584_v27 }
 0x24a   : > { %2705 = vst.msk [vmem:[%s5167_s26 + $0x40] sm:$0xf] %vm2688_vm10, %v3244_v20  ;;  %v2853_v34 = vsel %vm715_vm7, %v2806_v51, 0.0  ;;  %v3454_v29 = vpop.f32.mrb[20].mxu1  ;;  %v3245_v11 = vpack.c.bf16 %v3585_v46, %v3585_v46  ;;  %v2754_v7 = vsel %vm715_vm7, %v3585_v46, 0.0  ;;  %v2807_v28 = vmul.f32 %v3585_v46, %v3585_v46 }
 0x24b   : > { %v1313_v41 = vpop.f32.mrb[21].mxu1  ;;  %v2854_v25 = vadd.f32 %v2853_v34, %v2852_v58  ;;  %2708 = vst.msk [vmem:[%s5167_s26 + $0x4c] sm:$0xf] %vm2688_vm10, %v3247_v40  ;;  %v2755_v10 = vadd.f32 %v2754_v7, %v2753_v48  ;;  %v2756_v13 = vsel %vm715_vm7, %v3582_v42, 0.0  ;;  %v2809_v32 = vmul.f32 %v3584_v27, %v3584_v27 }
 0x24c   : > { %v3556_v4 = vpop.f32.mrb[20].mxu0  ;;  %v3455_v54 = vpop.f32.mrb[22].mxu1  ;;  %2706 = vst.msk [vmem:[%s5167_s26 + $0x44] sm:$0xf] %vm2688_vm10, %v3245_v11  ;;  %v2855_v1 = vsel %vm715_vm7, %v2807_v28, 0.0  ;;  %v2857_v57 = vsel %vm715_vm7, %v2808_v59, 0.0 }
 0x24d   : > { %v3586_v9 = vadd.f32 %v3556_v4, %v3454_v29  ;;  %v2449_v56 = vpop.f32.mrb[21].mxu0  ;;  %v1316_v22 = vpop.f32.mrb[23].mxu1  ;;  %v2757_v49 = vadd.f32 %v2756_v13, %v2755_v10  ;;  %v2856_v45 = vadd.f32 %v2855_v1, %v2854_v25  ;;  %v2758_v43 = vsel %vm715_vm7, %v3584_v27, 0.0 }
 0x24e   : > { %v3587_v5 = vadd.f32 %v2449_v56, %v1313_v41  ;;  %v3557_v2 = vpop.f32.mrb[22].mxu0  ;;  %v2859_v47 = vsel %vm715_vm7, %v2809_v32, 0.0 }
 0x24f   : > { %v3250_v36 = vpack.c.bf16 %v3586_v9, %v3586_v9  ;;  %v2452_v26 = vpop.f32.mrb[23].mxu0  ;;  %v2858_v18 = vadd.f32 %v2857_v57, %v2856_v45  ;;  %v2759_v14 = vadd.f32 %v2758_v43, %v2757_v49  ;;  %v3588_v8 = vadd.f32 %v3557_v2, %v3455_v54 }
 0x250   : > { %v3248_v23 = vpack.c.bf16 %v3587_v5, %v3587_v5  ;;  %v2760_v16 = vsel %vm715_vm7, %v3587_v5, 0.0  ;;  %v2810_v63 = vmul.f32 %v3587_v5, %v3587_v5  ;;  %v3589_v12 = vadd.f32 %v2452_v26, %v1316_v22 }
 0x251   : > { %2711 = vst.msk [vmem:[%s5167_s26 + $0x58] sm:$0xf] %vm2688_vm10, %v3250_v36  ;;  %v2812_v19 = vmul.f32 %v3586_v9, %v3586_v9  ;;  %v2761_v33 = vadd.f32 %v2760_v16, %v2759_v14  ;;  %v2860_v17 = vadd.f32 %v2859_v47, %v2858_v18  ;;  %v3251_v55 = vpack.c.bf16 %v3588_v8, %v3588_v8 }
 0x252   : > { %2709 = vst.msk [vmem:[%s5167_s26 + $0x50] sm:$0xf] %vm2688_vm10, %v3248_v23  ;;  %v2861_v39 = vsel %vm715_vm7, %v2810_v63, 0.0  ;;  %v3458_v38 = vpop.f32.mrb[24].mxu1  ;;  %v3249_v37 = vpack.c.bf16 %v3589_v12, %v3589_v12  ;;  %v2762_v44 = vsel %vm715_vm7, %v3589_v12, 0.0  ;;  %v2811_v15 = vmul.f32 %v3589_v12, %v3589_v12 }
 0x253   : > { %v1329_v42 = vpop.f32.mrb[25].mxu1  ;;  %v2862_v30 = vadd.f32 %v2861_v39, %v2860_v17  ;;  %2712 = vst.msk [vmem:[%s5167_s26 + $0x5c] sm:$0xf] %vm2688_vm10, %v3251_v55  ;;  %v2763_v0 = vadd.f32 %v2762_v44, %v2761_v33  ;;  %v2764_v61 = vsel %vm715_vm7, %v3586_v9, 0.0  ;;  %v2813_v21 = vmul.f32 %v3588_v8, %v3588_v8 }
 0x254   : > { %v3560_v35 = vpop.f32.mrb[24].mxu0  ;;  %v3459_v3 = vpop.f32.mrb[26].mxu1  ;;  %2710 = vst.msk [vmem:[%s5167_s26 + $0x54] sm:$0xf] %vm2688_vm10, %v3249_v37  ;;  %v2863_v6 = vsel %vm715_vm7, %v2811_v15, 0.0  ;;  %v2865_v51 = vsel %vm715_vm7, %v2812_v19, 0.0 }
 0x255   : > { %v3590_v62 = vadd.f32 %v3560_v35, %v3458_v38  ;;  %v2465_v53 = vpop.f32.mrb[25].mxu0  ;;  %v1332_v31 = vpop.f32.mrb[27].mxu1  ;;  %v2765_v52 = vadd.f32 %v2764_v61, %v2763_v0  ;;  %v2864_v24 = vadd.f32 %v2863_v6, %v2862_v30  ;;  %v2766_v60 = vsel %vm715_vm7, %v3588_v8, 0.0 }
 0x256   : > { %v3591_v20 = vadd.f32 %v2465_v53, %v1329_v42  ;;  %v3561_v50 = vpop.f32.mrb[26].mxu0  ;;  %v2867_v11 = vsel %vm715_vm7, %v2813_v21, 0.0 }
 0x257   : > { %v3254_v27 = vpack.c.bf16 %v3590_v62, %v3590_v62  ;;  %v2468_v46 = vpop.f32.mrb[27].mxu0  ;;  %v2866_v48 = vadd.f32 %v2865_v51, %v2864_v24  ;;  %v2767_v58 = vadd.f32 %v2766_v60, %v2765_v52  ;;  %v3592_v40 = vadd.f32 %v3561_v50, %v3459_v3 }
 0x258   : > { %v3252_v34 = vpack.c.bf16 %v3591_v20, %v3591_v20  ;;  %v2768_v29 = vsel %vm715_vm7, %v3591_v20, 0.0  ;;  %v2814_v59 = vmul.f32 %v3591_v20, %v3591_v20  ;;  %v3593_v41 = vadd.f32 %v2468_v46, %v1332_v31 }
 0x259   : > { %2715 = vst.msk [vmem:[%s5167_s26 + $0x68] sm:$0xf] %vm2688_vm10, %v3254_v27  ;;  %v2816_v4 = vmul.f32 %v3590_v62, %v3590_v62  ;;  %v2769_v54 = vadd.f32 %v2768_v29, %v2767_v58  ;;  %v2868_v25 = vadd.f32 %v2867_v11, %v2866_v48  ;;  %v3255_v10 = vpack.c.bf16 %v3592_v40, %v3592_v40 }
 0x25a   : > { %2713 = vst.msk [vmem:[%s5167_s26 + $0x60] sm:$0xf] %vm2688_vm10, %v3252_v34  ;;  %v2869_v7 = vsel %vm715_vm7, %v2814_v59, 0.0  ;;  %v3462_v28 = vpop.f32.mrb[28].mxu1  ;;  %v3253_v56 = vpack.c.bf16 %v3593_v41, %v3593_v41  ;;  %v2770_v22 = vsel %vm715_vm7, %v3593_v41, 0.0  ;;  %v2815_v13 = vmul.f32 %v3593_v41, %v3593_v41 }
 0x25b   : > { %v1345_v9 = vpop.f32.mrb[29].mxu1  ;;  %v2870_v5 = vadd.f32 %v2869_v7, %v2868_v25  ;;  %2716 = vst.msk [vmem:[%s5167_s26 + $0x6c] sm:$0xf] %vm2688_vm10, %v3255_v10  ;;  %v2771_v2 = vadd.f32 %v2770_v22, %v2769_v54  ;;  %v2772_v36 = vsel %vm715_vm7, %v3590_v62, 0.0  ;;  %v2817_v26 = vmul.f32 %v3592_v40, %v3592_v40 }
 0x25c   : > { %v3564_v32 = vpop.f32.mrb[28].mxu0  ;;  %v3463_v1 = vpop.f32.mrb[30].mxu1  ;;  %2714 = vst.msk [vmem:[%s5167_s26 + $0x64] sm:$0xf] %vm2688_vm10, %v3253_v56  ;;  %v2871_v43 = vsel %vm715_vm7, %v2815_v13, 0.0  ;;  %v2873_v63 = vsel %vm715_vm7, %v2816_v4, 0.0 }
 0x25d   : > { %v3594_v57 = vadd.f32 %v3564_v32, %v3462_v28  ;;  %v2481_v49 = vpop.f32.mrb[29].mxu0  ;;  %v1348_v45 = vpop.f32.mrb[31].mxu1  ;;  %v2773_v18 = vadd.f32 %v2772_v36, %v2771_v2  ;;  %v2872_v14 = vadd.f32 %v2871_v43, %v2870_v5  ;;  %v2774_v47 = vsel %vm715_vm7, %v3592_v40, 0.0 }
 0x25e   : > { %v3595_v23 = vadd.f32 %v2481_v49, %v1345_v9  ;;  %v3565_v16 = vpop.f32.mrb[30].mxu0  ;;  %v2875_v37 = vsel %vm715_vm7, %v2817_v26, 0.0 }
 0x25f   : > { %v3258_v8 = vpack.c.bf16 %v3594_v57, %v3594_v57  ;;  %v2484_v12 = vpop.f32.mrb[31].mxu0  ;;  %v2874_v33 = vadd.f32 %v2873_v63, %v2872_v14  ;;  %v2775_v17 = vadd.f32 %v2774_v47, %v2773_v18  ;;  %v3596_v55 = vadd.f32 %v3565_v16, %v3463_v1 }
 0x260   : > { %v3256_v39 = vpack.c.bf16 %v3595_v23, %v3595_v23  ;;  %v2776_v38 = vsel %vm715_vm7, %v3595_v23, 0.0  ;;  %v2818_v19 = vmul.f32 %v3595_v23, %v3595_v23  ;;  %v3597_v42 = vadd.f32 %v2484_v12, %v1348_v45 }
 0x261   : > { %2719 = vst.msk [vmem:[%s5167_s26 + $0x78] sm:$0xf] %vm2688_vm10, %v3258_v8  ;;  %v2777_v15 = vadd.f32 %v2776_v38, %v2775_v17  ;;  %v2876_v35 = vadd.f32 %v2875_v37, %v2874_v33  ;;  %v3259_v3 = vpack.c.bf16 %v3596_v55, %v3596_v55  ;;  %v2820_v30 = vmul.f32 %v3594_v57, %v3594_v57 }
 0x262   : > { %2717 = vst.msk [vmem:[%s5167_s26 + $0x70] sm:$0xf] %vm2688_vm10, %v3256_v39  ;;  %v2877_v44 = vsel %vm715_vm7, %v2818_v19, 0.0  ;;  %v3257_v0 = vpack.c.bf16 %v3597_v42, %v3597_v42  ;;  %v2778_v62 = vsel %vm715_vm7, %v3597_v42, 0.0  ;;  %v2819_v53 = vmul.f32 %v3597_v42, %v3597_v42 }
 0x263   : > { %v2878_v31 = vadd.f32 %v2877_v44, %v2876_v35  ;;  %2720 = vst.msk [vmem:[%s5167_s26 + $0x7c] sm:$0xf] %vm2688_vm10, %v3259_v3  ;;  %v2779_v61 = vadd.f32 %v2778_v62, %v2777_v15  ;;  %v2780_v21 = vsel %vm715_vm7, %v3594_v57, 0.0  ;;  %v2821_v6 = vmul.f32 %v3596_v55, %v3596_v55 }
 0x264   : > { %2718 = vst.msk [vmem:[%s5167_s26 + $0x74] sm:$0xf] %vm2688_vm10, %v3257_v0  ;;  %v2879_v20 = vsel %vm715_vm7, %v2819_v53, 0.0  ;;  %v2881_v52 = vsel %vm715_vm7, %v2820_v30, 0.0  ;;  %v2782_v24 = vsel %vm715_vm7, %v3596_v55, 0.0 }
 0x265   : > { %v2781_v50 = vadd.f32 %v2780_v21, %v2779_v61  ;;  %v2880_v51 = vadd.f32 %v2879_v20, %v2878_v31  ;;  %v2883_v60 = vsel %vm715_vm7, %v2821_v6, 0.0 }
 0x267   : > { %v2783_v27 = vadd.f32 %v2782_v24, %v2781_v50  ;;  %v2882_v46 = vadd.f32 %v2881_v52, %v2880_v51 }
 0x269   : > { %v2784_v34 = vrot.slane %v2783_v27, 4  ;;  %v2884_v29 = vadd.f32 %v2883_v60, %v2882_v46 }
 0x26b   : > { %v2785_v59 = vadd.f32 %v2784_v34, %v2783_v27  ;;  %v2885_v48 = vrot.slane %v2884_v29, 4 }
 0x26d   : > { %v2786_v58 = vrot.slane %v2785_v59, 2  ;;  %v2886_v40 = vadd.f32 %v2885_v48, %v2884_v29 }
 0x26f   : > { %v2787_v41 = vadd.f32 %v2786_v58, %v2785_v59  ;;  %v2887_v11 = vrot.slane %v2886_v40, 2 }
 0x271   : > { %v2788_v7 = vrot.slane %v2787_v41, 1  ;;  %v2888_v28 = vadd.f32 %v2887_v11, %v2886_v40 }
 0x273   : > { %v2889_v4 = vrot.slane %v2888_v28, 1  ;;  %v2789_v54 = vadd.f32 %v2788_v7, %v2787_v41 }
 0x275   : > { %v2890_v25 = vadd.f32 %v2889_v4, %v2888_v28 }
 0x277   : > { %v2892_v10 = vsel %vm511_vm4, %v2789_v54, %v2890_v25 }
 0x278   : > { %2894 = vst.msk [vmem:[%s288_s29] sm:$0x3] %vm2893_vm11, %v2892_v10 }
 0x279 PF: > { %s16_s20 = sadd.s32 1, %s3813_s20   ;;  %s5461_s18 = smov %s3809_s19 }
 0x27a   : > { %p13_p5 = scmp.ge.s32.totalorder %s16_s20, 4   ;;  %s5462_s19 = smov %s5464_s21 }
 0x27c   :  { %15 = sbr.rel (!%p13_p5) target bundleno = 2 (0x2), region = 91 }

</bundles_post_ra>
